<compile_context>
chip_gen: v5e
topology: v5e:2x2
jax: 0.10.0
libtpu: 0.0.40
codegen_flags: <defaults>
</compile_context>

<pallas_src>
import functools

import jax
import jax.numpy as jnp
from jax.experimental import pallas as pl
from jax.experimental.pallas import tpu as pltpu


LANE = 128                      # hidden padded to a multiple of this
EPS = 1e-5


def _round_up(v, m):
    return (v + m - 1) // m * m


def _device_kind():
    try:
        return jax.devices()[0].device_kind.lower()
    except Exception:
        return ""


def _vmem_budget_bytes():
    """Generation-aware scoped-VMEM budget (~0.85x per-TC capacity)."""
    try:
        cap = int(pltpu.get_tpu_info().vmem_capacity_bytes)
    except Exception:
        cap = 64 * 1024 * 1024          # conservative fallback (v7x-sized)
    return int(cap * 0.85)


# ---------------------- kernel: one propagation step ------------------------
def _prop_step_kernel(adj_ref, z_ref, out_ref, acc_ref, *, tile_k):
    k = pl.program_id(1)

    @pl.when(k == 0)
    def _():
        acc_ref[...] = jnp.zeros_like(acc_ref)

    kk = pl.multiple_of(k * tile_k, tile_k)
    z_blk = z_ref[pl.ds(kk, tile_k), :]          # z is VMEM-resident; slice K tile
    acc_ref[...] += jnp.dot(adj_ref[...], z_blk,
                            preferred_element_type=jnp.float32)

    @pl.when(k == pl.num_programs(1) - 1)
    def _():
        out_ref[...] = acc_ref[...].astype(out_ref.dtype)


# -------------- kernel: last propagation step + fused epilogue --------------
def _prop_final_kernel(adj_ref, z_ref, wp_ref,
                       s1_ref, t1_ref, s2_ref, t2_ref,
                       a1_ref, a2_ref,
                       z_out_ref, p_out_ref, acc_ref, *, tile_k):
    k = pl.program_id(1)

    @pl.when(k == 0)
    def _():
        acc_ref[...] = jnp.zeros_like(acc_ref)

    kk = pl.multiple_of(k * tile_k, tile_k)
    z_blk = z_ref[pl.ds(kk, tile_k), :]
    acc_ref[...] += jnp.dot(adj_ref[...], z_blk,
                            preferred_element_type=jnp.float32)

    @pl.when(k == pl.num_programs(1) - 1)
    def _():
        z = acc_ref[...]
        # PReLU (shared alpha broadcast to feature vector); eval dropout = id.
        z = jnp.where(z >= 0.0, z, a1_ref[...] * z)
        # Folded BatchNorm1d (eval running stats): single FMA per element.
        z = z * s1_ref[...] + t1_ref[...]
        z_out_ref[...] = z.astype(z_out_ref.dtype)
        # Projection head: Linear (bias folded into t2) -> BN2 -> PReLU.
        h = jnp.dot(z.astype(wp_ref.dtype), wp_ref[...],
                    preferred_element_type=jnp.float32)
        h = h * s2_ref[...] + t2_ref[...]
        h = jnp.where(h >= 0.0, h, a2_ref[...] * h)
        p_out_ref[...] = h.astype(p_out_ref.dtype)


# --------------------------------- wrapper ----------------------------------
def gconv2_forward(x, adj, params, k_steps, single_buffer_residents=True):
    """Fused GConv2 forward. Returns (z, projection), each [N, hidden] bf16."""
    assert k_steps >= 1, "SGC propagation requires at least one layer"
    n, in_dim = x.shape
    hidden = params["w1"].shape[1]
    h_pad = _round_up(hidden, LANE)

    # ---- tile selection (generation aware) ----------------------------------
    kind = _device_kind()
    vmem_budget = _vmem_budget_bytes()

    n128 = _round_up(n, 128)
    tile_k = 512 if n128 >= 512 else (256 if n128 >= 256 else 128)
    tile_m = 128 if "v5" in kind else 256          # 2x256 MXU on v6e/v7x
    tile_m = min(tile_m, tile_k)

    # Shrink the adjacency stream tile if the working set would blow the budget.
    while tile_k > 128:
        n_pad_try = _round_up(n, tile_k)
        resident = n_pad_try * h_pad * 2                 # bf16 resident z
        working = 2 * tile_m * tile_k * 2                # double-buffered adj
        working += tile_m * h_pad * 4                    # f32 accumulator
        working += 4 * tile_m * h_pad * 2                # buffered bf16 outputs
        working += h_pad * h_pad * 2                     # resident wp
        if resident + working <= vmem_budget // 2:
            break
        tile_k //= 2
        tile_m = min(tile_m, tile_k)
    n_pad = _round_up(n, tile_k)                          # tile_m divides tile_k

    # ---- fold BatchNorm (eval) into scale/shift; fold bp into t2 ------------
    s1 = params["bn1_g"] * jax.lax.rsqrt(params["bn1_v"] + EPS)
    t1 = params["bn1_b"] - params["bn1_m"] * s1
    s2 = params["bn2_g"] * jax.lax.rsqrt(params["bn2_v"] + EPS)
    t2 = (params["bp"] - params["bn2_m"]) * s2 + params["bn2_b"]

    def pad2(a, rows, cols):
        return jnp.pad(a, ((0, rows - a.shape[0]), (0, cols - a.shape[1])))

    # bf16 matmul operands (f32 accumulation inside the kernels).
    x_b = pad2(x, n_pad, in_dim).astype(jnp.bfloat16)
    adj_b = pad2(adj, n_pad, n_pad).astype(jnp.bfloat16)
    w1_b = pad2(params["w1"], in_dim, h_pad).astype(jnp.bfloat16)
    wp_b = pad2(params["wp"], h_pad, h_pad).astype(jnp.bfloat16)
    # f32 epilogue params (pad lanes get scale=0/shift=0 -> stay zero).
    b1_p = pad2(params["b1"], 1, h_pad)
    s1_p = pad2(s1, 1, h_pad)
    t1_p = pad2(t1, 1, h_pad)
    s2_p = pad2(s2, 1, h_pad)
    t2_p = pad2(t2, 1, h_pad)
    a1_v = jnp.broadcast_to(params["a1"].reshape(1, 1), (1, h_pad))
    a2_v = jnp.broadcast_to(params["a2"].reshape(1, 1), (1, h_pad))

    # ---- step 0: z0 = relu(x @ W1 + b1) in plain XLA (K = in_dim is tiny) ---
    z = jnp.dot(x_b, w1_b, preferred_element_type=jnp.float32) + b1_p
    z = jnp.maximum(z, 0.0).astype(jnp.bfloat16)

    grid_rows = n_pad // tile_m
    grid_k = n_pad // tile_k

    # ---- shared specs for the adjacency-tiled propagation kernels -----------
    def const_spec(shape):
        if single_buffer_residents:
            return pl.BlockSpec(shape, lambda i, k: (0, 0),
                                pipeline_mode=pl.Buffered(1))
        return pl.BlockSpec(shape, lambda i, k: (0, 0))

    adj_spec = pl.BlockSpec((tile_m, tile_k), lambda i, k: (i, k))
    row_spec = pl.BlockSpec((tile_m, h_pad), lambda i, k: (i, 0))
    zres_spec = const_spec((n_pad, h_pad))      # resident z, single DMA
    mat_spec = const_spec((h_pad, h_pad))       # resident projection weight
    vec_spec = const_spec((1, h_pad))           # resident scale/shift vectors

    prop_cparams = pltpu.CompilerParams(
        dimension_semantics=("parallel", "arbitrary"),
        vmem_limit_bytes=vmem_budget)
    prop_cost = pl.CostEstimate(
        flops=2 * n_pad * n_pad * h_pad,
        transcendentals=0,
        bytes_accessed=n_pad * n_pad * 2 + n_pad * h_pad * 2 + n_pad * h_pad * 2)

    step_kernel = functools.partial(_prop_step_kernel, tile_k=tile_k)
    final_kernel = functools.partial(_prop_final_kernel, tile_k=tile_k)

    # ---- steps 1 .. k-1: z <- adj @ z, adjacency streamed in bf16 tiles -----
    for _ in range(k_steps - 1):
        z = pl.pallas_call(
            step_kernel,
            grid=(grid_rows, grid_k),
            in_specs=[adj_spec, zres_spec],
            out_specs=row_spec,
            out_shape=jax.ShapeDtypeStruct((n_pad, h_pad), jnp.bfloat16),
            scratch_shapes=[pltpu.VMEM((tile_m, h_pad), jnp.float32)],
            compiler_params=prop_cparams,
            cost_estimate=prop_cost,
        )(adj_b, z)

    # ---- last step: propagation + fused PReLU/BN/projection epilogue --------
    final_cost = pl.CostEstimate(
        flops=2 * n_pad * n_pad * h_pad + 2 * n_pad * h_pad * h_pad,
        transcendentals=0,
        bytes_accessed=(n_pad * n_pad * 2 + n_pad * h_pad * 2
                        + h_pad * h_pad * 2 + 2 * n_pad * h_pad * 2))
    z_full, p_full = pl.pallas_call(
        final_kernel,
        grid=(grid_rows, grid_k),
        in_specs=[adj_spec, zres_spec, mat_spec,
                  vec_spec, vec_spec, vec_spec, vec_spec,
                  vec_spec, vec_spec],
        out_specs=(row_spec, row_spec),
        out_shape=(jax.ShapeDtypeStruct((n_pad, h_pad), jnp.bfloat16),
                   jax.ShapeDtypeStruct((n_pad, h_pad), jnp.bfloat16)),
        scratch_shapes=[pltpu.VMEM((tile_m, h_pad), jnp.float32)],
        compiler_params=prop_cparams,
        cost_estimate=final_cost,
    )(adj_b, z, wp_b, s1_p, t1_p, s2_p, t2_p, a1_v, a2_v)

    return z_full[:n, :hidden], p_full[:n, :hidden]


# ---------------------- pure-JAX reference (same numerics) -------------------
def gconv2_reference(x, adj, params, k_steps):
    """Pure-JAX reference mirroring the kernel's bf16-operand / f32-acc policy."""
    s1 = params["bn1_g"] * jax.lax.rsqrt(params["bn1_v"] + EPS)
    t1 = params["bn1_b"] - params["bn1_m"] * s1
    s2 = params["bn2_g"] * jax.lax.rsqrt(params["bn2_v"] + EPS)
    t2 = (params["bp"] - params["bn2_m"]) * s2 + params["bn2_b"]

    z = jnp.dot(x.astype(jnp.bfloat16), params["w1"].astype(jnp.bfloat16),
                preferred_element_type=jnp.float32) + params["b1"]
    z = jnp.maximum(z, 0.0).astype(jnp.bfloat16)
    adj_b = adj.astype(jnp.bfloat16)
    for step in range(k_steps):
        z32 = jnp.dot(adj_b, z, preferred_element_type=jnp.float32)
        z = z32.astype(jnp.bfloat16) if step < k_steps - 1 else z32
    z = jnp.where(z >= 0.0, z, params["a1"][0] * z)
    z = z * s1 + t1
    h = jnp.dot(z.astype(jnp.bfloat16), params["wp"].astype(jnp.bfloat16),
                preferred_element_type=jnp.float32)
    h = h * s2 + t2
    h = jnp.where(h >= 0.0, h, params["a2"][0] * h)
    return z.astype(jnp.bfloat16), h.astype(jnp.bfloat16)


def make_params(key, in_dim, hidden):
    k1, k2, k3, k4 = jax.random.split(key, 4)
    return {
        # SGC linear (weights pre-transposed to [in, out])
        "w1": jax.random.normal(k1, (in_dim, hidden), jnp.float32) / jnp.sqrt(in_dim),
        "b1": 0.1 * jax.random.normal(k2, (1, hidden), jnp.float32),
        # encoder BatchNorm1d (fresh PyTorch init: gamma=1, beta=0, rm=0, rv=1)
        "bn1_g": jnp.ones((1, hidden), jnp.float32),
        "bn1_b": jnp.zeros((1, hidden), jnp.float32),
        "bn1_m": jnp.zeros((1, hidden), jnp.float32),
        "bn1_v": jnp.ones((1, hidden), jnp.float32),
        # projection head linear
        "wp": jax.random.normal(k3, (hidden, hidden), jnp.float32) / jnp.sqrt(hidden),
        "bp": 0.1 * jax.random.normal(k4, (1, hidden), jnp.float32),
        # projector BatchNorm1d
        "bn2_g": jnp.ones((1, hidden), jnp.float32),
        "bn2_b": jnp.zeros((1, hidden), jnp.float32),
        "bn2_m": jnp.zeros((1, hidden), jnp.float32),
        "bn2_v": jnp.ones((1, hidden), jnp.float32),
        # PReLU alphas (PyTorch default init = 0.25)
        "a1": jnp.full((1,), 0.25, jnp.float32),
        "a2": jnp.full((1,), 0.25, jnp.float32),
    }


if __name__ == "__main__":
    # N deliberately not a multiple of 128 to exercise padding/cropping and
    # a multi-tile (rows x K) propagation grid.
    N, IN_DIM, HIDDEN, NLAYERS = 300, 16, 32, 2

    key = jax.random.PRNGKey(0)
    kx, kadj, kp = jax.random.split(key, 3)

    x = jax.random.normal(kx, (N, IN_DIM), jnp.float32)

    # simple symmetric row-normalized dense adjacency with self-loops
    a = (jax.random.uniform(kadj, (N, N)) > 0.9).astype(jnp.float32)
    a = jnp.maximum(a, a.T) + jnp.eye(N, dtype=jnp.float32)
    adj = a / jnp.sum(a, axis=1, keepdims=True)

    params = make_params(kp, IN_DIM, HIDDEN)

    try:
        fwd = jax.jit(functools.partial(gconv2_forward, k_steps=NLAYERS,
                                        single_buffer_residents=True))
        z, proj = fwd(x, adj, params)
        jax.block_until_ready((z, proj))
    except Exception:
        # Fallback for toolchains without pipeline_mode=pl.Buffered(1) support.
        fwd = jax.jit(functools.partial(gconv2_forward, k_steps=NLAYERS,
                                        single_buffer_residents=False))
        z, proj = fwd(x, adj, params)
        jax.block_until_ready((z, proj))

    z_ref, p_ref = gconv2_reference(x, adj, params, NLAYERS)
    assert z.shape == (N, HIDDEN) and proj.shape == (N, HIDDEN)
    assert jnp.allclose(z.astype(jnp.float32), z_ref.astype(jnp.float32),
                        atol=2e-2, rtol=2e-2), "encoder output mismatch"
    assert jnp.allclose(proj.astype(jnp.float32), p_ref.astype(jnp.float32),
                        atol=2e-2, rtol=2e-2), "projection output mismatch"

    print("KERNEL_OK")
</pallas_src>

<mosaic_0001>
module attributes {stable_mosaic.version = 11 : i64} {
  func.func @_prop_step_kernel(%arg0: i32, %arg1: i32, %arg2: memref<256x256xbf16, #tpu.memory_space<vmem>>, %arg3: memref<512x128xbf16, #tpu.memory_space<vmem>>, %arg4: memref<256x128xbf16, #tpu.memory_space<vmem>>, %arg5: memref<256x128xf32, #tpu.memory_space<vmem>>) attributes {dimension_semantics = [#tpu.dimension_semantics<parallel>, #tpu.dimension_semantics<arbitrary>], iteration_bounds = array<i64: 2, 2>, scalar_prefetch = 0 : i64, scratch_operands = 1 : i64, tpu.core_type = #tpu.core_type<tc>, window_params = [{transform_indices = @transform_0, window_bounds = array<i64: 256, 256>}, {pipeline_mode = #tpu.pipeline_mode<synchronous>, transform_indices = @transform_1, window_bounds = array<i64: 512, 128>}, {transform_indices = @transform_2, window_bounds = array<i64: 256, 128>}]} {
    %c0_i32 = arith.constant 0 : i32
    %0 = arith.cmpi eq, %arg1, %c0_i32 : i32
    %1 = arith.extui %0 : i1 to i32
    %c0_i32_0 = arith.constant 0 : i32
    %2 = arith.cmpi ne, %1, %c0_i32_0 : i32
    scf.if %2 {
      %cst_8 = arith.constant 0.000000e+00 : f32
      %15 = vector.broadcast %cst_8 : f32 to vector<256x128xf32>
      %c0_9 = arith.constant 0 : index
      %c0_10 = arith.constant 0 : index
      %16 = vector.load %arg5[%c0_9, %c0_10] : memref<256x128xf32, #tpu.memory_space<vmem>>, vector<256x128xf32>
      tpu.vector_store %arg5[%c0_9, %c0_10], %15 {strides = array<i32>} : memref<256x128xf32, #tpu.memory_space<vmem>>, vector<256x128xf32>,
    } else {
    }
    %c256_i32 = arith.constant 256 : i32
    %3 = arith.muli %arg1, %c256_i32 : i32
    %4 = tpu.assume_multiple %3, 256 : i32
    %5 = arith.index_cast %4 : i32 to index
    %c0 = arith.constant 0 : index
    %6 = vector.load %arg3[%5, %c0] : memref<512x128xbf16, #tpu.memory_space<vmem>>, vector<256x128xbf16>
    %c0_1 = arith.constant 0 : index
    %c0_2 = arith.constant 0 : index
    %7 = vector.load %arg5[%c0_1, %c0_2] : memref<256x128xf32, #tpu.memory_space<vmem>>, vector<256x128xf32>
    %c0_3 = arith.constant 0 : index
    %c0_4 = arith.constant 0 : index
    %8 = vector.load %arg2[%c0_3, %c0_4] : memref<256x256xbf16, #tpu.memory_space<vmem>>, vector<256x256xbf16>
    %cst = arith.constant dense<0.000000e+00> : vector<256x128xf32>
    %9 = tpu.matmul %8, %6, %cst {dimension_numbers = #tpu.dot_dimension_numbers<[1], [0], [0], [1], [0, 0, 1, 1], [], []>} : vector<256x256xbf16>, vector<256x128xbf16>, vector<256x128xf32> -> vector<256x128xf32>
    %10 = arith.addf %7, %9 : vector<256x128xf32>
    %c0_5 = arith.constant 0 : index
    %c0_6 = arith.constant 0 : index
    %11 = vector.load %arg5[%c0_5, %c0_6] : memref<256x128xf32, #tpu.memory_space<vmem>>, vector<256x128xf32>
    tpu.vector_store %arg5[%c0_5, %c0_6], %10 {strides = array<i32>} : memref<256x128xf32, #tpu.memory_space<vmem>>, vector<256x128xf32>,
    %c1_i32 = arith.constant 1 : i32
    %12 = arith.cmpi eq, %arg1, %c1_i32 : i32
    %13 = arith.extui %12 : i1 to i32
    %c0_i32_7 = arith.constant 0 : i32
    %14 = arith.cmpi ne, %13, %c0_i32_7 : i32
    scf.if %14 {
      %c0_8 = arith.constant 0 : index
      %c0_9 = arith.constant 0 : index
      %15 = vector.load %arg5[%c0_8, %c0_9] : memref<256x128xf32, #tpu.memory_space<vmem>>, vector<256x128xf32>
      %16 = arith.truncf %15 : vector<256x128xf32> to vector<256x128xbf16>
      %c0_10 = arith.constant 0 : index
      %c0_11 = arith.constant 0 : index
      %17 = vector.load %arg4[%c0_10, %c0_11] : memref<256x128xbf16, #tpu.memory_space<vmem>>, vector<256x128xbf16>
      tpu.vector_store %arg4[%c0_10, %c0_11], %16 {strides = array<i32>} : memref<256x128xbf16, #tpu.memory_space<vmem>>, vector<256x128xbf16>,
    } else {
    }
    return
  }
  func.func @transform_0(%arg0: i32, %arg1: i32) -> (i32, i32) {
    %c0_i32 = arith.constant 0 : i32
    return %arg0, %arg1 : i32, i32
  }
  func.func @transform_1(%arg0: i32, %arg1: i32) -> (i32, i32) {
    %c0_i32 = arith.constant 0 : i32
    %c0_i32_0 = arith.constant 0 : i32
    %c0_i32_1 = arith.constant 0 : i32
    return %c0_i32, %c0_i32_0 : i32, i32
  }
  func.func @transform_2(%arg0: i32, %arg1: i32) -> (i32, i32) {
    %c0_i32 = arith.constant 0 : i32
    %c0_i32_0 = arith.constant 0 : i32
    return %arg0, %c0_i32 : i32, i32
  }
}

module attributes {stable_mosaic.version = 11 : i64} {
  func.func @_prop_final_kernel(%arg0: i32, %arg1: i32, %arg2: memref<256x256xbf16, #tpu.memory_space<vmem>>, %arg3: memref<512x128xbf16, #tpu.memory_space<vmem>>, %arg4: memref<128x128xbf16, #tpu.memory_space<vmem>>, %arg5: memref<1x128xf32, #tpu.memory_space<vmem>>, %arg6: memref<1x128xf32, #tpu.memory_space<vmem>>, %arg7: memref<1x128xf32, #tpu.memory_space<vmem>>, %arg8: memref<1x128xf32, #tpu.memory_space<vmem>>, %arg9: memref<1x128xf32, #tpu.memory_space<vmem>>, %arg10: memref<1x128xf32, #tpu.memory_space<vmem>>, %arg11: memref<256x128xbf16, #tpu.memory_space<vmem>>, %arg12: memref<256x128xbf16, #tpu.memory_space<vmem>>, %arg13: memref<256x128xf32, #tpu.memory_space<vmem>>) attributes {dimension_semantics = [#tpu.dimension_semantics<parallel>, #tpu.dimension_semantics<arbitrary>], iteration_bounds = array<i64: 2, 2>, scalar_prefetch = 0 : i64, scratch_operands = 1 : i64, tpu.core_type = #tpu.core_type<tc>, window_params = [{transform_indices = @transform_0, window_bounds = array<i64: 256, 256>}, {pipeline_mode = #tpu.pipeline_mode<synchronous>, transform_indices = @transform_1, window_bounds = array<i64: 512, 128>}, {pipeline_mode = #tpu.pipeline_mode<synchronous>, transform_indices = @transform_2, window_bounds = array<i64: 128, 128>}, {pipeline_mode = #tpu.pipeline_mode<synchronous>, transform_indices = @transform_3, window_bounds = array<i64: 1, 128>}, {pipeline_mode = #tpu.pipeline_mode<synchronous>, transform_indices = @transform_4, window_bounds = array<i64: 1, 128>}, {pipeline_mode = #tpu.pipeline_mode<synchronous>, transform_indices = @transform_5, window_bounds = array<i64: 1, 128>}, {pipeline_mode = #tpu.pipeline_mode<synchronous>, transform_indices = @transform_6, window_bounds = array<i64: 1, 128>}, {pipeline_mode = #tpu.pipeline_mode<synchronous>, transform_indices = @transform_7, window_bounds = array<i64: 1, 128>}, {pipeline_mode = #tpu.pipeline_mode<synchronous>, transform_indices = @transform_8, window_bounds = array<i64: 1, 128>}, {transform_indices = @transform_9, window_bounds = array<i64: 256, 128>}, {transform_indices = @transform_10, window_bounds = array<i64: 256, 128>}]} {
    %c0_i32 = arith.constant 0 : i32
    %0 = arith.cmpi eq, %arg1, %c0_i32 : i32
    %1 = arith.extui %0 : i1 to i32
    %c0_i32_0 = arith.constant 0 : i32
    %2 = arith.cmpi ne, %1, %c0_i32_0 : i32
    scf.if %2 {
      %cst_8 = arith.constant 0.000000e+00 : f32
      %15 = vector.broadcast %cst_8 : f32 to vector<256x128xf32>
      %c0_9 = arith.constant 0 : index
      %c0_10 = arith.constant 0 : index
      %16 = vector.load %arg13[%c0_9, %c0_10] : memref<256x128xf32, #tpu.memory_space<vmem>>, vector<256x128xf32>
      tpu.vector_store %arg13[%c0_9, %c0_10], %15 {strides = array<i32>} : memref<256x128xf32, #tpu.memory_space<vmem>>, vector<256x128xf32>,
    } else {
    }
    %c256_i32 = arith.constant 256 : i32
    %3 = arith.muli %arg1, %c256_i32 : i32
    %4 = tpu.assume_multiple %3, 256 : i32
    %5 = arith.index_cast %4 : i32 to index
    %c0 = arith.constant 0 : index
    %6 = vector.load %arg3[%5, %c0] : memref<512x128xbf16, #tpu.memory_space<vmem>>, vector<256x128xbf16>
    %c0_1 = arith.constant 0 : index
    %c0_2 = arith.constant 0 : index
    %7 = vector.load %arg13[%c0_1, %c0_2] : memref<256x128xf32, #tpu.memory_space<vmem>>, vector<256x128xf32>
    %c0_3 = arith.constant 0 : index
    %c0_4 = arith.constant 0 : index
    %8 = vector.load %arg2[%c0_3, %c0_4] : memref<256x256xbf16, #tpu.memory_space<vmem>>, vector<256x256xbf16>
    %cst = arith.constant dense<0.000000e+00> : vector<256x128xf32>
    %9 = tpu.matmul %8, %6, %cst {dimension_numbers = #tpu.dot_dimension_numbers<[1], [0], [0], [1], [0, 0, 1, 1], [], []>} : vector<256x256xbf16>, vector<256x128xbf16>, vector<256x128xf32> -> vector<256x128xf32>
    %10 = arith.addf %7, %9 : vector<256x128xf32>
    %c0_5 = arith.constant 0 : index
    %c0_6 = arith.constant 0 : index
    %11 = vector.load %arg13[%c0_5, %c0_6] : memref<256x128xf32, #tpu.memory_space<vmem>>, vector<256x128xf32>
    tpu.vector_store %arg13[%c0_5, %c0_6], %10 {strides = array<i32>} : memref<256x128xf32, #tpu.memory_space<vmem>>, vector<256x128xf32>,
    %c1_i32 = arith.constant 1 : i32
    %12 = arith.cmpi eq, %arg1, %c1_i32 : i32
    %13 = arith.extui %12 : i1 to i32
    %c0_i32_7 = arith.constant 0 : i32
    %14 = arith.cmpi ne, %13, %c0_i32_7 : i32
    scf.if %14 {
      %c0_8 = arith.constant 0 : index
      %c0_9 = arith.constant 0 : index
      %15 = vector.load %arg13[%c0_8, %c0_9] : memref<256x128xf32, #tpu.memory_space<vmem>>, vector<256x128xf32>
      %cst_10 = arith.constant 0.000000e+00 : f32
      %16 = vector.broadcast %cst_10 : f32 to vector<256x128xf32>
      %17 = arith.cmpf oge, %15, %16 : vector<256x128xf32>
      %c0_11 = arith.constant 0 : index
      %c0_12 = arith.constant 0 : index
      %18 = vector.load %arg9[%c0_11, %c0_12] : memref<1x128xf32, #tpu.memory_space<vmem>>, vector<1x128xf32>
      %19 = vector.broadcast %18 : vector<1x128xf32> to vector<256x128xf32>
      %20 = arith.mulf %19, %15 : vector<256x128xf32>
      %21 = arith.select %17, %15, %20 : vector<256x128xi1>, vector<256x128xf32>
      %c0_13 = arith.constant 0 : index
      %c0_14 = arith.constant 0 : index
      %22 = vector.load %arg5[%c0_13, %c0_14] : memref<1x128xf32, #tpu.memory_space<vmem>>, vector<1x128xf32>
      %23 = vector.broadcast %22 : vector<1x128xf32> to vector<256x128xf32>
      %24 = arith.mulf %21, %23 : vector<256x128xf32>
      %c0_15 = arith.constant 0 : index
      %c0_16 = arith.constant 0 : index
      %25 = vector.load %arg6[%c0_15, %c0_16] : memref<1x128xf32, #tpu.memory_space<vmem>>, vector<1x128xf32>
      %26 = vector.broadcast %25 : vector<1x128xf32> to vector<256x128xf32>
      %27 = arith.addf %24, %26 : vector<256x128xf32>
      %28 = arith.truncf %27 : vector<256x128xf32> to vector<256x128xbf16>
      %c0_17 = arith.constant 0 : index
      %c0_18 = arith.constant 0 : index
      %29 = vector.load %arg11[%c0_17, %c0_18] : memref<256x128xbf16, #tpu.memory_space<vmem>>, vector<256x128xbf16>
      tpu.vector_store %arg11[%c0_17, %c0_18], %28 {strides = array<i32>} : memref<256x128xbf16, #tpu.memory_space<vmem>>, vector<256x128xbf16>,
      %30 = arith.truncf %27 : vector<256x128xf32> to vector<256x128xbf16>
      %c0_19 = arith.constant 0 : index
      %c0_20 = arith.constant 0 : index
      %31 = vector.load %arg4[%c0_19, %c0_20] : memref<128x128xbf16, #tpu.memory_space<vmem>>, vector<128x128xbf16>
      %cst_21 = arith.constant dense<0.000000e+00> : vector<256x128xf32>
      %32 = tpu.matmul %30, %31, %cst_21 {dimension_numbers = #tpu.dot_dimension_numbers<[1], [0], [0], [1], [0, 0, 1, 1], [], []>} : vector<256x128xbf16>, vector<128x128xbf16>, vector<256x128xf32> -> vector<256x128xf32>
      %c0_22 = arith.constant 0 : index
      %c0_23 = arith.constant 0 : index
      %33 = vector.load %arg7[%c0_22, %c0_23] : memref<1x128xf32, #tpu.memory_space<vmem>>, vector<1x128xf32>
      %34 = vector.broadcast %33 : vector<1x128xf32> to vector<256x128xf32>
      %35 = arith.mulf %32, %34 : vector<256x128xf32>
      %c0_24 = arith.constant 0 : index
      %c0_25 = arith.constant 0 : index
      %36 = vector.load %arg8[%c0_24, %c0_25] : memref<1x128xf32, #tpu.memory_space<vmem>>, vector<1x128xf32>
      %37 = vector.broadcast %36 : vector<1x128xf32> to vector<256x128xf32>
      %38 = arith.addf %35, %37 : vector<256x128xf32>
      %cst_26 = arith.constant 0.000000e+00 : f32
      %39 = vector.broadcast %cst_26 : f32 to vector<256x128xf32>
      %40 = arith.cmpf oge, %38, %39 : vector<256x128xf32>
      %c0_27 = arith.constant 0 : index
      %c0_28 = arith.constant 0 : index
      %41 = vector.load %arg10[%c0_27, %c0_28] : memref<1x128xf32, #tpu.memory_space<vmem>>, vector<1x128xf32>
      %42 = vector.broadcast %41 : vector<1x128xf32> to vector<256x128xf32>
      %43 = arith.mulf %42, %38 : vector<256x128xf32>
      %44 = arith.select %40, %38, %43 : vector<256x128xi1>, vector<256x128xf32>
      %45 = arith.truncf %44 : vector<256x128xf32> to vector<256x128xbf16>
      %c0_29 = arith.constant 0 : index
      %c0_30 = arith.constant 0 : index
      %46 = vector.load %arg12[%c0_29, %c0_30] : memref<256x128xbf16, #tpu.memory_space<vmem>>, vector<256x128xbf16>
      tpu.vector_store %arg12[%c0_29, %c0_30], %45 {strides = array<i32>} : memref<256x128xbf16, #tpu.memory_space<vmem>>, vector<256x128xbf16>,
    } else {
    }
    return
  }
  func.func @transform_0(%arg0: i32, %arg1: i32) -> (i32, i32) {
    %c0_i32 = arith.constant 0 : i32
    return %arg0, %arg1 : i32, i32
  }
  func.func @transform_1(%arg0: i32, %arg1: i32) -> (i32, i32) {
    %c0_i32 = arith.constant 0 : i32
    %c0_i32_0 = arith.constant 0 : i32
    %c0_i32_1 = arith.constant 0 : i32
    return %c0_i32, %c0_i32_0 : i32, i32
  }
  func.func @transform_2(%arg0: i32, %arg1: i32) -> (i32, i32) {
    %c0_i32 = arith.constant 0 : i32
    %c0_i32_0 = arith.constant 0 : i32
    %c0_i32_1 = arith.constant 0 : i32
    return %c0_i32, %c0_i32_0 : i32, i32
  }
  func.func @transform_3(%arg0: i32, %arg1: i32) -> (i32, i32) {
    %c0_i32 = arith.constant 0 : i32
    %c0_i32_0 = arith.constant 0 : i32
    %c0_i32_1 = arith.constant 0 : i32
    return %c0_i32, %c0_i32_0 : i32, i32
  }
  func.func @transform_4(%arg0: i32, %arg1: i32) -> (i32, i32) {
    %c0_i32 = arith.constant 0 : i32
    %c0_i32_0 = arith.constant 0 : i32
    %c0_i32_1 = arith.constant 0 : i32
    return %c0_i32, %c0_i32_0 : i32, i32
  }
  func.func @transform_5(%arg0: i32, %arg1: i32) -> (i32, i32) {
    %c0_i32 = arith.constant 0 : i32
    %c0_i32_0 = arith.constant 0 : i32
    %c0_i32_1 = arith.constant 0 : i32
    return %c0_i32, %c0_i32_0 : i32, i32
  }
  func.func @transform_6(%arg0: i32, %arg1: i32) -> (i32, i32) {
    %c0_i32 = arith.constant 0 : i32
    %c0_i32_0 = arith.constant 0 : i32
    %c0_i32_1 = arith.constant 0 : i32
    return %c0_i32, %c0_i32_0 : i32, i32
  }
  func.func @transform_7(%arg0: i32, %arg1: i32) -> (i32, i32) {
    %c0_i32 = arith.constant 0 : i32
    %c0_i32_0 = arith.constant 0 : i32
    %c0_i32_1 = arith.constant 0 : i32
    return %c0_i32, %c0_i32_0 : i32, i32
  }
  func.func @transform_8(%arg0: i32, %arg1: i32) -> (i32, i32) {
    %c0_i32 = arith.constant 0 : i32
    %c0_i32_0 = arith.constant 0 : i32
    %c0_i32_1 = arith.constant 0 : i32
    return %c0_i32, %c0_i32_0 : i32, i32
  }
  func.func @transform_9(%arg0: i32, %arg1: i32) -> (i32, i32) {
    %c0_i32 = arith.constant 0 : i32
    %c0_i32_0 = arith.constant 0 : i32
    return %arg0, %c0_i32 : i32, i32
  }
  func.func @transform_10(%arg0: i32, %arg1: i32) -> (i32, i32) {
    %c0_i32 = arith.constant 0 : i32
    %c0_i32_0 = arith.constant 0 : i32
    return %arg0, %c0_i32 : i32, i32
  }
}

module attributes {stable_mosaic.version = 11 : i64} {
  func.func @_prop_step_kernel(%arg0: i32, %arg1: i32, %arg2: memref<256x256xbf16, #tpu.memory_space<vmem>>, %arg3: memref<512x128xbf16, #tpu.memory_space<vmem>>, %arg4: memref<256x128xbf16, #tpu.memory_space<vmem>>, %arg5: memref<256x128xf32, #tpu.memory_space<vmem>>) attributes {dimension_semantics = [#tpu.dimension_semantics<parallel>, #tpu.dimension_semantics<arbitrary>], iteration_bounds = array<i64: 2, 2>, scalar_prefetch = 0 : i64, scratch_operands = 1 : i64, tpu.core_type = #tpu.core_type<tc>, window_params = [{transform_indices = @transform_0, window_bounds = array<i64: 256, 256>}, {pipeline_mode = #tpu.pipeline_mode<synchronous>, transform_indices = @transform_1, window_bounds = array<i64: 512, 128>}, {transform_indices = @transform_2, window_bounds = array<i64: 256, 128>}]} {
    %c0_i32 = arith.constant 0 : i32
    %0 = arith.cmpi eq, %arg1, %c0_i32 : i32
    %1 = arith.extui %0 : i1 to i32
    %c0_i32_0 = arith.constant 0 : i32
    %2 = arith.cmpi ne, %1, %c0_i32_0 : i32
    scf.if %2 {
      %cst_8 = arith.constant 0.000000e+00 : f32
      %15 = vector.broadcast %cst_8 : f32 to vector<256x128xf32>
      %c0_9 = arith.constant 0 : index
      %c0_10 = arith.constant 0 : index
      %16 = vector.load %arg5[%c0_9, %c0_10] : memref<256x128xf32, #tpu.memory_space<vmem>>, vector<256x128xf32>
      tpu.vector_store %arg5[%c0_9, %c0_10], %15 {strides = array<i32>} : memref<256x128xf32, #tpu.memory_space<vmem>>, vector<256x128xf32>,
    } else {
    }
    %c256_i32 = arith.constant 256 : i32
    %3 = arith.muli %arg1, %c256_i32 : i32
    %4 = tpu.assume_multiple %3, 256 : i32
    %5 = arith.index_cast %4 : i32 to index
    %c0 = arith.constant 0 : index
    %6 = vector.load %arg3[%5, %c0] : memref<512x128xbf16, #tpu.memory_space<vmem>>, vector<256x128xbf16>
    %c0_1 = arith.constant 0 : index
    %c0_2 = arith.constant 0 : index
    %7 = vector.load %arg5[%c0_1, %c0_2] : memref<256x128xf32, #tpu.memory_space<vmem>>, vector<256x128xf32>
    %c0_3 = arith.constant 0 : index
    %c0_4 = arith.constant 0 : index
    %8 = vector.load %arg2[%c0_3, %c0_4] : memref<256x256xbf16, #tpu.memory_space<vmem>>, vector<256x256xbf16>
    %cst = arith.constant dense<0.000000e+00> : vector<256x128xf32>
    %9 = tpu.matmul %8, %6, %cst {dimension_numbers = #tpu.dot_dimension_numbers<[1], [0], [0], [1], [0, 0, 1, 1], [], []>} : vector<256x256xbf16>, vector<256x128xbf16>, vector<256x128xf32> -> vector<256x128xf32>
    %10 = arith.addf %7, %9 : vector<256x128xf32>
    %c0_5 = arith.constant 0 : index
    %c0_6 = arith.constant 0 : index
    %11 = vector.load %arg5[%c0_5, %c0_6] : memref<256x128xf32, #tpu.memory_space<vmem>>, vector<256x128xf32>
    tpu.vector_store %arg5[%c0_5, %c0_6], %10 {strides = array<i32>} : memref<256x128xf32, #tpu.memory_space<vmem>>, vector<256x128xf32>,
    %c1_i32 = arith.constant 1 : i32
    %12 = arith.cmpi eq, %arg1, %c1_i32 : i32
    %13 = arith.extui %12 : i1 to i32
    %c0_i32_7 = arith.constant 0 : i32
    %14 = arith.cmpi ne, %13, %c0_i32_7 : i32
    scf.if %14 {
      %c0_8 = arith.constant 0 : index
      %c0_9 = arith.constant 0 : index
      %15 = vector.load %arg5[%c0_8, %c0_9] : memref<256x128xf32, #tpu.memory_space<vmem>>, vector<256x128xf32>
      %16 = arith.truncf %15 : vector<256x128xf32> to vector<256x128xbf16>
      %c0_10 = arith.constant 0 : index
      %c0_11 = arith.constant 0 : index
      %17 = vector.load %arg4[%c0_10, %c0_11] : memref<256x128xbf16, #tpu.memory_space<vmem>>, vector<256x128xbf16>
      tpu.vector_store %arg4[%c0_10, %c0_11], %16 {strides = array<i32>} : memref<256x128xbf16, #tpu.memory_space<vmem>>, vector<256x128xbf16>,
    } else {
    }
    return
  }
  func.func @transform_0(%arg0: i32, %arg1: i32) -> (i32, i32) {
    %c0_i32 = arith.constant 0 : i32
    return %arg0, %arg1 : i32, i32
  }
  func.func @transform_1(%arg0: i32, %arg1: i32) -> (i32, i32) {
    %c0_i32 = arith.constant 0 : i32
    %c0_i32_0 = arith.constant 0 : i32
    %c0_i32_1 = arith.constant 0 : i32
    return %c0_i32, %c0_i32_0 : i32, i32
  }
  func.func @transform_2(%arg0: i32, %arg1: i32) -> (i32, i32) {
    %c0_i32 = arith.constant 0 : i32
    %c0_i32_0 = arith.constant 0 : i32
    return %arg0, %c0_i32 : i32, i32
  }
}

module attributes {stable_mosaic.version = 11 : i64} {
  func.func @_prop_final_kernel(%arg0: i32, %arg1: i32, %arg2: memref<256x256xbf16, #tpu.memory_space<vmem>>, %arg3: memref<512x128xbf16, #tpu.memory_space<vmem>>, %arg4: memref<128x128xbf16, #tpu.memory_space<vmem>>, %arg5: memref<1x128xf32, #tpu.memory_space<vmem>>, %arg6: memref<1x128xf32, #tpu.memory_space<vmem>>, %arg7: memref<1x128xf32, #tpu.memory_space<vmem>>, %arg8: memref<1x128xf32, #tpu.memory_space<vmem>>, %arg9: memref<1x128xf32, #tpu.memory_space<vmem>>, %arg10: memref<1x128xf32, #tpu.memory_space<vmem>>, %arg11: memref<256x128xbf16, #tpu.memory_space<vmem>>, %arg12: memref<256x128xbf16, #tpu.memory_space<vmem>>, %arg13: memref<256x128xf32, #tpu.memory_space<vmem>>) attributes {dimension_semantics = [#tpu.dimension_semantics<parallel>, #tpu.dimension_semantics<arbitrary>], iteration_bounds = array<i64: 2, 2>, scalar_prefetch = 0 : i64, scratch_operands = 1 : i64, tpu.core_type = #tpu.core_type<tc>, window_params = [{transform_indices = @transform_0, window_bounds = array<i64: 256, 256>}, {pipeline_mode = #tpu.pipeline_mode<synchronous>, transform_indices = @transform_1, window_bounds = array<i64: 512, 128>}, {pipeline_mode = #tpu.pipeline_mode<synchronous>, transform_indices = @transform_2, window_bounds = array<i64: 128, 128>}, {pipeline_mode = #tpu.pipeline_mode<synchronous>, transform_indices = @transform_3, window_bounds = array<i64: 1, 128>}, {pipeline_mode = #tpu.pipeline_mode<synchronous>, transform_indices = @transform_4, window_bounds = array<i64: 1, 128>}, {pipeline_mode = #tpu.pipeline_mode<synchronous>, transform_indices = @transform_5, window_bounds = array<i64: 1, 128>}, {pipeline_mode = #tpu.pipeline_mode<synchronous>, transform_indices = @transform_6, window_bounds = array<i64: 1, 128>}, {pipeline_mode = #tpu.pipeline_mode<synchronous>, transform_indices = @transform_7, window_bounds = array<i64: 1, 128>}, {pipeline_mode = #tpu.pipeline_mode<synchronous>, transform_indices = @transform_8, window_bounds = array<i64: 1, 128>}, {transform_indices = @transform_9, window_bounds = array<i64: 256, 128>}, {transform_indices = @transform_10, window_bounds = array<i64: 256, 128>}]} {
    %c0_i32 = arith.constant 0 : i32
    %0 = arith.cmpi eq, %arg1, %c0_i32 : i32
    %1 = arith.extui %0 : i1 to i32
    %c0_i32_0 = arith.constant 0 : i32
    %2 = arith.cmpi ne, %1, %c0_i32_0 : i32
    scf.if %2 {
      %cst_8 = arith.constant 0.000000e+00 : f32
      %15 = vector.broadcast %cst_8 : f32 to vector<256x128xf32>
      %c0_9 = arith.constant 0 : index
      %c0_10 = arith.constant 0 : index
      %16 = vector.load %arg13[%c0_9, %c0_10] : memref<256x128xf32, #tpu.memory_space<vmem>>, vector<256x128xf32>
      tpu.vector_store %arg13[%c0_9, %c0_10], %15 {strides = array<i32>} : memref<256x128xf32, #tpu.memory_space<vmem>>, vector<256x128xf32>,
    } else {
    }
    %c256_i32 = arith.constant 256 : i32
    %3 = arith.muli %arg1, %c256_i32 : i32
    %4 = tpu.assume_multiple %3, 256 : i32
    %5 = arith.index_cast %4 : i32 to index
    %c0 = arith.constant 0 : index
    %6 = vector.load %arg3[%5, %c0] : memref<512x128xbf16, #tpu.memory_space<vmem>>, vector<256x128xbf16>
    %c0_1 = arith.constant 0 : index
    %c0_2 = arith.constant 0 : index
    %7 = vector.load %arg13[%c0_1, %c0_2] : memref<256x128xf32, #tpu.memory_space<vmem>>, vector<256x128xf32>
    %c0_3 = arith.constant 0 : index
    %c0_4 = arith.constant 0 : index
    %8 = vector.load %arg2[%c0_3, %c0_4] : memref<256x256xbf16, #tpu.memory_space<vmem>>, vector<256x256xbf16>
    %cst = arith.constant dense<0.000000e+00> : vector<256x128xf32>
    %9 = tpu.matmul %8, %6, %cst {dimension_numbers = #tpu.dot_dimension_numbers<[1], [0], [0], [1], [0, 0, 1, 1], [], []>} : vector<256x256xbf16>, vector<256x128xbf16>, vector<256x128xf32> -> vector<256x128xf32>
    %10 = arith.addf %7, %9 : vector<256x128xf32>
    %c0_5 = arith.constant 0 : index
    %c0_6 = arith.constant 0 : index
    %11 = vector.load %arg13[%c0_5, %c0_6] : memref<256x128xf32, #tpu.memory_space<vmem>>, vector<256x128xf32>
    tpu.vector_store %arg13[%c0_5, %c0_6], %10 {strides = array<i32>} : memref<256x128xf32, #tpu.memory_space<vmem>>, vector<256x128xf32>,
    %c1_i32 = arith.constant 1 : i32
    %12 = arith.cmpi eq, %arg1, %c1_i32 : i32
    %13 = arith.extui %12 : i1 to i32
    %c0_i32_7 = arith.constant 0 : i32
    %14 = arith.cmpi ne, %13, %c0_i32_7 : i32
    scf.if %14 {
      %c0_8 = arith.constant 0 : index
      %c0_9 = arith.constant 0 : index
      %15 = vector.load %arg13[%c0_8, %c0_9] : memref<256x128xf32, #tpu.memory_space<vmem>>, vector<256x128xf32>
      %cst_10 = arith.constant 0.000000e+00 : f32
      %16 = vector.broadcast %cst_10 : f32 to vector<256x128xf32>
      %17 = arith.cmpf oge, %15, %16 : vector<256x128xf32>
      %c0_11 = arith.constant 0 : index
      %c0_12 = arith.constant 0 : index
      %18 = vector.load %arg9[%c0_11, %c0_12] : memref<1x128xf32, #tpu.memory_space<vmem>>, vector<1x128xf32>
      %19 = vector.broadcast %18 : vector<1x128xf32> to vector<256x128xf32>
      %20 = arith.mulf %19, %15 : vector<256x128xf32>
      %21 = arith.select %17, %15, %20 : vector<256x128xi1>, vector<256x128xf32>
      %c0_13 = arith.constant 0 : index
      %c0_14 = arith.constant 0 : index
      %22 = vector.load %arg5[%c0_13, %c0_14] : memref<1x128xf32, #tpu.memory_space<vmem>>, vector<1x128xf32>
      %23 = vector.broadcast %22 : vector<1x128xf32> to vector<256x128xf32>
      %24 = arith.mulf %21, %23 : vector<256x128xf32>
      %c0_15 = arith.constant 0 : index
      %c0_16 = arith.constant 0 : index
      %25 = vector.load %arg6[%c0_15, %c0_16] : memref<1x128xf32, #tpu.memory_space<vmem>>, vector<1x128xf32>
      %26 = vector.broadcast %25 : vector<1x128xf32> to vector<256x128xf32>
      %27 = arith.addf %24, %26 : vector<256x128xf32>
      %28 = arith.truncf %27 : vector<256x128xf32> to vector<256x128xbf16>
      %c0_17 = arith.constant 0 : index
      %c0_18 = arith.constant 0 : index
      %29 = vector.load %arg11[%c0_17, %c0_18] : memref<256x128xbf16, #tpu.memory_space<vmem>>, vector<256x128xbf16>
      tpu.vector_store %arg11[%c0_17, %c0_18], %28 {strides = array<i32>} : memref<256x128xbf16, #tpu.memory_space<vmem>>, vector<256x128xbf16>,
      %30 = arith.truncf %27 : vector<256x128xf32> to vector<256x128xbf16>
      %c0_19 = arith.constant 0 : index
      %c0_20 = arith.constant 0 : index
      %31 = vector.load %arg4[%c0_19, %c0_20] : memref<128x128xbf16, #tpu.memory_space<vmem>>, vector<128x128xbf16>
      %cst_21 = arith.constant dense<0.000000e+00> : vector<256x128xf32>
      %32 = tpu.matmul %30, %31, %cst_21 {dimension_numbers = #tpu.dot_dimension_numbers<[1], [0], [0], [1], [0, 0, 1, 1], [], []>} : vector<256x128xbf16>, vector<128x128xbf16>, vector<256x128xf32> -> vector<256x128xf32>
      %c0_22 = arith.constant 0 : index
      %c0_23 = arith.constant 0 : index
      %33 = vector.load %arg7[%c0_22, %c0_23] : memref<1x128xf32, #tpu.memory_space<vmem>>, vector<1x128xf32>
      %34 = vector.broadcast %33 : vector<1x128xf32> to vector<256x128xf32>
      %35 = arith.mulf %32, %34 : vector<256x128xf32>
      %c0_24 = arith.constant 0 : index
      %c0_25 = arith.constant 0 : index
      %36 = vector.load %arg8[%c0_24, %c0_25] : memref<1x128xf32, #tpu.memory_space<vmem>>, vector<1x128xf32>
      %37 = vector.broadcast %36 : vector<1x128xf32> to vector<256x128xf32>
      %38 = arith.addf %35, %37 : vector<256x128xf32>
      %cst_26 = arith.constant 0.000000e+00 : f32
      %39 = vector.broadcast %cst_26 : f32 to vector<256x128xf32>
      %40 = arith.cmpf oge, %38, %39 : vector<256x128xf32>
      %c0_27 = arith.constant 0 : index
      %c0_28 = arith.constant 0 : index
      %41 = vector.load %arg10[%c0_27, %c0_28] : memref<1x128xf32, #tpu.memory_space<vmem>>, vector<1x128xf32>
      %42 = vector.broadcast %41 : vector<1x128xf32> to vector<256x128xf32>
      %43 = arith.mulf %42, %38 : vector<256x128xf32>
      %44 = arith.select %40, %38, %43 : vector<256x128xi1>, vector<256x128xf32>
      %45 = arith.truncf %44 : vector<256x128xf32> to vector<256x128xbf16>
      %c0_29 = arith.constant 0 : index
      %c0_30 = arith.constant 0 : index
      %46 = vector.load %arg12[%c0_29, %c0_30] : memref<256x128xbf16, #tpu.memory_space<vmem>>, vector<256x128xbf16>
      tpu.vector_store %arg12[%c0_29, %c0_30], %45 {strides = array<i32>} : memref<256x128xbf16, #tpu.memory_space<vmem>>, vector<256x128xbf16>,
    } else {
    }
    return
  }
  func.func @transform_0(%arg0: i32, %arg1: i32) -> (i32, i32) {
    %c0_i32 = arith.constant 0 : i32
    return %arg0, %arg1 : i32, i32
  }
  func.func @transform_1(%arg0: i32, %arg1: i32) -> (i32, i32) {
    %c0_i32 = arith.constant 0 : i32
    %c0_i32_0 = arith.constant 0 : i32
    %c0_i32_1 = arith.constant 0 : i32
    return %c0_i32, %c0_i32_0 : i32, i32
  }
  func.func @transform_2(%arg0: i32, %arg1: i32) -> (i32, i32) {
    %c0_i32 = arith.constant 0 : i32
    %c0_i32_0 = arith.constant 0 : i32
    %c0_i32_1 = arith.constant 0 : i32
    return %c0_i32, %c0_i32_0 : i32, i32
  }
  func.func @transform_3(%arg0: i32, %arg1: i32) -> (i32, i32) {
    %c0_i32 = arith.constant 0 : i32
    %c0_i32_0 = arith.constant 0 : i32
    %c0_i32_1 = arith.constant 0 : i32
    return %c0_i32, %c0_i32_0 : i32, i32
  }
  func.func @transform_4(%arg0: i32, %arg1: i32) -> (i32, i32) {
    %c0_i32 = arith.constant 0 : i32
    %c0_i32_0 = arith.constant 0 : i32
    %c0_i32_1 = arith.constant 0 : i32
    return %c0_i32, %c0_i32_0 : i32, i32
  }
  func.func @transform_5(%arg0: i32, %arg1: i32) -> (i32, i32) {
    %c0_i32 = arith.constant 0 : i32
    %c0_i32_0 = arith.constant 0 : i32
    %c0_i32_1 = arith.constant 0 : i32
    return %c0_i32, %c0_i32_0 : i32, i32
  }
  func.func @transform_6(%arg0: i32, %arg1: i32) -> (i32, i32) {
    %c0_i32 = arith.constant 0 : i32
    %c0_i32_0 = arith.constant 0 : i32
    %c0_i32_1 = arith.constant 0 : i32
    return %c0_i32, %c0_i32_0 : i32, i32
  }
  func.func @transform_7(%arg0: i32, %arg1: i32) -> (i32, i32) {
    %c0_i32 = arith.constant 0 : i32
    %c0_i32_0 = arith.constant 0 : i32
    %c0_i32_1 = arith.constant 0 : i32
    return %c0_i32, %c0_i32_0 : i32, i32
  }
  func.func @transform_8(%arg0: i32, %arg1: i32) -> (i32, i32) {
    %c0_i32 = arith.constant 0 : i32
    %c0_i32_0 = arith.constant 0 : i32
    %c0_i32_1 = arith.constant 0 : i32
    return %c0_i32, %c0_i32_0 : i32, i32
  }
  func.func @transform_9(%arg0: i32, %arg1: i32) -> (i32, i32) {
    %c0_i32 = arith.constant 0 : i32
    %c0_i32_0 = arith.constant 0 : i32
    return %arg0, %c0_i32 : i32, i32
  }
  func.func @transform_10(%arg0: i32, %arg1: i32) -> (i32, i32) {
    %c0_i32 = arith.constant 0 : i32
    %c0_i32_0 = arith.constant 0 : i32
    return %arg0, %c0_i32 : i32, i32
  }
}

</mosaic_0001>

<bundles_post_ra>
// kernel: gconv2_forward.2
= control target key start
LH: loop header
LB: loop body
LE: loop exit
PB: predicated region body
PF: predicated region fallthrough
CT: control target
= control target key end

     0   :  { %s1638_s9 = smov 0   ;;  %s1640_s10 = smov 0   ;;  %s1902_s0 = inlined_call_operand.vmem [shape: bf16[512,512], index: 0, kind: input, shape index: {}]   ;;  %s1903_s1 = inlined_call_operand.vmem [shape: bf16[512,128], index: 1, kind: input, shape index: {}]   ;;  %s1904_s2 = inlined_call_operand.vmem [shape: bf16[512,128], index: 2, kind: output, shape index: {}]  }
   0x1   :  { %s1642_s11 = smov 0   ;;  %s1644_s12 = smov 0  }
   0x2   :  { %s1646_s13 = smov 0   ;;  %s1648_s14 = smov 0  }
   0x3   :  { %s1650_s15 = smov 0  }
   0x4 LB: > { %s21_s16 = sadd.s32 1, %s1612_s13  ;;  %s24_s17 = sadd.s32 1, %s1616_s14  ;;  %s1620_s15 = sphi %s1650_s15, %s12_s15   ;;  %s1616_s14 = sphi %s1648_s14, %s1910_s14   ;;  %s1612_s13 = sphi %s1646_s13, %s1909_s13   ;;  %s1608_s12 = sphi %s1644_s12, %s1908_s12   ;;  %s1604_s11 = sphi %s1642_s11, %s1907_s11   ;;  %s1600_s10 = sphi %s1640_s10, %s1906_s10   ;;  %s1596_s9 = sphi %s1638_s9, %s1905_s9  }
   0x5   : > { %p22_p0 = scmp.ge.s32.totalorder %s21_s16, 2  ;;  %p40_p1 = scmp.ne.s32.totalorder %s1600_s10, %s1596_s9 }
   0x6   : > { %p41_p2 = scmp.eq.s32.totalorder %s1620_s15, 0  ;;  %s33_s21 = sadd.s32 1, %s1600_s10 }
   0x7   : > { %s1912_s16 = smov (%p22_p0, %s21_s16), 0  ;;  %s1914_s17 = smov (!%p22_p0, %s24_s17), %s1616_s14 }
   0x8   : > { %p42_p3 = por %p41_p2, %p40_p1  ;;  %p26_p4 = scmp.ge.s32.totalorder %s1914_s17, 2 }
   0x9   : > { %s29_s18 = ssub.s32 %s1612_s13, %s1912_s16  ;;  %p1141_p6 = scmp.ge.s32.totalorder %s1620_s15, 4 }
   0xa   : > { %s1916_s17 = smov (%p26_p4, %s1914_s17), 0 }
   0xb   : > { %s28_s19 = ssub.s32 %s1616_s14, %s1916_s17  ;;  %116 = sbr.rel (%p1141_p6) target bundleno = 55 (0x37), region = 20 }
   0xc   : > { %s30_s20 = sor.u32 %s29_s18, %s28_s19 }
   0xd   : > { %p31_p5 = scmp.eq.s32.totalorder %s30_s20, 0 }
   0xf   : > { %s1689_s22 = scalar_select %p31_p5, %s1600_s10, %s33_s21  }
  0x10   : > { %119 = sbr.rel (!%p42_p3) target bundleno = 55 (0x37), region = 24  ;;  %s121_s23 = sand.u32 (%p42_p3), 1, %s1600_s10  }
  0x11   : > { %s1144_s24 = sshll.u32 (%p42_p3), %s1612_s13, 1  ;;  %s1142_s25 = sshll.u32 (%p42_p3), %s121_s23, 8 }
  0x12   : > { %s1349_s26 = sshll.u32 (%p42_p3), %s1616_s14, 7  ;;  %s1703_s4 = scalar_lea.vmem (%p42_p3), [#allocation3], %s1142_s25 }
  0x13   : > { %s127_s27 = sadd.s32 (%p42_p3), %s1349_s26, %s1144_s24 }
  0x14   : > { %s1146_s28 = sshll.u32 (%p42_p3), %s127_s27, 2 }
  0x15   : > { %s1698_s3 = scalar_lea.vmem %s1902_s0, %s1146_s28 }
  0x16   : > { %v220_v0 = vld [vmem:[%s1698_s3] sm:$0xff]  ;;  %v222_v1 = vld [vmem:[%s1698_s3 + $0x10] sm:$0xff] }
  0x17   : > { %v224_v2 = vld [vmem:[%s1698_s3 + $0x20] sm:$0xff]  ;;  %221 = vst [vmem:[%s1703_s4] sm:$0xff] %v220_v0  ;;  %v226_v3 = vld [vmem:[%s1698_s3 + $0x30] sm:$0xff] }
  0x18   : > { %223 = vst [vmem:[%s1703_s4 + $0x8] sm:$0xff] %v222_v1  ;;  %v228_v4 = vld [vmem:[%s1698_s3 + $0x40] sm:$0xff]  ;;  %v230_v5 = vld [vmem:[%s1698_s3 + $0x50] sm:$0xff] }
  0x19   : > { %225 = vst [vmem:[%s1703_s4 + $0x10] sm:$0xff] %v224_v2  ;;  %v232_v6 = vld [vmem:[%s1698_s3 + $0x60] sm:$0xff]  ;;  %v234_v7 = vld [vmem:[%s1698_s3 + $0x70] sm:$0xff] }
  0x1a   : > { %227 = vst [vmem:[%s1703_s4 + $0x18] sm:$0xff] %v226_v3  ;;  %v236_v8 = vld [vmem:[%s1698_s3 + $0x80] sm:$0xff]  ;;  %v238_v9 = vld [vmem:[%s1698_s3 + $0x90] sm:$0xff] }
  0x1b   : > { %229 = vst [vmem:[%s1703_s4 + $0x20] sm:$0xff] %v228_v4  ;;  %v240_v10 = vld [vmem:[%s1698_s3 + $0xa0] sm:$0xff]  ;;  %v242_v11 = vld [vmem:[%s1698_s3 + $0xb0] sm:$0xff] }
  0x1c   : > { %231 = vst [vmem:[%s1703_s4 + $0x28] sm:$0xff] %v230_v5  ;;  %v244_v12 = vld [vmem:[%s1698_s3 + $0xc0] sm:$0xff]  ;;  %v246_v13 = vld [vmem:[%s1698_s3 + $0xd0] sm:$0xff] }
  0x1d   : > { %233 = vst [vmem:[%s1703_s4 + $0x30] sm:$0xff] %v232_v6  ;;  %v248_v14 = vld [vmem:[%s1698_s3 + $0xe0] sm:$0xff]  ;;  %v250_v15 = vld [vmem:[%s1698_s3 + $0xf0] sm:$0xff] }
  0x1e   : > { %235 = vst [vmem:[%s1703_s4 + $0x38] sm:$0xff] %v234_v7  ;;  %v252_v16 = vld [vmem:[%s1698_s3 + $0x100] sm:$0xff]  ;;  %v254_v17 = vld [vmem:[%s1698_s3 + $0x110] sm:$0xff] }
  0x1f   : > { %237 = vst [vmem:[%s1703_s4 + $0x40] sm:$0xff] %v236_v8  ;;  %v256_v18 = vld [vmem:[%s1698_s3 + $0x120] sm:$0xff]  ;;  %v258_v19 = vld [vmem:[%s1698_s3 + $0x130] sm:$0xff] }
  0x20   : > { %239 = vst [vmem:[%s1703_s4 + $0x48] sm:$0xff] %v238_v9  ;;  %v260_v20 = vld [vmem:[%s1698_s3 + $0x140] sm:$0xff]  ;;  %v262_v21 = vld [vmem:[%s1698_s3 + $0x150] sm:$0xff] }
  0x21   : > { %241 = vst [vmem:[%s1703_s4 + $0x50] sm:$0xff] %v240_v10  ;;  %v264_v22 = vld [vmem:[%s1698_s3 + $0x160] sm:$0xff]  ;;  %v266_v23 = vld [vmem:[%s1698_s3 + $0x170] sm:$0xff] }
  0x22   : > { %243 = vst [vmem:[%s1703_s4 + $0x58] sm:$0xff] %v242_v11  ;;  %v268_v24 = vld [vmem:[%s1698_s3 + $0x180] sm:$0xff]  ;;  %v270_v25 = vld [vmem:[%s1698_s3 + $0x190] sm:$0xff] }
  0x23   : > { %245 = vst [vmem:[%s1703_s4 + $0x60] sm:$0xff] %v244_v12  ;;  %v272_v26 = vld [vmem:[%s1698_s3 + $0x1a0] sm:$0xff]  ;;  %v274_v27 = vld [vmem:[%s1698_s3 + $0x1b0] sm:$0xff] }
  0x24   : > { %247 = vst [vmem:[%s1703_s4 + $0x68] sm:$0xff] %v246_v13  ;;  %v276_v28 = vld [vmem:[%s1698_s3 + $0x1c0] sm:$0xff]  ;;  %v278_v29 = vld [vmem:[%s1698_s3 + $0x1d0] sm:$0xff] }
  0x25   : > { %249 = vst [vmem:[%s1703_s4 + $0x70] sm:$0xff] %v248_v14  ;;  %v280_v30 = vld [vmem:[%s1698_s3 + $0x1e0] sm:$0xff]  ;;  %v282_v31 = vld [vmem:[%s1698_s3 + $0x1f0] sm:$0xff] }
  0x26   : > { %251 = vst [vmem:[%s1703_s4 + $0x78] sm:$0xff] %v250_v15 }
  0x27   : > { %253 = vst [vmem:[%s1703_s4 + $0x80] sm:$0xff] %v252_v16 }
  0x28   : > { %255 = vst [vmem:[%s1703_s4 + $0x88] sm:$0xff] %v254_v17 }
  0x29   : > { %257 = vst [vmem:[%s1703_s4 + $0x90] sm:$0xff] %v256_v18 }
  0x2a   : > { %259 = vst [vmem:[%s1703_s4 + $0x98] sm:$0xff] %v258_v19 }
  0x2b   : > { %261 = vst [vmem:[%s1703_s4 + $0xa0] sm:$0xff] %v260_v20 }
  0x2c   : > { %263 = vst [vmem:[%s1703_s4 + $0xa8] sm:$0xff] %v262_v21 }
  0x2d   : > { %265 = vst [vmem:[%s1703_s4 + $0xb0] sm:$0xff] %v264_v22 }
  0x2e   : > { %267 = vst [vmem:[%s1703_s4 + $0xb8] sm:$0xff] %v266_v23 }
  0x2f   : > { %269 = vst [vmem:[%s1703_s4 + $0xc0] sm:$0xff] %v268_v24 }
  0x30   : > { %271 = vst [vmem:[%s1703_s4 + $0xc8] sm:$0xff] %v270_v25 }
  0x31   : > { %273 = vst [vmem:[%s1703_s4 + $0xd0] sm:$0xff] %v272_v26 }
  0x32   : > { %275 = vst [vmem:[%s1703_s4 + $0xd8] sm:$0xff] %v274_v27 }
  0x33   : > { %277 = vst [vmem:[%s1703_s4 + $0xe0] sm:$0xff] %v276_v28 }
  0x34   : > { %279 = vst [vmem:[%s1703_s4 + $0xe8] sm:$0xff] %v278_v29 }
  0x35   : > { %281 = vst [vmem:[%s1703_s4 + $0xf0] sm:$0xff] %v280_v30 }
  0x36   : > { %283 = vst [vmem:[%s1703_s4 + $0xf8] sm:$0xff] %v282_v31 }
  0x37 PF: > { %p1147_p7 = scmp.ge.s32.totalorder %s1620_s15, 1  ;;  %p288_p8 = scmp.lt.s32.totalorder %s1620_s15, 5 }
  0x39   : > { %p289_p9 = pnand %p1147_p7, %p288_p8 }
  0x3a   : > { %s295_s5 = sand.u32 (!%p289_p9), 1, %s1596_s9   ;;  %s1149_s6 = sshll.u32 (!%p289_p9), %s1608_s12, 5 }
  0x3b   : > { %292 = sbr.rel (%p289_p9) target bundleno = 415 (0x19f), region = 62  ;;  %s1148_s7 = sshll.u32 (!%p289_p9), %s295_s5, 8 }
  0x3c   : > { %p319_p10 = scmp.lt.s32.totalorder (!%p289_p9), %s1149_s6, 63  ;;  %s1775_s21 = scalar_lea.vmem (!%p289_p9), [#allocation3], %s1148_s7 }
  0x3d   : > { %p1151_p11 = scmp.ne.s32.totalorder (!%p289_p9), %s1604_s11, 0 }
  0x40   : > { %s1918_s6 = smov (!%p319_p10, %s1149_s6), 63  ;;  %327 = sbr.rel (%p1151_p11) target bundleno = 102 (0x66), region = 70 }
  0x41   : > { %s1150_s8 = sshll.u32 %s1918_s6, 2 }
  0x42   : > { %s1773_s20 = scalar_lea.vmem %s1904_s2, %s1150_s8 }
  0x45   : > { %v1622_v32 = vmov 0.0  }
  0x46   : > { %328 = vst [vmem:[#allocation2 + $0xb0] sm:$0xff] %v1622_v32 }
  0x47   : > { %329 = vst [vmem:[#allocation2] sm:$0xff] %v1622_v32 }
  0x48   : > { %330 = vst [vmem:[#allocation2 + $0xd8] sm:$0xff] %v1622_v32 }
  0x49   : > { %331 = vst [vmem:[#allocation2 + $0x18] sm:$0xff] %v1622_v32 }
  0x4a   : > { %332 = vst [vmem:[#allocation2 + $0x50] sm:$0xff] %v1622_v32 }
  0x4b   : > { %333 = vst [vmem:[#allocation2 + $0x68] sm:$0xff] %v1622_v32 }
  0x4c   : > { %334 = vst [vmem:[#allocation2 + $0x30] sm:$0xff] %v1622_v32 }
  0x4d   : > { %335 = vst [vmem:[#allocation2 + $0x48] sm:$0xff] %v1622_v32 }
  0x4e   : > { %336 = vst [vmem:[#allocation2 + $0x80] sm:$0xff] %v1622_v32 }
  0x4f   : > { %337 = vst [vmem:[#allocation2 + $0x88] sm:$0xff] %v1622_v32 }
  0x50   : > { %338 = vst [vmem:[#allocation2 + $0xe8] sm:$0xff] %v1622_v32 }
  0x51   : > { %339 = vst [vmem:[#allocation2 + $0xb8] sm:$0xff] %v1622_v32 }
  0x52   : > { %340 = vst [vmem:[#allocation2 + $0x60] sm:$0xff] %v1622_v32 }
  0x53   : > { %341 = vst [vmem:[#allocation2 + $0xf0] sm:$0xff] %v1622_v32 }
  0x54   : > { %342 = vst [vmem:[#allocation2 + $0x8] sm:$0xff] %v1622_v32 }
  0x55   : > { %343 = vst [vmem:[#allocation2 + $0x78] sm:$0xff] %v1622_v32 }
  0x56   : > { %344 = vst [vmem:[#allocation2 + $0x38] sm:$0xff] %v1622_v32 }
  0x57   : > { %345 = vst [vmem:[#allocation2 + $0x58] sm:$0xff] %v1622_v32 }
  0x58   : > { %346 = vst [vmem:[#allocation2 + $0x40] sm:$0xff] %v1622_v32 }
  0x59   : > { %347 = vst [vmem:[#allocation2 + $0xc8] sm:$0xff] %v1622_v32 }
  0x5a   : > { %348 = vst [vmem:[#allocation2 + $0xe0] sm:$0xff] %v1622_v32 }
  0x5b   : > { %349 = vst [vmem:[#allocation2 + $0x90] sm:$0xff] %v1622_v32 }
  0x5c   : > { %350 = vst [vmem:[#allocation2 + $0x70] sm:$0xff] %v1622_v32 }
  0x5d   : > { %351 = vst [vmem:[#allocation2 + $0xc0] sm:$0xff] %v1622_v32 }
  0x5e   : > { %352 = vst [vmem:[#allocation2 + $0xa8] sm:$0xff] %v1622_v32 }
  0x5f   : > { %353 = vst [vmem:[#allocation2 + $0xd0] sm:$0xff] %v1622_v32 }
  0x60   : > { %354 = vst [vmem:[#allocation2 + $0x10] sm:$0xff] %v1622_v32 }
  0x61   : > { %355 = vst [vmem:[#allocation2 + $0x28] sm:$0xff] %v1622_v32 }
  0x62   : > { %356 = vst [vmem:[#allocation2 + $0xa0] sm:$0xff] %v1622_v32 }
  0x63   : > { %357 = vst [vmem:[#allocation2 + $0xf8] sm:$0xff] %v1622_v32 }
  0x64   : > { %358 = vst [vmem:[#allocation2 + $0x20] sm:$0xff] %v1622_v32 }
  0x65   : > { %359 = vst [vmem:[#allocation2 + $0x98] sm:$0xff] %v1622_v32 }
  0x66 PF: > { %s1152_s9 = sshll.u32 %s1604_s11, 8  ;;  %v1156_v47 = vld [vmem:[%s1775_s21] sm:$0xf]  ;;  %v1367_v49 = vld [vmem:[%s1775_s21 + $0x4] sm:$0xf0]  ;;  %p1346_p12 = scmp.ne.s32.totalorder %s1604_s11, 1 }
  0x67   : > { %s361_s12 = sshra.s32 %s1152_s9, 3  ;;  %v1220_v50 = vld [vmem:[%s1775_s21 + $0x80] sm:$0xf]  ;;  %v1383_v52 = vld [vmem:[%s1775_s21 + $0x84] sm:$0xf0]  ;;  %v1157_v57 = vor.u32 %v1367_v49, %v1156_v47 }
  0x68   : > { %s1153_s23 = sshll.u32 %s361_s12, 2  ;;  %v1366_v53 = vld [vmem:[%s1775_s21 + $0x4] sm:$0xf]  ;;  %v1158_v54 = vld [vmem:[%s1775_s21 + $0x8] sm:$0xf0]  ;;  %v1221_v58 = vor.u32 %v1383_v52, %v1220_v50 }
  0x69   : > { %s1782_s26 = scalar_lea.vmem %s1903_s1, %s1153_s23  ;;  %v1382_v55 = vld [vmem:[%s1775_s21 + $0x84] sm:$0xf]  ;;  %v1222_v56 = vld [vmem:[%s1775_s21 + $0x88] sm:$0xf0]  ;;  %v1161_v59 = vor.u32 %v1366_v53, %v1158_v54  ;;  %v1164_v61 = vld [vmem:[%s1775_s21 + $0x10] sm:$0xf] }
  0x6a   : > { %v1357_v33 = vld [vmem:[%s1782_s26 + $0x38] sm:$0xff]  ;;  %v1356_v35 = vld [vmem:[%s1782_s26 + $0x30] sm:$0xff]  ;;  %v1355_v37 = vld [vmem:[%s1782_s26 + $0x28] sm:$0xff]  ;;  %v1225_v60 = vor.u32 %v1382_v55, %v1222_v56 }
  0x6b   : > { %v1365_v34 = vld [vmem:[%s1782_s26 + $0x78] sm:$0xff]  ;;  %717 = vmatpush.bf16.msra.mxu0 %v1357_v33  ;;  %1493 = vmatpush.bf16.msra.mxu2 %v1357_v33  ;;  %v1364_v36 = vld [vmem:[%s1782_s26 + $0x70] sm:$0xff]  ;;  %v1363_v38 = vld [vmem:[%s1782_s26 + $0x68] sm:$0xff] }
  0x6c   : > { %806 = vmatpush.bf16.msra.mxu1 %v1365_v34  ;;  %1501 = vmatpush.bf16.msra.mxu3 %v1365_v34  ;;  %v1354_v39 = vld [vmem:[%s1782_s26 + $0x20] sm:$0xff]  ;;  %v1353_v41 = vld [vmem:[%s1782_s26 + $0x18] sm:$0xff]  ;;  %v1352_v43 = vld [vmem:[%s1782_s26 + $0x10] sm:$0xff] }
  0x6d   : > { %v1362_v40 = vld [vmem:[%s1782_s26 + $0x60] sm:$0xff]  ;;  %v1361_v42 = vld [vmem:[%s1782_s26 + $0x58] sm:$0xff]  ;;  %v1360_v44 = vld [vmem:[%s1782_s26 + $0x50] sm:$0xff] }
  0x6e   : > { %v1351_v45 = vld [vmem:[%s1782_s26 + $0x8] sm:$0xff]  ;;  %v1350_v48 = vld [vmem:[%s1782_s26] sm:$0xff]  ;;  %v1369_v62 = vld [vmem:[%s1775_s21 + $0x14] sm:$0xf0] }
  0x6f   : > { %718 = vmatpush.bf16.msra.mxu0 %v1356_v35  ;;  %1494 = vmatpush.bf16.msra.mxu2 %v1356_v35  ;;  %v1359_v46 = vld [vmem:[%s1782_s26 + $0x48] sm:$0xff]  ;;  %v1358_v51 = vld [vmem:[%s1782_s26 + $0x40] sm:$0xff]  ;;  %v1228_v63 = vld [vmem:[%s1775_s21 + $0x90] sm:$0xf]  ;;  %v1165_v5 = vor.u32 %v1369_v62, %v1164_v61 }
  0x70   : > { %807 = vmatpush.bf16.msra.mxu1 %v1364_v36  ;;  %1502 = vmatpush.bf16.msra.mxu3 %v1364_v36  ;;  %v1385_v0 = vld [vmem:[%s1775_s21 + $0x94] sm:$0xf0]  ;;  %v1368_v1 = vld [vmem:[%s1775_s21 + $0x14] sm:$0xf]  ;;  %v1166_v2 = vld [vmem:[%s1775_s21 + $0x18] sm:$0xf0] }
  0x71   : > { %v1384_v3 = vld [vmem:[%s1775_s21 + $0x94] sm:$0xf]  ;;  %v1230_v4 = vld [vmem:[%s1775_s21 + $0x98] sm:$0xf0]  ;;  %v1229_v6 = vor.u32 %v1385_v0, %v1228_v63  ;;  %v1169_v7 = vor.u32 %v1368_v1, %v1166_v2  ;;  %v1172_v9 = vld [vmem:[%s1775_s21 + $0x20] sm:$0xf] }
  0x72   : > { %v1233_v8 = vor.u32 %v1384_v3, %v1230_v4  ;;  %v1371_v10 = vld [vmem:[%s1775_s21 + $0x24] sm:$0xf0]  ;;  %v1236_v11 = vld [vmem:[%s1775_s21 + $0xa0] sm:$0xf]  ;;  %v1370_v13 = vld [vmem:[%s1775_s21 + $0x24] sm:$0xf] }
  0x73   : > { %719 = vmatpush.bf16.msra.mxu0 %v1355_v37  ;;  %1495 = vmatpush.bf16.msra.mxu2 %v1355_v37  ;;  %v1387_v12 = vld [vmem:[%s1775_s21 + $0xa4] sm:$0xf0]  ;;  %v1174_v14 = vld [vmem:[%s1775_s21 + $0x28] sm:$0xf0]  ;;  %v1386_v15 = vld [vmem:[%s1775_s21 + $0xa4] sm:$0xf]  ;;  %v1173_v17 = vor.u32 %v1371_v10, %v1172_v9 }
  0x74   : > { %808 = vmatpush.bf16.msra.mxu1 %v1363_v38  ;;  %1503 = vmatpush.bf16.msra.mxu3 %v1363_v38  ;;  %v1238_v16 = vld [vmem:[%s1775_s21 + $0xa8] sm:$0xf0]  ;;  %v1237_v18 = vor.u32 %v1387_v12, %v1236_v11  ;;  %v1177_v19 = vor.u32 %v1370_v13, %v1174_v14  ;;  %v1180_v21 = vld [vmem:[%s1775_s21 + $0x30] sm:$0xf]  ;;  %v1373_v22 = vld [vmem:[%s1775_s21 + $0x34] sm:$0xf0] }
  0x75   : > { %v1241_v20 = vor.u32 %v1386_v15, %v1238_v16  ;;  %v1244_v23 = vld [vmem:[%s1775_s21 + $0xb0] sm:$0xf]  ;;  %v1389_v24 = vld [vmem:[%s1775_s21 + $0xb4] sm:$0xf0]  ;;  %v1372_v25 = vld [vmem:[%s1775_s21 + $0x34] sm:$0xf]  ;;  %v1181_v29 = vor.u32 %v1373_v22, %v1180_v21 }
  0x76   : > { %v1182_v26 = vld [vmem:[%s1775_s21 + $0x38] sm:$0xf0]  ;;  %v1388_v27 = vld [vmem:[%s1775_s21 + $0xb4] sm:$0xf]  ;;  %v1245_v30 = vor.u32 %v1389_v24, %v1244_v23  ;;  %v1188_v33 = vld [vmem:[%s1775_s21 + $0x40] sm:$0xf] }
  0x77   : > { %720 = vmatpush.bf16.msra.mxu0 %v1354_v39  ;;  %1496 = vmatpush.bf16.msra.mxu2 %v1354_v39  ;;  %v1246_v28 = vld [vmem:[%s1775_s21 + $0xb8] sm:$0xf0]  ;;  %v1185_v31 = vor.u32 %v1372_v25, %v1182_v26  ;;  %v1375_v34 = vld [vmem:[%s1775_s21 + $0x44] sm:$0xf0]  ;;  %v1252_v35 = vld [vmem:[%s1775_s21 + $0xc0] sm:$0xf] }
  0x78   : > { %809 = vmatpush.bf16.msra.mxu1 %v1362_v40  ;;  %1504 = vmatpush.bf16.msra.mxu3 %v1362_v40  ;;  %v1249_v32 = vor.u32 %v1388_v27, %v1246_v28  ;;  %v1391_v36 = vld [vmem:[%s1775_s21 + $0xc4] sm:$0xf0]  ;;  %v1374_v37 = vld [vmem:[%s1775_s21 + $0x44] sm:$0xf]  ;;  %v1190_v38 = vld [vmem:[%s1775_s21 + $0x48] sm:$0xf0] }
  0x79   : > { %v1390_v39 = vld [vmem:[%s1775_s21 + $0xc4] sm:$0xf]  ;;  %v1254_v40 = vld [vmem:[%s1775_s21 + $0xc8] sm:$0xf0]  ;;  %v1260_v47 = vld [vmem:[%s1775_s21 + $0xd0] sm:$0xf] }
  0x7a   : > { %v1376_v49 = vld [vmem:[%s1775_s21 + $0x54] sm:$0xf]  ;;  %v1198_v50 = vld [vmem:[%s1775_s21 + $0x58] sm:$0xf0]  ;;  %v1378_v61 = vld [vmem:[%s1775_s21 + $0x64] sm:$0xf] }
  0x7b   : > { %721 = vmatpush.bf16.msra.mxu0 %v1353_v41  ;;  %1497 = vmatpush.bf16.msra.mxu2 %v1353_v41  ;;  %v1189_v41 = vor.u32 %v1375_v34, %v1188_v33  ;;  %v1262_v52 = vld [vmem:[%s1775_s21 + $0xd8] sm:$0xf0]  ;;  %v1201_v55 = vor.u32 %v1376_v49, %v1198_v50  ;;  %v1206_v62 = vld [vmem:[%s1775_s21 + $0x68] sm:$0xf0]  ;;  %v1394_v63 = vld [vmem:[%s1775_s21 + $0xe4] sm:$0xf] }
  0x7c   : > { %810 = vmatpush.bf16.msra.mxu1 %v1361_v42  ;;  %1505 = vmatpush.bf16.msra.mxu3 %v1361_v42  ;;  %v1253_v42 = vor.u32 %v1391_v36, %v1252_v35  ;;  %v1270_v0 = vld [vmem:[%s1775_s21 + $0xe8] sm:$0xf0]  ;;  %v1209_v3 = vor.u32 %v1378_v61, %v1206_v62  ;;  %v1380_v9 = vld [vmem:[%s1775_s21 + $0x74] sm:$0xf]  ;;  %v1214_v10 = vld [vmem:[%s1775_s21 + $0x78] sm:$0xf0] }
  0x7d   : > { %v1273_v4 = vor.u32 %v1394_v63, %v1270_v0  ;;  %v1396_v11 = vld [vmem:[%s1775_s21 + $0xf4] sm:$0xf]  ;;  %v1278_v12 = vld [vmem:[%s1775_s21 + $0xf8] sm:$0xf0]  ;;  %v1217_v15 = vor.u32 %v1380_v9, %v1214_v10  ;;  %v398_v27 = vld [vmem:[#allocation2] sm:$0xff] }
  0x7e   : > { %v1281_v16 = vor.u32 %v1396_v11, %v1278_v12  ;;  %v413_v23 = vld [vmem:[#allocation2 + $0x38] sm:$0xff]  ;;  %v417_v63 = vld [vmem:[#allocation2 + $0xe0] sm:$0xff]  ;;  %v418_v9 = vld [vmem:[#allocation2 + $0x90] sm:$0xff] }
  0x7f   : > { %722 = vmatpush.bf16.msra.mxu0 %v1352_v43  ;;  %1498 = vmatpush.bf16.msra.mxu2 %v1352_v43  ;;  %v1193_v43 = vor.u32 %v1374_v37, %v1190_v38  ;;  %v414_v33 = vld [vmem:[#allocation2 + $0x58] sm:$0xff] }
  0x80   : > { %811 = vmatpush.bf16.msra.mxu1 %v1360_v44  ;;  %1506 = vmatpush.bf16.msra.mxu3 %v1360_v44  ;;  %v1257_v44 = vor.u32 %v1390_v39, %v1254_v40  ;;  %v399_v37 = vld [vmem:[#allocation2 + $0xd8] sm:$0xff] }
  0x83   : > { %723 = vmatpush.bf16.msra.mxu0 %v1351_v45  ;;  %1499 = vmatpush.bf16.msra.mxu2 %v1351_v45  ;;  %v1196_v45 = vld [vmem:[%s1775_s21 + $0x50] sm:$0xf] }
  0x84   : > { %812 = vmatpush.bf16.msra.mxu1 %v1359_v46  ;;  %1507 = vmatpush.bf16.msra.mxu3 %v1359_v46  ;;  %v1377_v46 = vld [vmem:[%s1775_s21 + $0x54] sm:$0xf0] }
  0x85   : > { %v1197_v53 = vor.u32 %v1377_v46, %v1196_v45 }
  0x87   : > { %724 = vmatpush.bf16.msra.mxu0 %v1350_v48  ;;  %1500 = vmatpush.bf16.msra.mxu2 %v1350_v48  ;;  %v1393_v48 = vld [vmem:[%s1775_s21 + $0xd4] sm:$0xf0] }
  0x88   : > { %813 = vmatpush.bf16.msra.mxu1 %v1358_v51  ;;  %1508 = vmatpush.bf16.msra.mxu3 %v1358_v51  ;;  %v1392_v51 = vld [vmem:[%s1775_s21 + $0xd4] sm:$0xf]  ;;  %v1261_v54 = vor.u32 %v1393_v48, %v1260_v47  ;;  %v400_v47 = vld [vmem:[#allocation2 + $0x18] sm:$0xff] }
  0x89   : > { %v1265_v56 = vor.u32 %v1392_v51, %v1262_v52 }
  0x8a   : > { %725 = vmatmul.bf16.vlgmr.msra.gmra.mxu0 %v1157_v57  ;;  %765 = vmatmul.bf16.vlgmr.msra.gmra.mxu2 %v1221_v58  ;;  %v1204_v57 = vld [vmem:[%s1775_s21 + $0x60] sm:$0xf]  ;;  %v1379_v58 = vld [vmem:[%s1775_s21 + $0x64] sm:$0xf0] }
  0x8b   : > { %814 = vmatmul.bf16.vlgmr.msra.gmra.mxu1 %v1161_v59  ;;  %854 = vmatmul.bf16.vlgmr.msra.gmra.mxu3 %v1225_v60  ;;  %v1268_v59 = vld [vmem:[%s1775_s21 + $0xe0] sm:$0xf]  ;;  %v1395_v60 = vld [vmem:[%s1775_s21 + $0xe4] sm:$0xf0]  ;;  %v1205_v1 = vor.u32 %v1379_v58, %v1204_v57  ;;  %v401_v57 = vld [vmem:[#allocation2 + $0x50] sm:$0xff] }
  0x8c   : > { %v1269_v2 = vor.u32 %v1395_v60, %v1268_v59 }
  0x9a   : > { %730 = vmatmul.bf16.gmra.mxu0 %v1165_v5  ;;  %770 = vmatmul.bf16.gmra.mxu2 %v1229_v6  ;;  %v1212_v5 = vld [vmem:[%s1775_s21 + $0x70] sm:$0xf]  ;;  %v1381_v6 = vld [vmem:[%s1775_s21 + $0x74] sm:$0xf0] }
  0x9b   : > { %819 = vmatmul.bf16.gmra.mxu1 %v1169_v7  ;;  %859 = vmatmul.bf16.gmra.mxu3 %v1233_v8  ;;  %v1276_v7 = vld [vmem:[%s1775_s21 + $0xf0] sm:$0xf]  ;;  %v1397_v8 = vld [vmem:[%s1775_s21 + $0xf4] sm:$0xf0]  ;;  %v1213_v13 = vor.u32 %v1381_v6, %v1212_v5 }
  0x9c   : > { %v1277_v14 = vor.u32 %v1397_v8, %v1276_v7 }
  0xaa   : > { %735 = vmatmul.bf16.gmra.mxu0 %v1173_v17  ;;  %775 = vmatmul.bf16.gmra.mxu2 %v1237_v18  ;;  %v397_v18 = vld [vmem:[#allocation2 + $0xb0] sm:$0xff] }
  0xab   : > { %824 = vmatmul.bf16.gmra.mxu1 %v1177_v19  ;;  %864 = vmatmul.bf16.gmra.mxu3 %v1241_v20 }
  0xba   : > { %740 = vmatmul.bf16.gmra.mxu0 %v1181_v29  ;;  %780 = vmatmul.bf16.gmra.mxu2 %v1245_v30 }
  0xbb   : > { %829 = vmatmul.bf16.gmra.mxu1 %v1185_v31  ;;  %869 = vmatmul.bf16.gmra.mxu3 %v1249_v32 }
  0xca   : > { %745 = vmatmul.bf16.gmra.mxu0 %v1189_v41  ;;  %785 = vmatmul.bf16.gmra.mxu2 %v1253_v42 }
  0xcb   : > { %834 = vmatmul.bf16.gmra.mxu1 %v1193_v43  ;;  %874 = vmatmul.bf16.gmra.mxu3 %v1257_v44  ;;  %v415_v43 = vld [vmem:[#allocation2 + $0x40] sm:$0xff] }
  0xda   : > { %750 = vmatmul.bf16.gmra.mxu0 %v1197_v53  ;;  %790 = vmatmul.bf16.gmra.mxu2 %v1261_v54  ;;  %v416_v53 = vld [vmem:[#allocation2 + $0xc8] sm:$0xff] }
  0xdb   : > { %839 = vmatmul.bf16.gmra.mxu1 %v1201_v55  ;;  %879 = vmatmul.bf16.gmra.mxu3 %v1265_v56 }
  0xea   : > { %755 = vmatmul.bf16.gmra.mxu0 %v1205_v1  ;;  %795 = vmatmul.bf16.gmra.mxu2 %v1269_v2 }
  0xeb   : > { %844 = vmatmul.bf16.gmra.mxu1 %v1209_v3  ;;  %884 = vmatmul.bf16.gmra.mxu3 %v1273_v4  ;;  %v402_v3 = vld [vmem:[#allocation2 + $0x68] sm:$0xff] }
  0xfa   : > { %760 = vmatmul.bf16.gmra.mxu0 %v1213_v13  ;;  %800 = vmatmul.bf16.gmra.mxu2 %v1277_v14  ;;  %v403_v13 = vld [vmem:[#allocation2 + $0x30] sm:$0xff] }
  0xfb   : > { %849 = vmatmul.bf16.gmra.mxu1 %v1217_v15  ;;  %889 = vmatmul.bf16.gmra.mxu3 %v1281_v16 }
 0x107   : > { %v726_v17 = vpop.f32.mrf.mxu0 }
 0x108   : > { %v815_v19 = vpop.f32.mrf.mxu1 }
 0x109   : > { %v816_v20 = vadd.f32 %v815_v19, %v726_v17  ;;  %v419_v19 = vld [vmem:[#allocation2 + $0x70] sm:$0xff] }
 0x10b   : > { %v895_v21 = vadd.f32 %v816_v20, %v397_v18 }
 0x10d   : > { %927 = vst [vmem:[#allocation2 + $0xb0] sm:$0xff] %v895_v21  ;;  %v766_v22 = vpop.f32.mrf.mxu2 }
 0x10e   : > { %v855_v24 = vpop.f32.mrf.mxu3 }
 0x10f   : > { %v856_v25 = vadd.f32 %v855_v24, %v766_v22  ;;  %v728_v26 = vpop.f32.mrf.mxu0 }
 0x110   : > { %v817_v28 = vpop.f32.mrf.mxu1 }
 0x111   : > { %v911_v29 = vadd.f32 %v856_v25, %v413_v23  ;;  %v818_v30 = vadd.f32 %v817_v28, %v728_v26  ;;  %v404_v23 = vld [vmem:[#allocation2 + $0x48] sm:$0xff] }
 0x113   : > { %943 = vst [vmem:[#allocation2 + $0x38] sm:$0xff] %v911_v29  ;;  %v896_v31 = vadd.f32 %v818_v30, %v398_v27  ;;  %v420_v29 = vld [vmem:[#allocation2 + $0xc0] sm:$0xff] }
 0x115   : > { %928 = vst [vmem:[#allocation2] sm:$0xff] %v896_v31  ;;  %v768_v32 = vpop.f32.mrf.mxu2 }
 0x116   : > { %v857_v34 = vpop.f32.mrf.mxu3 }
 0x117   : > { %v858_v35 = vadd.f32 %v857_v34, %v768_v32  ;;  %v731_v36 = vpop.f32.mrf.mxu0 }
 0x118   : > { %v820_v38 = vpop.f32.mrf.mxu1 }
 0x119   : > { %v912_v39 = vadd.f32 %v858_v35, %v414_v33  ;;  %v821_v40 = vadd.f32 %v820_v38, %v731_v36  ;;  %v405_v33 = vld [vmem:[#allocation2 + $0x80] sm:$0xff] }
 0x11b   : > { %944 = vst [vmem:[#allocation2 + $0x58] sm:$0xff] %v912_v39  ;;  %v897_v41 = vadd.f32 %v821_v40, %v399_v37  ;;  %v421_v39 = vld [vmem:[#allocation2 + $0xa8] sm:$0xff] }
 0x11d   : > { %929 = vst [vmem:[#allocation2 + $0xd8] sm:$0xff] %v897_v41  ;;  %v771_v42 = vpop.f32.mrf.mxu2 }
 0x11e   : > { %v860_v44 = vpop.f32.mrf.mxu3 }
 0x11f   : > { %v861_v45 = vadd.f32 %v860_v44, %v771_v42  ;;  %v733_v46 = vpop.f32.mrf.mxu0 }
 0x120   : > { %v822_v48 = vpop.f32.mrf.mxu1 }
 0x121   : > { %v913_v49 = vadd.f32 %v861_v45, %v415_v43  ;;  %v823_v50 = vadd.f32 %v822_v48, %v733_v46  ;;  %v406_v43 = vld [vmem:[#allocation2 + $0x88] sm:$0xff] }
 0x123   : > { %945 = vst [vmem:[#allocation2 + $0x40] sm:$0xff] %v913_v49  ;;  %v898_v51 = vadd.f32 %v823_v50, %v400_v47  ;;  %v422_v49 = vld [vmem:[#allocation2 + $0xd0] sm:$0xff] }
 0x125   : > { %930 = vst [vmem:[#allocation2 + $0x18] sm:$0xff] %v898_v51  ;;  %v773_v52 = vpop.f32.mrf.mxu2 }
 0x126   : > { %v862_v54 = vpop.f32.mrf.mxu3 }
 0x127   : > { %v863_v55 = vadd.f32 %v862_v54, %v773_v52  ;;  %v736_v56 = vpop.f32.mrf.mxu0 }
 0x128   : > { %v825_v58 = vpop.f32.mrf.mxu1 }
 0x129   : > { %v914_v59 = vadd.f32 %v863_v55, %v416_v53  ;;  %v826_v60 = vadd.f32 %v825_v58, %v736_v56  ;;  %v407_v53 = vld [vmem:[#allocation2 + $0xe8] sm:$0xff] }
 0x12b   : > { %946 = vst [vmem:[#allocation2 + $0xc8] sm:$0xff] %v914_v59  ;;  %v899_v61 = vadd.f32 %v826_v60, %v401_v57  ;;  %v423_v59 = vld [vmem:[#allocation2 + $0x10] sm:$0xff] }
 0x12d   : > { %931 = vst [vmem:[#allocation2 + $0x50] sm:$0xff] %v899_v61  ;;  %v776_v62 = vpop.f32.mrf.mxu2 }
 0x12e   : > { %v865_v0 = vpop.f32.mrf.mxu3 }
 0x12f   : > { %v866_v1 = vadd.f32 %v865_v0, %v776_v62  ;;  %v738_v2 = vpop.f32.mrf.mxu0 }
 0x130   : > { %v827_v4 = vpop.f32.mrf.mxu1 }
 0x131   : > { %v915_v5 = vadd.f32 %v866_v1, %v417_v63  ;;  %v828_v6 = vadd.f32 %v827_v4, %v738_v2  ;;  %v408_v63 = vld [vmem:[#allocation2 + $0xb8] sm:$0xff] }
 0x133   : > { %947 = vst [vmem:[#allocation2 + $0xe0] sm:$0xff] %v915_v5  ;;  %v900_v7 = vadd.f32 %v828_v6, %v402_v3  ;;  %v424_v5 = vld [vmem:[#allocation2 + $0x28] sm:$0xff] }
 0x135   : > { %932 = vst [vmem:[#allocation2 + $0x68] sm:$0xff] %v900_v7  ;;  %v778_v8 = vpop.f32.mrf.mxu2 }
 0x136   : > { %v867_v10 = vpop.f32.mrf.mxu3 }
 0x137   : > { %v868_v11 = vadd.f32 %v867_v10, %v778_v8  ;;  %v741_v12 = vpop.f32.mrf.mxu0 }
 0x138   : > { %v830_v14 = vpop.f32.mrf.mxu1 }
 0x139   : > { %v916_v15 = vadd.f32 %v868_v11, %v418_v9  ;;  %v831_v16 = vadd.f32 %v830_v14, %v741_v12  ;;  %v409_v9 = vld [vmem:[#allocation2 + $0x60] sm:$0xff] }
 0x13b   : > { %948 = vst [vmem:[#allocation2 + $0x90] sm:$0xff] %v916_v15  ;;  %v901_v17 = vadd.f32 %v831_v16, %v403_v13  ;;  %v425_v15 = vld [vmem:[#allocation2 + $0xa0] sm:$0xff] }
 0x13d   : > { %933 = vst [vmem:[#allocation2 + $0x30] sm:$0xff] %v901_v17  ;;  %v781_v18 = vpop.f32.mrf.mxu2 }
 0x13e   : > { %v870_v20 = vpop.f32.mrf.mxu3 }
 0x13f   : > { %v871_v21 = vadd.f32 %v870_v20, %v781_v18  ;;  %v743_v22 = vpop.f32.mrf.mxu0 }
 0x140   : > { %v832_v24 = vpop.f32.mrf.mxu1 }
 0x141   : > { %v917_v25 = vadd.f32 %v871_v21, %v419_v19  ;;  %v833_v26 = vadd.f32 %v832_v24, %v743_v22  ;;  %v410_v19 = vld [vmem:[#allocation2 + $0xf0] sm:$0xff] }
 0x143   : > { %949 = vst [vmem:[#allocation2 + $0x70] sm:$0xff] %v917_v25  ;;  %v902_v27 = vadd.f32 %v833_v26, %v404_v23  ;;  %v426_v25 = vld [vmem:[#allocation2 + $0xf8] sm:$0xff] }
 0x145   : > { %934 = vst [vmem:[#allocation2 + $0x48] sm:$0xff] %v902_v27  ;;  %v783_v28 = vpop.f32.mrf.mxu2 }
 0x146   : > { %v872_v30 = vpop.f32.mrf.mxu3 }
 0x147   : > { %v873_v31 = vadd.f32 %v872_v30, %v783_v28  ;;  %v746_v32 = vpop.f32.mrf.mxu0 }
 0x148   : > { %v835_v34 = vpop.f32.mrf.mxu1 }
 0x149   : > { %v918_v35 = vadd.f32 %v873_v31, %v420_v29  ;;  %v836_v36 = vadd.f32 %v835_v34, %v746_v32  ;;  %v411_v29 = vld [vmem:[#allocation2 + $0x8] sm:$0xff] }
 0x14b   : > { %950 = vst [vmem:[#allocation2 + $0xc0] sm:$0xff] %v918_v35  ;;  %v903_v37 = vadd.f32 %v836_v36, %v405_v33  ;;  %v427_v35 = vld [vmem:[#allocation2 + $0x20] sm:$0xff] }
 0x14d   : > { %935 = vst [vmem:[#allocation2 + $0x80] sm:$0xff] %v903_v37  ;;  %v786_v38 = vpop.f32.mrf.mxu2 }
 0x14e   : > { %v875_v40 = vpop.f32.mrf.mxu3 }
 0x14f   : > { %v876_v41 = vadd.f32 %v875_v40, %v786_v38  ;;  %v748_v42 = vpop.f32.mrf.mxu0 }
 0x150   : > { %v837_v44 = vpop.f32.mrf.mxu1 }
 0x151   : > { %v919_v45 = vadd.f32 %v876_v41, %v421_v39  ;;  %v838_v46 = vadd.f32 %v837_v44, %v748_v42  ;;  %v412_v39 = vld [vmem:[#allocation2 + $0x78] sm:$0xff] }
 0x153   : > { %951 = vst [vmem:[#allocation2 + $0xa8] sm:$0xff] %v919_v45  ;;  %v904_v47 = vadd.f32 %v838_v46, %v406_v43  ;;  %v428_v45 = vld [vmem:[#allocation2 + $0x98] sm:$0xff] }
 0x155   : > { %936 = vst [vmem:[#allocation2 + $0x88] sm:$0xff] %v904_v47  ;;  %v788_v48 = vpop.f32.mrf.mxu2 }
 0x156   : > { %v877_v50 = vpop.f32.mrf.mxu3 }
 0x157   : > { %v878_v51 = vadd.f32 %v877_v50, %v788_v48  ;;  %v751_v52 = vpop.f32.mrf.mxu0 }
 0x158   : > { %v840_v54 = vpop.f32.mrf.mxu1 }
 0x159   : > { %v920_v55 = vadd.f32 %v878_v51, %v422_v49  ;;  %v841_v56 = vadd.f32 %v840_v54, %v751_v52 }
 0x15b   : > { %952 = vst [vmem:[#allocation2 + $0xd0] sm:$0xff] %v920_v55  ;;  %v905_v57 = vadd.f32 %v841_v56, %v407_v53 }
 0x15d   : > { %937 = vst [vmem:[#allocation2 + $0xe8] sm:$0xff] %v905_v57  ;;  %v791_v58 = vpop.f32.mrf.mxu2 }
 0x15e   : > { %v880_v60 = vpop.f32.mrf.mxu3 }
 0x15f   : > { %v881_v61 = vadd.f32 %v880_v60, %v791_v58  ;;  %v753_v62 = vpop.f32.mrf.mxu0 }
 0x160   : > { %v842_v0 = vpop.f32.mrf.mxu1 }
 0x161   : > { %v921_v1 = vadd.f32 %v881_v61, %v423_v59  ;;  %v843_v2 = vadd.f32 %v842_v0, %v753_v62 }
 0x163   : > { %953 = vst [vmem:[#allocation2 + $0x10] sm:$0xff] %v921_v1  ;;  %v906_v3 = vadd.f32 %v843_v2, %v408_v63 }
 0x165   : > { %938 = vst [vmem:[#allocation2 + $0xb8] sm:$0xff] %v906_v3  ;;  %v793_v4 = vpop.f32.mrf.mxu2 }
 0x166   : > { %v882_v6 = vpop.f32.mrf.mxu3 }
 0x167   : > { %v883_v7 = vadd.f32 %v882_v6, %v793_v4  ;;  %v756_v8 = vpop.f32.mrf.mxu0 }
 0x168   : > { %v845_v10 = vpop.f32.mrf.mxu1 }
 0x169   : > { %v922_v11 = vadd.f32 %v883_v7, %v424_v5  ;;  %v846_v12 = vadd.f32 %v845_v10, %v756_v8 }
 0x16b   : > { %954 = vst [vmem:[#allocation2 + $0x28] sm:$0xff] %v922_v11  ;;  %v907_v13 = vadd.f32 %v846_v12, %v409_v9 }
 0x16d   : > { %939 = vst [vmem:[#allocation2 + $0x60] sm:$0xff] %v907_v13  ;;  %v796_v14 = vpop.f32.mrf.mxu2 }
 0x16e   : > { %v885_v16 = vpop.f32.mrf.mxu3 }
 0x16f   : > { %v886_v17 = vadd.f32 %v885_v16, %v796_v14  ;;  %v758_v18 = vpop.f32.mrf.mxu0 }
 0x170   : > { %v847_v20 = vpop.f32.mrf.mxu1 }
 0x171   : > { %v923_v21 = vadd.f32 %v886_v17, %v425_v15  ;;  %v848_v22 = vadd.f32 %v847_v20, %v758_v18 }
 0x173   : > { %955 = vst [vmem:[#allocation2 + $0xa0] sm:$0xff] %v923_v21  ;;  %v908_v23 = vadd.f32 %v848_v22, %v410_v19 }
 0x175   : > { %940 = vst [vmem:[#allocation2 + $0xf0] sm:$0xff] %v908_v23  ;;  %v798_v24 = vpop.f32.mrf.mxu2 }
 0x176   : > { %v887_v26 = vpop.f32.mrf.mxu3 }
 0x177   : > { %v888_v27 = vadd.f32 %v887_v26, %v798_v24  ;;  %v761_v28 = vpop.f32.mrf.mxu0 }
 0x178   : > { %v850_v30 = vpop.f32.mrf.mxu1 }
 0x179   : > { %v924_v31 = vadd.f32 %v888_v27, %v426_v25  ;;  %v851_v32 = vadd.f32 %v850_v30, %v761_v28 }
 0x17b   : > { %956 = vst [vmem:[#allocation2 + $0xf8] sm:$0xff] %v924_v31  ;;  %v909_v33 = vadd.f32 %v851_v32, %v411_v29 }
 0x17d   : > { %941 = vst [vmem:[#allocation2 + $0x8] sm:$0xff] %v909_v33  ;;  %v801_v34 = vpop.f32.mrf.mxu2 }
 0x17e   : > { %v890_v36 = vpop.f32.mrf.mxu3 }
 0x17f   : > { %v891_v37 = vadd.f32 %v890_v36, %v801_v34  ;;  %v763_v38 = vpop.f32.mrf.mxu0 }
 0x180   : > { %v852_v40 = vpop.f32.mrf.mxu1 }
 0x181   : > { %v925_v41 = vadd.f32 %v891_v37, %v427_v35  ;;  %v853_v42 = vadd.f32 %v852_v40, %v763_v38 }
 0x183   : > { %957 = vst [vmem:[#allocation2 + $0x20] sm:$0xff] %v925_v41  ;;  %v910_v43 = vadd.f32 %v853_v42, %v412_v39 }
 0x185   : > { %942 = vst [vmem:[#allocation2 + $0x78] sm:$0xff] %v910_v43  ;;  %v803_v44 = vpop.f32.mrf.mxu2 }
 0x186   : > { %v892_v46 = vpop.f32.mrf.mxu3 }
 0x187   : > { %v893_v47 = vadd.f32 %v892_v46, %v803_v44  ;;  %962 = sbr.rel (%p1346_p12) target bundleno = 415 (0x19f), region = 74 }
 0x189   : > { %v926_v48 = vadd.f32 %v893_v47, %v428_v45 }
 0x18b   : > { %958 = vst [vmem:[#allocation2 + $0x98] sm:$0xff] %v926_v48 }
 0x18c   : > { %v963_v49 = vld [vmem:[#allocation2 + $0xb0] sm:$0xff]  ;;  %v964_v50 = vld [vmem:[#allocation2] sm:$0xff]  ;;  %v965_v51 = vld [vmem:[#allocation2 + $0xd8] sm:$0xff] }
 0x18d   : > { %v1401_v52 = vpack.c.bf16 %v964_v50, %v963_v49  ;;  %v966_v53 = vld [vmem:[#allocation2 + $0x18] sm:$0xff]  ;;  %v967_v54 = vld [vmem:[#allocation2 + $0x50] sm:$0xff]  ;;  %v968_v55 = vld [vmem:[#allocation2 + $0x68] sm:$0xff] }
 0x18e   : > { %v1406_v56 = vpack.c.bf16 %v966_v53, %v965_v51  ;;  %v1411_v57 = vpack.c.bf16 %v968_v55, %v967_v54  ;;  %v969_v58 = vld [vmem:[#allocation2 + $0x30] sm:$0xff]  ;;  %v970_v59 = vld [vmem:[#allocation2 + $0x48] sm:$0xff]  ;;  %v971_v60 = vld [vmem:[#allocation2 + $0x80] sm:$0xff] }
 0x18f   : > { %1402 = vst [vmem:[%s1773_s20] sm:$0xff] %v1401_v52   ;;  %v1416_v61 = vpack.c.bf16 %v970_v59, %v969_v58  ;;  %v972_v62 = vld [vmem:[#allocation2 + $0x88] sm:$0xff]  ;;  %v974_v0 = vld [vmem:[#allocation2 + $0xb8] sm:$0xff]  ;;  %v975_v3 = vld [vmem:[#allocation2 + $0x60] sm:$0xff] }
 0x190   : > { %v973_v63 = vld [vmem:[#allocation2 + $0xe8] sm:$0xff]  ;;  %1478 = vst [vmem:[%s1773_s20 + $0x8] sm:$0xff] %v1406_v56   ;;  %v1421_v1 = vpack.c.bf16 %v972_v62, %v971_v60  ;;  %v976_v4 = vld [vmem:[#allocation2 + $0xf0] sm:$0xff]  ;;  %v978_v7 = vld [vmem:[#allocation2 + $0x78] sm:$0xff] }
 0x191   : > { %v1426_v2 = vpack.c.bf16 %v974_v0, %v973_v63  ;;  %v977_v5 = vld [vmem:[#allocation2 + $0x8] sm:$0xff]  ;;  %1479 = vst [vmem:[%s1773_s20 + $0x10] sm:$0xff] %v1411_v57   ;;  %v1431_v6 = vpack.c.bf16 %v976_v4, %v975_v3  ;;  %v979_v8 = vld [vmem:[#allocation2 + $0x38] sm:$0xff]  ;;  %v981_v11 = vld [vmem:[#allocation2 + $0x40] sm:$0xff] }
 0x192   : > { %v980_v9 = vld [vmem:[#allocation2 + $0x58] sm:$0xff]  ;;  %1480 = vst [vmem:[%s1773_s20 + $0x18] sm:$0xff] %v1416_v61   ;;  %v1436_v10 = vpack.c.bf16 %v978_v7, %v977_v5  ;;  %v982_v12 = vld [vmem:[#allocation2 + $0xc8] sm:$0xff]  ;;  %v983_v13 = vld [vmem:[#allocation2 + $0xe0] sm:$0xff] }
 0x193   : > { %1481 = vst [vmem:[%s1773_s20 + $0x20] sm:$0xff] %v1421_v1   ;;  %v1441_v14 = vpack.c.bf16 %v980_v9, %v979_v8  ;;  %v984_v15 = vld [vmem:[#allocation2 + $0x90] sm:$0xff]  ;;  %v986_v17 = vld [vmem:[#allocation2 + $0xc0] sm:$0xff]  ;;  %v1446_v18 = vpack.c.bf16 %v982_v12, %v981_v11  ;;  %v987_v19 = vld [vmem:[#allocation2 + $0xa8] sm:$0xff] }
 0x194   : > { %v985_v16 = vld [vmem:[#allocation2 + $0x70] sm:$0xff]  ;;  %1482 = vst [vmem:[%s1773_s20 + $0x28] sm:$0xff] %v1426_v2   ;;  %v1451_v21 = vpack.c.bf16 %v984_v15, %v983_v13  ;;  %v990_v23 = vld [vmem:[#allocation2 + $0x28] sm:$0xff]  ;;  %v991_v25 = vld [vmem:[#allocation2 + $0xa0] sm:$0xff] }
 0x195   : > { %v988_v20 = vld [vmem:[#allocation2 + $0xd0] sm:$0xff]  ;;  %1483 = vst [vmem:[%s1773_s20 + $0x30] sm:$0xff] %v1431_v6   ;;  %v1456_v24 = vpack.c.bf16 %v986_v17, %v985_v16  ;;  %v992_v26 = vld [vmem:[#allocation2 + $0xf8] sm:$0xff]  ;;  %v993_v28 = vld [vmem:[#allocation2 + $0x20] sm:$0xff] }
 0x196   : > { %v989_v22 = vld [vmem:[#allocation2 + $0x10] sm:$0xff]  ;;  %1484 = vst [vmem:[%s1773_s20 + $0x38] sm:$0xff] %v1436_v10   ;;  %v1461_v27 = vpack.c.bf16 %v988_v20, %v987_v19  ;;  %v994_v29 = vld [vmem:[#allocation2 + $0x98] sm:$0xff]  ;;  %v1471_v31 = vpack.c.bf16 %v992_v26, %v991_v25 }
 0x197   : > { %1485 = vst [vmem:[%s1773_s20 + $0x40] sm:$0xff] %v1441_v14   ;;  %v1466_v30 = vpack.c.bf16 %v990_v23, %v989_v22  ;;  %v1476_v32 = vpack.c.bf16 %v994_v29, %v993_v28 }
 0x198   : > { %1486 = vst [vmem:[%s1773_s20 + $0x48] sm:$0xff] %v1446_v18  }
 0x199   : > { %1487 = vst [vmem:[%s1773_s20 + $0x50] sm:$0xff] %v1451_v21  }
 0x19a   : > { %1488 = vst [vmem:[%s1773_s20 + $0x58] sm:$0xff] %v1456_v24  }
 0x19b   : > { %1489 = vst [vmem:[%s1773_s20 + $0x60] sm:$0xff] %v1461_v27  }
 0x19c   : > { %1490 = vst [vmem:[%s1773_s20 + $0x68] sm:$0xff] %v1466_v30  }
 0x19d   : > { %1491 = vst [vmem:[%s1773_s20 + $0x70] sm:$0xff] %v1471_v31  }
 0x19e   : > { %1492 = vst [vmem:[%s1773_s20 + $0x78] sm:$0xff] %v1476_v32  }
 0x19f PF: > { %s12_s15 = sadd.s32 1, %s1620_s15   ;;  %s1905_s9 = smov %s1600_s10 }
 0x1a0   : > { %p9_p13 = scmp.ge.s32.totalorder %s12_s15, 6   ;;  %s1906_s10 = smov %s1689_s22 }
 0x1a1   : > { %s1907_s11 = smov %s1612_s13  ;;  %s1908_s12 = smov %s1616_s14 }
 0x1a2   : > { %s1909_s13 = smov %s1912_s16  ;;  %s1910_s14 = smov %s1916_s17 }
 0x1a3   :  { %11 = sbr.rel (!%p9_p13) target bundleno = 4 (0x4), region = 110 }

// kernel: gconv2_forward.3
= control target key start
LH: loop header
LB: loop body
LE: loop exit
PB: predicated region body
PF: predicated region fallthrough
CT: control target
= control target key end

     0   :  { %s2766_s13 = smov 0   ;;  %s2768_s14 = smov 0   ;;  %s3358_s0 = inlined_call_operand.vmem [shape: bf16[512,512], index: 0, kind: input, shape index: {}]   ;;  %s3359_s1 = inlined_call_operand.vmem [shape: bf16[512,128], index: 1, kind: input, shape index: {}]   ;;  %s3360_s2 = inlined_call_operand.vmem [shape: bf16[128,128], index: 2, kind: input, shape index: {}]   ;;  %s3361_s3 = inlined_call_operand.vmem [shape: f32[1,128], index: 3, kind: input, shape index: {}]   ;;  %s3362_s4 = inlined_call_operand.vmem [shape: f32[1,128], index: 4, kind: input, shape index: {}]   ;;  %s3363_s5 = inlined_call_operand.vmem [shape: f32[1,128], index: 5, kind: input, shape index: {}]   ;;  %s3364_s6 = inlined_call_operand.vmem [shape: f32[1,128], index: 6, kind: input, shape index: {}]   ;;  %s3365_s7 = inlined_call_operand.vmem [shape: f32[1,128], index: 7, kind: input, shape index: {}]   ;;  %s3366_s8 = inlined_call_operand.vmem [shape: f32[1,128], index: 8, kind: input, shape index: {}]   ;;  %s3367_s9 = inlined_call_operand.vmem [shape: bf16[512,128], index: 9, kind: output, shape index: {0}]   ;;  %s3368_s10 = inlined_call_operand.vmem [shape: bf16[512,128], index: 10, kind: output, shape index: {1}]  }
   0x1   :  { %s2770_s15 = smov 0   ;;  %s2772_s16 = smov 0  }
   0x2   :  { %s2774_s17 = smov 0   ;;  %s2776_s18 = smov 0  }
   0x3   :  { %s2778_s19 = smov 0  }
   0x4 LB: > { %s30_s20 = sadd.s32 1, %s2700_s17  ;;  %s33_s21 = sadd.s32 1, %s2704_s18  ;;  %s2708_s19 = sphi %s2778_s19, %s21_s19   ;;  %s2704_s18 = sphi %s2776_s18, %s3380_s18   ;;  %s2700_s17 = sphi %s2774_s17, %s3379_s17   ;;  %s2696_s16 = sphi %s2772_s16, %s3378_s16   ;;  %s2692_s15 = sphi %s2770_s15, %s3377_s15   ;;  %s2688_s14 = sphi %s2768_s14, %s3376_s14   ;;  %s2684_s13 = sphi %s2766_s13, %s3375_s13  }
   0x5   : > { %p31_p0 = scmp.ge.s32.totalorder %s30_s20, 2  ;;  %p49_p1 = scmp.ne.s32.totalorder %s2688_s14, %s2684_s13 }
   0x6   : > { %p50_p2 = scmp.eq.s32.totalorder %s2708_s19, 0  ;;  %s42_s25 = sadd.s32 1, %s2688_s14 }
   0x7   : > { %s3382_s20 = smov (%p31_p0, %s30_s20), 0  ;;  %s3384_s21 = smov (!%p31_p0, %s33_s21), %s2704_s18 }
   0x8   : > { %3371 = sst [smem:[#allocation4_spill]] %s3382_s20  ;;  %p51_p3 = por %p50_p2, %p49_p1 }
   0x9   : > { %p35_p4 = scmp.ge.s32.totalorder %s3384_s21, 2  ;;  %s38_s22 = ssub.s32 %s2700_s17, %s3382_s20 }
   0xa   : > { %p2062_p6 = scmp.ge.s32.totalorder %s2708_s19, 4 }
   0xb   : > { %s3386_s21 = smov (%p35_p4, %s3384_s21), 0 }
   0xc   : > { %3372 = sst [smem:[#allocation5_spill]] %s3386_s21  ;;  %s37_s23 = ssub.s32 %s2704_s18, %s3386_s21 }
   0xd   : > { %s39_s24 = sor.u32 %s38_s22, %s37_s23  ;;  %319 = sbr.rel (%p2062_p6) target bundleno = 57 (0x39), region = 48 }
   0xe   : > { %p40_p5 = scmp.eq.s32.totalorder %s39_s24, 0 }
  0x10   : > { %s2817_s26 = scalar_select %p40_p5, %s2688_s14, %s42_s25  }
  0x12   : > { %322 = sbr.rel (!%p51_p3) target bundleno = 57 (0x39), region = 52  ;;  %s324_s27 = sand.u32 (%p51_p3), 1, %s2688_s14  }
  0x13   : > { %s2065_s28 = sshll.u32 (%p51_p3), %s2700_s17, 1  ;;  %s2063_s29 = sshll.u32 (%p51_p3), %s324_s27, 8 }
  0x14   : > { %s2304_s30 = sshll.u32 (%p51_p3), %s2704_s18, 7  ;;  %s2831_s23 = scalar_lea.vmem (%p51_p3), [#allocation3], %s2063_s29 }
  0x15   : > { %s330_s11 = sadd.s32 (%p51_p3), %s2304_s30, %s2065_s28 }
  0x16   : > { %s2067_s12 = sshll.u32 (%p51_p3), %s330_s11, 2 }
  0x17   : > { %s2826_s22 = scalar_lea.vmem %s3358_s0, %s2067_s12 }
  0x18   : > { %v423_v0 = vld [vmem:[%s2826_s22] sm:$0xff]  ;;  %v425_v1 = vld [vmem:[%s2826_s22 + $0x10] sm:$0xff] }
  0x19   : > { %v427_v2 = vld [vmem:[%s2826_s22 + $0x20] sm:$0xff]  ;;  %424 = vst [vmem:[%s2831_s23] sm:$0xff] %v423_v0  ;;  %v429_v3 = vld [vmem:[%s2826_s22 + $0x30] sm:$0xff] }
  0x1a   : > { %426 = vst [vmem:[%s2831_s23 + $0x8] sm:$0xff] %v425_v1  ;;  %v431_v4 = vld [vmem:[%s2826_s22 + $0x40] sm:$0xff]  ;;  %v433_v5 = vld [vmem:[%s2826_s22 + $0x50] sm:$0xff] }
  0x1b   : > { %428 = vst [vmem:[%s2831_s23 + $0x10] sm:$0xff] %v427_v2  ;;  %v435_v6 = vld [vmem:[%s2826_s22 + $0x60] sm:$0xff]  ;;  %v437_v7 = vld [vmem:[%s2826_s22 + $0x70] sm:$0xff] }
  0x1c   : > { %430 = vst [vmem:[%s2831_s23 + $0x18] sm:$0xff] %v429_v3  ;;  %v439_v8 = vld [vmem:[%s2826_s22 + $0x80] sm:$0xff]  ;;  %v441_v9 = vld [vmem:[%s2826_s22 + $0x90] sm:$0xff] }
  0x1d   : > { %432 = vst [vmem:[%s2831_s23 + $0x20] sm:$0xff] %v431_v4  ;;  %v443_v10 = vld [vmem:[%s2826_s22 + $0xa0] sm:$0xff]  ;;  %v445_v11 = vld [vmem:[%s2826_s22 + $0xb0] sm:$0xff] }
  0x1e   : > { %434 = vst [vmem:[%s2831_s23 + $0x28] sm:$0xff] %v433_v5  ;;  %v447_v12 = vld [vmem:[%s2826_s22 + $0xc0] sm:$0xff]  ;;  %v449_v13 = vld [vmem:[%s2826_s22 + $0xd0] sm:$0xff] }
  0x1f   : > { %436 = vst [vmem:[%s2831_s23 + $0x30] sm:$0xff] %v435_v6  ;;  %v451_v14 = vld [vmem:[%s2826_s22 + $0xe0] sm:$0xff]  ;;  %v453_v15 = vld [vmem:[%s2826_s22 + $0xf0] sm:$0xff] }
  0x20   : > { %438 = vst [vmem:[%s2831_s23 + $0x38] sm:$0xff] %v437_v7  ;;  %v455_v16 = vld [vmem:[%s2826_s22 + $0x100] sm:$0xff]  ;;  %v457_v17 = vld [vmem:[%s2826_s22 + $0x110] sm:$0xff] }
  0x21   : > { %440 = vst [vmem:[%s2831_s23 + $0x40] sm:$0xff] %v439_v8  ;;  %v459_v18 = vld [vmem:[%s2826_s22 + $0x120] sm:$0xff]  ;;  %v461_v19 = vld [vmem:[%s2826_s22 + $0x130] sm:$0xff] }
  0x22   : > { %442 = vst [vmem:[%s2831_s23 + $0x48] sm:$0xff] %v441_v9  ;;  %v463_v20 = vld [vmem:[%s2826_s22 + $0x140] sm:$0xff]  ;;  %v465_v21 = vld [vmem:[%s2826_s22 + $0x150] sm:$0xff] }
  0x23   : > { %444 = vst [vmem:[%s2831_s23 + $0x50] sm:$0xff] %v443_v10  ;;  %v467_v22 = vld [vmem:[%s2826_s22 + $0x160] sm:$0xff]  ;;  %v469_v23 = vld [vmem:[%s2826_s22 + $0x170] sm:$0xff] }
  0x24   : > { %446 = vst [vmem:[%s2831_s23 + $0x58] sm:$0xff] %v445_v11  ;;  %v471_v24 = vld [vmem:[%s2826_s22 + $0x180] sm:$0xff]  ;;  %v473_v25 = vld [vmem:[%s2826_s22 + $0x190] sm:$0xff] }
  0x25   : > { %448 = vst [vmem:[%s2831_s23 + $0x60] sm:$0xff] %v447_v12  ;;  %v475_v26 = vld [vmem:[%s2826_s22 + $0x1a0] sm:$0xff]  ;;  %v477_v27 = vld [vmem:[%s2826_s22 + $0x1b0] sm:$0xff] }
  0x26   : > { %450 = vst [vmem:[%s2831_s23 + $0x68] sm:$0xff] %v449_v13  ;;  %v479_v28 = vld [vmem:[%s2826_s22 + $0x1c0] sm:$0xff]  ;;  %v481_v29 = vld [vmem:[%s2826_s22 + $0x1d0] sm:$0xff] }
  0x27   : > { %452 = vst [vmem:[%s2831_s23 + $0x70] sm:$0xff] %v451_v14  ;;  %v483_v30 = vld [vmem:[%s2826_s22 + $0x1e0] sm:$0xff]  ;;  %v485_v31 = vld [vmem:[%s2826_s22 + $0x1f0] sm:$0xff] }
  0x28   : > { %454 = vst [vmem:[%s2831_s23 + $0x78] sm:$0xff] %v453_v15 }
  0x29   : > { %456 = vst [vmem:[%s2831_s23 + $0x80] sm:$0xff] %v455_v16 }
  0x2a   : > { %458 = vst [vmem:[%s2831_s23 + $0x88] sm:$0xff] %v457_v17 }
  0x2b   : > { %460 = vst [vmem:[%s2831_s23 + $0x90] sm:$0xff] %v459_v18 }
  0x2c   : > { %462 = vst [vmem:[%s2831_s23 + $0x98] sm:$0xff] %v461_v19 }
  0x2d   : > { %464 = vst [vmem:[%s2831_s23 + $0xa0] sm:$0xff] %v463_v20 }
  0x2e   : > { %466 = vst [vmem:[%s2831_s23 + $0xa8] sm:$0xff] %v465_v21 }
  0x2f   : > { %468 = vst [vmem:[%s2831_s23 + $0xb0] sm:$0xff] %v467_v22 }
  0x30   : > { %470 = vst [vmem:[%s2831_s23 + $0xb8] sm:$0xff] %v469_v23 }
  0x31   : > { %472 = vst [vmem:[%s2831_s23 + $0xc0] sm:$0xff] %v471_v24 }
  0x32   : > { %474 = vst [vmem:[%s2831_s23 + $0xc8] sm:$0xff] %v473_v25 }
  0x33   : > { %476 = vst [vmem:[%s2831_s23 + $0xd0] sm:$0xff] %v475_v26 }
  0x34   : > { %478 = vst [vmem:[%s2831_s23 + $0xd8] sm:$0xff] %v477_v27 }
  0x35   : > { %480 = vst [vmem:[%s2831_s23 + $0xe0] sm:$0xff] %v479_v28 }
  0x36   : > { %482 = vst [vmem:[%s2831_s23 + $0xe8] sm:$0xff] %v481_v29 }
  0x37   : > { %484 = vst [vmem:[%s2831_s23 + $0xf0] sm:$0xff] %v483_v30 }
  0x38   : > { %486 = vst [vmem:[%s2831_s23 + $0xf8] sm:$0xff] %v485_v31 }
  0x39 PF: > { %p2068_p7 = scmp.ge.s32.totalorder %s2708_s19, 1  ;;  %p491_p8 = scmp.lt.s32.totalorder %s2708_s19, 5 }
  0x3b   : > { %p492_p9 = pnand %p2068_p7, %p491_p8 }
  0x3c   : > { %s498_s20 = sand.u32 (!%p492_p9), 1, %s2684_s13   ;;  %s2070_s21 = sshll.u32 (!%p492_p9), %s2696_s16, 5 }
  0x3d   : > { %495 = sbr.rel (%p492_p9) target bundleno = 630 (0x276), region = 90  ;;  %s2069_s24 = sshll.u32 (!%p492_p9), %s498_s20, 8 }
  0x3e   : > { %p543_p10 = scmp.lt.s32.totalorder (!%p492_p9), %s2070_s21, 63  ;;  %s2908_s22 = scalar_lea.vmem (!%p492_p9), [#allocation3], %s2069_s24 }
  0x3f   : > { %p2074_p11 = scmp.ne.s32.totalorder (!%p492_p9), %s2692_s15, 0 }
  0x42   : > { %s3388_s21 = smov (!%p543_p10, %s2070_s21), 63  ;;  %557 = sbr.rel (%p2074_p11) target bundleno = 104 (0x68), region = 98 }
  0x43   : > { %s2071_s25 = sshll.u32 %s3388_s21, 2 }
  0x44   : > { %s2901_s29 = scalar_lea.vmem %s3367_s9, %s2071_s25  ;;  %s2906_s12 = scalar_lea.vmem %s3368_s10, %s2071_s25 }
  0x47   : > { %v2710_v32 = vmov 0.0  }
  0x48   : > { %558 = vst [vmem:[#allocation2 + $0xb0] sm:$0xff] %v2710_v32 }
  0x49   : > { %559 = vst [vmem:[#allocation2] sm:$0xff] %v2710_v32 }
  0x4a   : > { %560 = vst [vmem:[#allocation2 + $0xd8] sm:$0xff] %v2710_v32 }
  0x4b   : > { %561 = vst [vmem:[#allocation2 + $0x18] sm:$0xff] %v2710_v32 }
  0x4c   : > { %562 = vst [vmem:[#allocation2 + $0x50] sm:$0xff] %v2710_v32 }
  0x4d   : > { %563 = vst [vmem:[#allocation2 + $0x68] sm:$0xff] %v2710_v32 }
  0x4e   : > { %564 = vst [vmem:[#allocation2 + $0x30] sm:$0xff] %v2710_v32 }
  0x4f   : > { %565 = vst [vmem:[#allocation2 + $0x48] sm:$0xff] %v2710_v32 }
  0x50   : > { %566 = vst [vmem:[#allocation2 + $0x80] sm:$0xff] %v2710_v32 }
  0x51   : > { %567 = vst [vmem:[#allocation2 + $0x88] sm:$0xff] %v2710_v32 }
  0x52   : > { %568 = vst [vmem:[#allocation2 + $0xe8] sm:$0xff] %v2710_v32 }
  0x53   : > { %569 = vst [vmem:[#allocation2 + $0xb8] sm:$0xff] %v2710_v32 }
  0x54   : > { %570 = vst [vmem:[#allocation2 + $0x60] sm:$0xff] %v2710_v32 }
  0x55   : > { %571 = vst [vmem:[#allocation2 + $0xf0] sm:$0xff] %v2710_v32 }
  0x56   : > { %572 = vst [vmem:[#allocation2 + $0x8] sm:$0xff] %v2710_v32 }
  0x57   : > { %573 = vst [vmem:[#allocation2 + $0x78] sm:$0xff] %v2710_v32 }
  0x58   : > { %574 = vst [vmem:[#allocation2 + $0x38] sm:$0xff] %v2710_v32 }
  0x59   : > { %575 = vst [vmem:[#allocation2 + $0x58] sm:$0xff] %v2710_v32 }
  0x5a   : > { %576 = vst [vmem:[#allocation2 + $0x40] sm:$0xff] %v2710_v32 }
  0x5b   : > { %577 = vst [vmem:[#allocation2 + $0xc8] sm:$0xff] %v2710_v32 }
  0x5c   : > { %578 = vst [vmem:[#allocation2 + $0xe0] sm:$0xff] %v2710_v32 }
  0x5d   : > { %579 = vst [vmem:[#allocation2 + $0x90] sm:$0xff] %v2710_v32 }
  0x5e   : > { %580 = vst [vmem:[#allocation2 + $0x70] sm:$0xff] %v2710_v32 }
  0x5f   : > { %581 = vst [vmem:[#allocation2 + $0xc0] sm:$0xff] %v2710_v32 }
  0x60   : > { %582 = vst [vmem:[#allocation2 + $0xa8] sm:$0xff] %v2710_v32 }
  0x61   : > { %583 = vst [vmem:[#allocation2 + $0xd0] sm:$0xff] %v2710_v32 }
  0x62   : > { %584 = vst [vmem:[#allocation2 + $0x10] sm:$0xff] %v2710_v32 }
  0x63   : > { %585 = vst [vmem:[#allocation2 + $0x28] sm:$0xff] %v2710_v32 }
  0x64   : > { %586 = vst [vmem:[#allocation2 + $0xa0] sm:$0xff] %v2710_v32 }
  0x65   : > { %587 = vst [vmem:[#allocation2 + $0xf8] sm:$0xff] %v2710_v32 }
  0x66   : > { %588 = vst [vmem:[#allocation2 + $0x20] sm:$0xff] %v2710_v32 }
  0x67   : > { %589 = vst [vmem:[#allocation2 + $0x98] sm:$0xff] %v2710_v32 }
  0x68 PF: > { %s2075_s13 = sshll.u32 %s2692_s15, 8  ;;  %v2079_v47 = vld [vmem:[%s2908_s22] sm:$0xf]  ;;  %v2322_v49 = vld [vmem:[%s2908_s22 + $0x4] sm:$0xf0]  ;;  %p2269_p12 = scmp.ne.s32.totalorder %s2692_s15, 1 }
  0x69   : > { %s591_s16 = sshra.s32 %s2075_s13, 3  ;;  %v2143_v50 = vld [vmem:[%s2908_s22 + $0x80] sm:$0xf]  ;;  %v2338_v52 = vld [vmem:[%s2908_s22 + $0x84] sm:$0xf0]  ;;  %v2080_v57 = vor.u32 %v2322_v49, %v2079_v47 }
  0x6a   : > { %s2076_s23 = sshll.u32 %s591_s16, 2  ;;  %v2321_v53 = vld [vmem:[%s2908_s22 + $0x4] sm:$0xf]  ;;  %v2081_v54 = vld [vmem:[%s2908_s22 + $0x8] sm:$0xf0]  ;;  %v2144_v58 = vor.u32 %v2338_v52, %v2143_v50 }
  0x6b   : > { %s2915_s24 = scalar_lea.vmem %s3359_s1, %s2076_s23  ;;  %v2337_v55 = vld [vmem:[%s2908_s22 + $0x84] sm:$0xf]  ;;  %v2145_v56 = vld [vmem:[%s2908_s22 + $0x88] sm:$0xf0]  ;;  %v2084_v59 = vor.u32 %v2321_v53, %v2081_v54  ;;  %v2087_v61 = vld [vmem:[%s2908_s22 + $0x10] sm:$0xf] }
  0x6c   : > { %v2312_v33 = vld [vmem:[%s2915_s24 + $0x38] sm:$0xff]  ;;  %v2311_v35 = vld [vmem:[%s2915_s24 + $0x30] sm:$0xff]  ;;  %v2310_v37 = vld [vmem:[%s2915_s24 + $0x28] sm:$0xff]  ;;  %v2148_v60 = vor.u32 %v2337_v55, %v2145_v56 }
  0x6d   : > { %v2320_v34 = vld [vmem:[%s2915_s24 + $0x78] sm:$0xff]  ;;  %947 = vmatpush.bf16.msra.mxu0 %v2312_v33  ;;  %2551 = vmatpush.bf16.msra.mxu2 %v2312_v33  ;;  %v2319_v36 = vld [vmem:[%s2915_s24 + $0x70] sm:$0xff]  ;;  %v2318_v38 = vld [vmem:[%s2915_s24 + $0x68] sm:$0xff] }
  0x6e   : > { %1036 = vmatpush.bf16.msra.mxu1 %v2320_v34  ;;  %2559 = vmatpush.bf16.msra.mxu3 %v2320_v34  ;;  %v2309_v39 = vld [vmem:[%s2915_s24 + $0x20] sm:$0xff]  ;;  %v2308_v41 = vld [vmem:[%s2915_s24 + $0x18] sm:$0xff]  ;;  %v2307_v43 = vld [vmem:[%s2915_s24 + $0x10] sm:$0xff] }
  0x6f   : > { %v2317_v40 = vld [vmem:[%s2915_s24 + $0x60] sm:$0xff]  ;;  %v2316_v42 = vld [vmem:[%s2915_s24 + $0x58] sm:$0xff]  ;;  %v2315_v44 = vld [vmem:[%s2915_s24 + $0x50] sm:$0xff] }
  0x70   : > { %v2306_v45 = vld [vmem:[%s2915_s24 + $0x8] sm:$0xff]  ;;  %v2305_v48 = vld [vmem:[%s2915_s24] sm:$0xff]  ;;  %v2324_v62 = vld [vmem:[%s2908_s22 + $0x14] sm:$0xf0] }
  0x71   : > { %948 = vmatpush.bf16.msra.mxu0 %v2311_v35  ;;  %2552 = vmatpush.bf16.msra.mxu2 %v2311_v35  ;;  %v2314_v46 = vld [vmem:[%s2915_s24 + $0x48] sm:$0xff]  ;;  %v2313_v51 = vld [vmem:[%s2915_s24 + $0x40] sm:$0xff]  ;;  %v2151_v63 = vld [vmem:[%s2908_s22 + $0x90] sm:$0xf]  ;;  %v2088_v5 = vor.u32 %v2324_v62, %v2087_v61 }
  0x72   : > { %1037 = vmatpush.bf16.msra.mxu1 %v2319_v36  ;;  %2560 = vmatpush.bf16.msra.mxu3 %v2319_v36  ;;  %v2340_v0 = vld [vmem:[%s2908_s22 + $0x94] sm:$0xf0]  ;;  %v2323_v1 = vld [vmem:[%s2908_s22 + $0x14] sm:$0xf]  ;;  %v2089_v2 = vld [vmem:[%s2908_s22 + $0x18] sm:$0xf0] }
  0x73   : > { %v2339_v3 = vld [vmem:[%s2908_s22 + $0x94] sm:$0xf]  ;;  %v2153_v4 = vld [vmem:[%s2908_s22 + $0x98] sm:$0xf0]  ;;  %v2152_v6 = vor.u32 %v2340_v0, %v2151_v63  ;;  %v2092_v7 = vor.u32 %v2323_v1, %v2089_v2  ;;  %v2095_v9 = vld [vmem:[%s2908_s22 + $0x20] sm:$0xf] }
  0x74   : > { %v2156_v8 = vor.u32 %v2339_v3, %v2153_v4  ;;  %v2326_v10 = vld [vmem:[%s2908_s22 + $0x24] sm:$0xf0]  ;;  %v2159_v11 = vld [vmem:[%s2908_s22 + $0xa0] sm:$0xf]  ;;  %v2325_v13 = vld [vmem:[%s2908_s22 + $0x24] sm:$0xf] }
  0x75   : > { %949 = vmatpush.bf16.msra.mxu0 %v2310_v37  ;;  %2553 = vmatpush.bf16.msra.mxu2 %v2310_v37  ;;  %v2342_v12 = vld [vmem:[%s2908_s22 + $0xa4] sm:$0xf0]  ;;  %v2097_v14 = vld [vmem:[%s2908_s22 + $0x28] sm:$0xf0]  ;;  %v2341_v15 = vld [vmem:[%s2908_s22 + $0xa4] sm:$0xf]  ;;  %v2096_v17 = vor.u32 %v2326_v10, %v2095_v9 }
  0x76   : > { %1038 = vmatpush.bf16.msra.mxu1 %v2318_v38  ;;  %2561 = vmatpush.bf16.msra.mxu3 %v2318_v38  ;;  %v2161_v16 = vld [vmem:[%s2908_s22 + $0xa8] sm:$0xf0]  ;;  %v2160_v18 = vor.u32 %v2342_v12, %v2159_v11  ;;  %v2100_v19 = vor.u32 %v2325_v13, %v2097_v14  ;;  %v2103_v21 = vld [vmem:[%s2908_s22 + $0x30] sm:$0xf]  ;;  %v2328_v22 = vld [vmem:[%s2908_s22 + $0x34] sm:$0xf0] }
  0x77   : > { %v2164_v20 = vor.u32 %v2341_v15, %v2161_v16  ;;  %v2167_v23 = vld [vmem:[%s2908_s22 + $0xb0] sm:$0xf]  ;;  %v2344_v24 = vld [vmem:[%s2908_s22 + $0xb4] sm:$0xf0]  ;;  %v2327_v25 = vld [vmem:[%s2908_s22 + $0x34] sm:$0xf]  ;;  %v2104_v29 = vor.u32 %v2328_v22, %v2103_v21 }
  0x78   : > { %v2105_v26 = vld [vmem:[%s2908_s22 + $0x38] sm:$0xf0]  ;;  %v2343_v27 = vld [vmem:[%s2908_s22 + $0xb4] sm:$0xf]  ;;  %v2168_v30 = vor.u32 %v2344_v24, %v2167_v23  ;;  %v2111_v33 = vld [vmem:[%s2908_s22 + $0x40] sm:$0xf] }
  0x79   : > { %950 = vmatpush.bf16.msra.mxu0 %v2309_v39  ;;  %2554 = vmatpush.bf16.msra.mxu2 %v2309_v39  ;;  %v2169_v28 = vld [vmem:[%s2908_s22 + $0xb8] sm:$0xf0]  ;;  %v2108_v31 = vor.u32 %v2327_v25, %v2105_v26  ;;  %v2330_v34 = vld [vmem:[%s2908_s22 + $0x44] sm:$0xf0]  ;;  %v2175_v35 = vld [vmem:[%s2908_s22 + $0xc0] sm:$0xf] }
  0x7a   : > { %1039 = vmatpush.bf16.msra.mxu1 %v2317_v40  ;;  %2562 = vmatpush.bf16.msra.mxu3 %v2317_v40  ;;  %v2172_v32 = vor.u32 %v2343_v27, %v2169_v28  ;;  %v2346_v36 = vld [vmem:[%s2908_s22 + $0xc4] sm:$0xf0]  ;;  %v2329_v37 = vld [vmem:[%s2908_s22 + $0x44] sm:$0xf]  ;;  %v2113_v38 = vld [vmem:[%s2908_s22 + $0x48] sm:$0xf0] }
  0x7b   : > { %v2345_v39 = vld [vmem:[%s2908_s22 + $0xc4] sm:$0xf]  ;;  %v2177_v40 = vld [vmem:[%s2908_s22 + $0xc8] sm:$0xf0]  ;;  %v2183_v47 = vld [vmem:[%s2908_s22 + $0xd0] sm:$0xf] }
  0x7c   : > { %v2331_v49 = vld [vmem:[%s2908_s22 + $0x54] sm:$0xf]  ;;  %v2121_v50 = vld [vmem:[%s2908_s22 + $0x58] sm:$0xf0]  ;;  %v2333_v61 = vld [vmem:[%s2908_s22 + $0x64] sm:$0xf] }
  0x7d   : > { %951 = vmatpush.bf16.msra.mxu0 %v2308_v41  ;;  %2555 = vmatpush.bf16.msra.mxu2 %v2308_v41  ;;  %v2112_v41 = vor.u32 %v2330_v34, %v2111_v33  ;;  %v2185_v52 = vld [vmem:[%s2908_s22 + $0xd8] sm:$0xf0]  ;;  %v2124_v55 = vor.u32 %v2331_v49, %v2121_v50  ;;  %v2129_v62 = vld [vmem:[%s2908_s22 + $0x68] sm:$0xf0]  ;;  %v2349_v63 = vld [vmem:[%s2908_s22 + $0xe4] sm:$0xf] }
  0x7e   : > { %1040 = vmatpush.bf16.msra.mxu1 %v2316_v42  ;;  %2563 = vmatpush.bf16.msra.mxu3 %v2316_v42  ;;  %v2176_v42 = vor.u32 %v2346_v36, %v2175_v35  ;;  %v2193_v0 = vld [vmem:[%s2908_s22 + $0xe8] sm:$0xf0]  ;;  %v2132_v3 = vor.u32 %v2333_v61, %v2129_v62  ;;  %v2335_v9 = vld [vmem:[%s2908_s22 + $0x74] sm:$0xf]  ;;  %v2137_v10 = vld [vmem:[%s2908_s22 + $0x78] sm:$0xf0] }
  0x7f   : > { %v2196_v4 = vor.u32 %v2349_v63, %v2193_v0  ;;  %v2351_v11 = vld [vmem:[%s2908_s22 + $0xf4] sm:$0xf]  ;;  %v2201_v12 = vld [vmem:[%s2908_s22 + $0xf8] sm:$0xf0]  ;;  %v2140_v15 = vor.u32 %v2335_v9, %v2137_v10  ;;  %v628_v27 = vld [vmem:[#allocation2] sm:$0xff] }
  0x80   : > { %v2204_v16 = vor.u32 %v2351_v11, %v2201_v12  ;;  %v643_v23 = vld [vmem:[#allocation2 + $0x38] sm:$0xff]  ;;  %v647_v63 = vld [vmem:[#allocation2 + $0xe0] sm:$0xff]  ;;  %v648_v9 = vld [vmem:[#allocation2 + $0x90] sm:$0xff] }
  0x81   : > { %952 = vmatpush.bf16.msra.mxu0 %v2307_v43  ;;  %2556 = vmatpush.bf16.msra.mxu2 %v2307_v43  ;;  %v2116_v43 = vor.u32 %v2329_v37, %v2113_v38  ;;  %v644_v33 = vld [vmem:[#allocation2 + $0x58] sm:$0xff] }
  0x82   : > { %1041 = vmatpush.bf16.msra.mxu1 %v2315_v44  ;;  %2564 = vmatpush.bf16.msra.mxu3 %v2315_v44  ;;  %v2180_v44 = vor.u32 %v2345_v39, %v2177_v40  ;;  %v629_v37 = vld [vmem:[#allocation2 + $0xd8] sm:$0xff] }
  0x85   : > { %953 = vmatpush.bf16.msra.mxu0 %v2306_v45  ;;  %2557 = vmatpush.bf16.msra.mxu2 %v2306_v45  ;;  %v2119_v45 = vld [vmem:[%s2908_s22 + $0x50] sm:$0xf] }
  0x86   : > { %1042 = vmatpush.bf16.msra.mxu1 %v2314_v46  ;;  %2565 = vmatpush.bf16.msra.mxu3 %v2314_v46  ;;  %v2332_v46 = vld [vmem:[%s2908_s22 + $0x54] sm:$0xf0] }
  0x87   : > { %v2120_v53 = vor.u32 %v2332_v46, %v2119_v45 }
  0x89   : > { %954 = vmatpush.bf16.msra.mxu0 %v2305_v48  ;;  %2558 = vmatpush.bf16.msra.mxu2 %v2305_v48  ;;  %v2348_v48 = vld [vmem:[%s2908_s22 + $0xd4] sm:$0xf0] }
  0x8a   : > { %1043 = vmatpush.bf16.msra.mxu1 %v2313_v51  ;;  %2566 = vmatpush.bf16.msra.mxu3 %v2313_v51  ;;  %v2347_v51 = vld [vmem:[%s2908_s22 + $0xd4] sm:$0xf]  ;;  %v2184_v54 = vor.u32 %v2348_v48, %v2183_v47  ;;  %v630_v47 = vld [vmem:[#allocation2 + $0x18] sm:$0xff] }
  0x8b   : > { %v2188_v56 = vor.u32 %v2347_v51, %v2185_v52 }
  0x8c   : > { %955 = vmatmul.bf16.vlgmr.msra.gmra.mxu0 %v2080_v57  ;;  %995 = vmatmul.bf16.vlgmr.msra.gmra.mxu2 %v2144_v58  ;;  %v2127_v57 = vld [vmem:[%s2908_s22 + $0x60] sm:$0xf]  ;;  %v2334_v58 = vld [vmem:[%s2908_s22 + $0x64] sm:$0xf0] }
  0x8d   : > { %1044 = vmatmul.bf16.vlgmr.msra.gmra.mxu1 %v2084_v59  ;;  %1084 = vmatmul.bf16.vlgmr.msra.gmra.mxu3 %v2148_v60  ;;  %v2191_v59 = vld [vmem:[%s2908_s22 + $0xe0] sm:$0xf]  ;;  %v2350_v60 = vld [vmem:[%s2908_s22 + $0xe4] sm:$0xf0]  ;;  %v2128_v1 = vor.u32 %v2334_v58, %v2127_v57  ;;  %v631_v57 = vld [vmem:[#allocation2 + $0x50] sm:$0xff] }
  0x8e   : > { %v2192_v2 = vor.u32 %v2350_v60, %v2191_v59 }
  0x9c   : > { %960 = vmatmul.bf16.gmra.mxu0 %v2088_v5  ;;  %1000 = vmatmul.bf16.gmra.mxu2 %v2152_v6  ;;  %v2135_v5 = vld [vmem:[%s2908_s22 + $0x70] sm:$0xf]  ;;  %v2336_v6 = vld [vmem:[%s2908_s22 + $0x74] sm:$0xf0] }
  0x9d   : > { %1049 = vmatmul.bf16.gmra.mxu1 %v2092_v7  ;;  %1089 = vmatmul.bf16.gmra.mxu3 %v2156_v8  ;;  %v2199_v7 = vld [vmem:[%s2908_s22 + $0xf0] sm:$0xf]  ;;  %v2352_v8 = vld [vmem:[%s2908_s22 + $0xf4] sm:$0xf0]  ;;  %v2136_v13 = vor.u32 %v2336_v6, %v2135_v5 }
  0x9e   : > { %v2200_v14 = vor.u32 %v2352_v8, %v2199_v7 }
  0xac   : > { %965 = vmatmul.bf16.gmra.mxu0 %v2096_v17  ;;  %1005 = vmatmul.bf16.gmra.mxu2 %v2160_v18  ;;  %v627_v18 = vld [vmem:[#allocation2 + $0xb0] sm:$0xff] }
  0xad   : > { %1054 = vmatmul.bf16.gmra.mxu1 %v2100_v19  ;;  %1094 = vmatmul.bf16.gmra.mxu3 %v2164_v20 }
  0xbc   : > { %970 = vmatmul.bf16.gmra.mxu0 %v2104_v29  ;;  %1010 = vmatmul.bf16.gmra.mxu2 %v2168_v30 }
  0xbd   : > { %1059 = vmatmul.bf16.gmra.mxu1 %v2108_v31  ;;  %1099 = vmatmul.bf16.gmra.mxu3 %v2172_v32 }
  0xcc   : > { %975 = vmatmul.bf16.gmra.mxu0 %v2112_v41  ;;  %1015 = vmatmul.bf16.gmra.mxu2 %v2176_v42 }
  0xcd   : > { %1064 = vmatmul.bf16.gmra.mxu1 %v2116_v43  ;;  %1104 = vmatmul.bf16.gmra.mxu3 %v2180_v44  ;;  %v645_v43 = vld [vmem:[#allocation2 + $0x40] sm:$0xff] }
  0xdc   : > { %980 = vmatmul.bf16.gmra.mxu0 %v2120_v53  ;;  %1020 = vmatmul.bf16.gmra.mxu2 %v2184_v54  ;;  %v646_v53 = vld [vmem:[#allocation2 + $0xc8] sm:$0xff] }
  0xdd   : > { %1069 = vmatmul.bf16.gmra.mxu1 %v2124_v55  ;;  %1109 = vmatmul.bf16.gmra.mxu3 %v2188_v56 }
  0xec   : > { %985 = vmatmul.bf16.gmra.mxu0 %v2128_v1  ;;  %1025 = vmatmul.bf16.gmra.mxu2 %v2192_v2 }
  0xed   : > { %1074 = vmatmul.bf16.gmra.mxu1 %v2132_v3  ;;  %1114 = vmatmul.bf16.gmra.mxu3 %v2196_v4  ;;  %v632_v3 = vld [vmem:[#allocation2 + $0x68] sm:$0xff] }
  0xfc   : > { %990 = vmatmul.bf16.gmra.mxu0 %v2136_v13  ;;  %1030 = vmatmul.bf16.gmra.mxu2 %v2200_v14  ;;  %v633_v13 = vld [vmem:[#allocation2 + $0x30] sm:$0xff] }
  0xfd   : > { %1079 = vmatmul.bf16.gmra.mxu1 %v2140_v15  ;;  %1119 = vmatmul.bf16.gmra.mxu3 %v2204_v16 }
 0x109   : > { %v956_v17 = vpop.f32.mrf.mxu0 }
 0x10a   : > { %v1045_v19 = vpop.f32.mrf.mxu1 }
 0x10b   : > { %v1046_v20 = vadd.f32 %v1045_v19, %v956_v17  ;;  %v649_v19 = vld [vmem:[#allocation2 + $0x70] sm:$0xff] }
 0x10d   : > { %v1125_v21 = vadd.f32 %v1046_v20, %v627_v18 }
 0x10f   : > { %1157 = vst [vmem:[#allocation2 + $0xb0] sm:$0xff] %v1125_v21  ;;  %v996_v22 = vpop.f32.mrf.mxu2 }
 0x110   : > { %v1085_v24 = vpop.f32.mrf.mxu3 }
 0x111   : > { %v1086_v25 = vadd.f32 %v1085_v24, %v996_v22  ;;  %v958_v26 = vpop.f32.mrf.mxu0 }
 0x112   : > { %v1047_v28 = vpop.f32.mrf.mxu1 }
 0x113   : > { %v1141_v29 = vadd.f32 %v1086_v25, %v643_v23  ;;  %v1048_v30 = vadd.f32 %v1047_v28, %v958_v26  ;;  %v634_v23 = vld [vmem:[#allocation2 + $0x48] sm:$0xff] }
 0x115   : > { %1173 = vst [vmem:[#allocation2 + $0x38] sm:$0xff] %v1141_v29  ;;  %v1126_v31 = vadd.f32 %v1048_v30, %v628_v27  ;;  %v650_v29 = vld [vmem:[#allocation2 + $0xc0] sm:$0xff] }
 0x117   : > { %1158 = vst [vmem:[#allocation2] sm:$0xff] %v1126_v31  ;;  %v998_v32 = vpop.f32.mrf.mxu2 }
 0x118   : > { %v1087_v34 = vpop.f32.mrf.mxu3 }
 0x119   : > { %v1088_v35 = vadd.f32 %v1087_v34, %v998_v32  ;;  %v961_v36 = vpop.f32.mrf.mxu0 }
 0x11a   : > { %v1050_v38 = vpop.f32.mrf.mxu1 }
 0x11b   : > { %v1142_v39 = vadd.f32 %v1088_v35, %v644_v33  ;;  %v1051_v40 = vadd.f32 %v1050_v38, %v961_v36  ;;  %v635_v33 = vld [vmem:[#allocation2 + $0x80] sm:$0xff] }
 0x11d   : > { %1174 = vst [vmem:[#allocation2 + $0x58] sm:$0xff] %v1142_v39  ;;  %v1127_v41 = vadd.f32 %v1051_v40, %v629_v37  ;;  %v651_v39 = vld [vmem:[#allocation2 + $0xa8] sm:$0xff] }
 0x11f   : > { %1159 = vst [vmem:[#allocation2 + $0xd8] sm:$0xff] %v1127_v41  ;;  %v1001_v42 = vpop.f32.mrf.mxu2 }
 0x120   : > { %v1090_v44 = vpop.f32.mrf.mxu3 }
 0x121   : > { %v1091_v45 = vadd.f32 %v1090_v44, %v1001_v42  ;;  %v963_v46 = vpop.f32.mrf.mxu0 }
 0x122   : > { %v1052_v48 = vpop.f32.mrf.mxu1 }
 0x123   : > { %v1143_v49 = vadd.f32 %v1091_v45, %v645_v43  ;;  %v1053_v50 = vadd.f32 %v1052_v48, %v963_v46  ;;  %v636_v43 = vld [vmem:[#allocation2 + $0x88] sm:$0xff] }
 0x125   : > { %1175 = vst [vmem:[#allocation2 + $0x40] sm:$0xff] %v1143_v49  ;;  %v1128_v51 = vadd.f32 %v1053_v50, %v630_v47  ;;  %v652_v49 = vld [vmem:[#allocation2 + $0xd0] sm:$0xff] }
 0x127   : > { %1160 = vst [vmem:[#allocation2 + $0x18] sm:$0xff] %v1128_v51  ;;  %v1003_v52 = vpop.f32.mrf.mxu2 }
 0x128   : > { %v1092_v54 = vpop.f32.mrf.mxu3 }
 0x129   : > { %v1093_v55 = vadd.f32 %v1092_v54, %v1003_v52  ;;  %v966_v56 = vpop.f32.mrf.mxu0 }
 0x12a   : > { %v1055_v58 = vpop.f32.mrf.mxu1 }
 0x12b   : > { %v1144_v59 = vadd.f32 %v1093_v55, %v646_v53  ;;  %v1056_v60 = vadd.f32 %v1055_v58, %v966_v56  ;;  %v637_v53 = vld [vmem:[#allocation2 + $0xe8] sm:$0xff] }
 0x12d   : > { %1176 = vst [vmem:[#allocation2 + $0xc8] sm:$0xff] %v1144_v59  ;;  %v1129_v61 = vadd.f32 %v1056_v60, %v631_v57  ;;  %v653_v59 = vld [vmem:[#allocation2 + $0x10] sm:$0xff] }
 0x12f   : > { %1161 = vst [vmem:[#allocation2 + $0x50] sm:$0xff] %v1129_v61  ;;  %v1006_v62 = vpop.f32.mrf.mxu2 }
 0x130   : > { %v1095_v0 = vpop.f32.mrf.mxu3 }
 0x131   : > { %v1096_v1 = vadd.f32 %v1095_v0, %v1006_v62  ;;  %v968_v2 = vpop.f32.mrf.mxu0 }
 0x132   : > { %v1057_v4 = vpop.f32.mrf.mxu1 }
 0x133   : > { %v1145_v5 = vadd.f32 %v1096_v1, %v647_v63  ;;  %v1058_v6 = vadd.f32 %v1057_v4, %v968_v2  ;;  %v638_v63 = vld [vmem:[#allocation2 + $0xb8] sm:$0xff] }
 0x135   : > { %1177 = vst [vmem:[#allocation2 + $0xe0] sm:$0xff] %v1145_v5  ;;  %v1130_v7 = vadd.f32 %v1058_v6, %v632_v3  ;;  %v654_v5 = vld [vmem:[#allocation2 + $0x28] sm:$0xff] }
 0x137   : > { %1162 = vst [vmem:[#allocation2 + $0x68] sm:$0xff] %v1130_v7  ;;  %v1008_v8 = vpop.f32.mrf.mxu2 }
 0x138   : > { %v1097_v10 = vpop.f32.mrf.mxu3 }
 0x139   : > { %v1098_v11 = vadd.f32 %v1097_v10, %v1008_v8  ;;  %v971_v12 = vpop.f32.mrf.mxu0 }
 0x13a   : > { %v1060_v14 = vpop.f32.mrf.mxu1 }
 0x13b   : > { %v1146_v15 = vadd.f32 %v1098_v11, %v648_v9  ;;  %v1061_v16 = vadd.f32 %v1060_v14, %v971_v12  ;;  %v639_v9 = vld [vmem:[#allocation2 + $0x60] sm:$0xff] }
 0x13d   : > { %1178 = vst [vmem:[#allocation2 + $0x90] sm:$0xff] %v1146_v15  ;;  %v1131_v17 = vadd.f32 %v1061_v16, %v633_v13  ;;  %v655_v15 = vld [vmem:[#allocation2 + $0xa0] sm:$0xff] }
 0x13f   : > { %1163 = vst [vmem:[#allocation2 + $0x30] sm:$0xff] %v1131_v17  ;;  %v1011_v18 = vpop.f32.mrf.mxu2 }
 0x140   : > { %v1100_v20 = vpop.f32.mrf.mxu3 }
 0x141   : > { %v1101_v21 = vadd.f32 %v1100_v20, %v1011_v18  ;;  %v973_v22 = vpop.f32.mrf.mxu0 }
 0x142   : > { %v1062_v24 = vpop.f32.mrf.mxu1 }
 0x143   : > { %v1147_v25 = vadd.f32 %v1101_v21, %v649_v19  ;;  %v1063_v26 = vadd.f32 %v1062_v24, %v973_v22  ;;  %v640_v19 = vld [vmem:[#allocation2 + $0xf0] sm:$0xff] }
 0x145   : > { %1179 = vst [vmem:[#allocation2 + $0x70] sm:$0xff] %v1147_v25  ;;  %v1132_v27 = vadd.f32 %v1063_v26, %v634_v23  ;;  %v656_v25 = vld [vmem:[#allocation2 + $0xf8] sm:$0xff] }
 0x147   : > { %1164 = vst [vmem:[#allocation2 + $0x48] sm:$0xff] %v1132_v27  ;;  %v1013_v28 = vpop.f32.mrf.mxu2 }
 0x148   : > { %v1102_v30 = vpop.f32.mrf.mxu3 }
 0x149   : > { %v1103_v31 = vadd.f32 %v1102_v30, %v1013_v28  ;;  %v976_v32 = vpop.f32.mrf.mxu0 }
 0x14a   : > { %v1065_v34 = vpop.f32.mrf.mxu1 }
 0x14b   : > { %v1148_v35 = vadd.f32 %v1103_v31, %v650_v29  ;;  %v1066_v36 = vadd.f32 %v1065_v34, %v976_v32  ;;  %v641_v29 = vld [vmem:[#allocation2 + $0x8] sm:$0xff] }
 0x14d   : > { %1180 = vst [vmem:[#allocation2 + $0xc0] sm:$0xff] %v1148_v35  ;;  %v1133_v37 = vadd.f32 %v1066_v36, %v635_v33  ;;  %v657_v35 = vld [vmem:[#allocation2 + $0x20] sm:$0xff] }
 0x14f   : > { %1165 = vst [vmem:[#allocation2 + $0x80] sm:$0xff] %v1133_v37  ;;  %v1016_v38 = vpop.f32.mrf.mxu2 }
 0x150   : > { %v1105_v40 = vpop.f32.mrf.mxu3 }
 0x151   : > { %v1106_v41 = vadd.f32 %v1105_v40, %v1016_v38  ;;  %v978_v42 = vpop.f32.mrf.mxu0 }
 0x152   : > { %v1067_v44 = vpop.f32.mrf.mxu1 }
 0x153   : > { %v1149_v45 = vadd.f32 %v1106_v41, %v651_v39  ;;  %v1068_v46 = vadd.f32 %v1067_v44, %v978_v42  ;;  %v642_v39 = vld [vmem:[#allocation2 + $0x78] sm:$0xff] }
 0x155   : > { %1181 = vst [vmem:[#allocation2 + $0xa8] sm:$0xff] %v1149_v45  ;;  %v1134_v47 = vadd.f32 %v1068_v46, %v636_v43  ;;  %v658_v45 = vld [vmem:[#allocation2 + $0x98] sm:$0xff] }
 0x157   : > { %1166 = vst [vmem:[#allocation2 + $0x88] sm:$0xff] %v1134_v47  ;;  %v1018_v48 = vpop.f32.mrf.mxu2 }
 0x158   : > { %v1107_v50 = vpop.f32.mrf.mxu3 }
 0x159   : > { %v1108_v51 = vadd.f32 %v1107_v50, %v1018_v48  ;;  %v981_v52 = vpop.f32.mrf.mxu0 }
 0x15a   : > { %v1070_v54 = vpop.f32.mrf.mxu1 }
 0x15b   : > { %v1150_v55 = vadd.f32 %v1108_v51, %v652_v49  ;;  %v1071_v56 = vadd.f32 %v1070_v54, %v981_v52 }
 0x15d   : > { %1182 = vst [vmem:[#allocation2 + $0xd0] sm:$0xff] %v1150_v55  ;;  %v1135_v57 = vadd.f32 %v1071_v56, %v637_v53 }
 0x15f   : > { %1167 = vst [vmem:[#allocation2 + $0xe8] sm:$0xff] %v1135_v57  ;;  %v1021_v58 = vpop.f32.mrf.mxu2 }
 0x160   : > { %v1110_v60 = vpop.f32.mrf.mxu3 }
 0x161   : > { %v1111_v61 = vadd.f32 %v1110_v60, %v1021_v58  ;;  %v983_v62 = vpop.f32.mrf.mxu0 }
 0x162   : > { %v1072_v0 = vpop.f32.mrf.mxu1 }
 0x163   : > { %v1151_v1 = vadd.f32 %v1111_v61, %v653_v59  ;;  %v1073_v2 = vadd.f32 %v1072_v0, %v983_v62 }
 0x165   : > { %1183 = vst [vmem:[#allocation2 + $0x10] sm:$0xff] %v1151_v1  ;;  %v1136_v3 = vadd.f32 %v1073_v2, %v638_v63 }
 0x167   : > { %1168 = vst [vmem:[#allocation2 + $0xb8] sm:$0xff] %v1136_v3  ;;  %v1023_v4 = vpop.f32.mrf.mxu2 }
 0x168   : > { %v1112_v6 = vpop.f32.mrf.mxu3 }
 0x169   : > { %v1113_v7 = vadd.f32 %v1112_v6, %v1023_v4  ;;  %v986_v8 = vpop.f32.mrf.mxu0 }
 0x16a   : > { %v1075_v10 = vpop.f32.mrf.mxu1 }
 0x16b   : > { %v1152_v11 = vadd.f32 %v1113_v7, %v654_v5  ;;  %v1076_v12 = vadd.f32 %v1075_v10, %v986_v8 }
 0x16d   : > { %1184 = vst [vmem:[#allocation2 + $0x28] sm:$0xff] %v1152_v11  ;;  %v1137_v13 = vadd.f32 %v1076_v12, %v639_v9 }
 0x16f   : > { %1169 = vst [vmem:[#allocation2 + $0x60] sm:$0xff] %v1137_v13  ;;  %v1026_v14 = vpop.f32.mrf.mxu2 }
 0x170   : > { %v1115_v16 = vpop.f32.mrf.mxu3 }
 0x171   : > { %v1116_v17 = vadd.f32 %v1115_v16, %v1026_v14  ;;  %v988_v18 = vpop.f32.mrf.mxu0 }
 0x172   : > { %v1077_v20 = vpop.f32.mrf.mxu1 }
 0x173   : > { %v1153_v21 = vadd.f32 %v1116_v17, %v655_v15  ;;  %v1078_v22 = vadd.f32 %v1077_v20, %v988_v18 }
 0x175   : > { %1185 = vst [vmem:[#allocation2 + $0xa0] sm:$0xff] %v1153_v21  ;;  %v1138_v23 = vadd.f32 %v1078_v22, %v640_v19 }
 0x177   : > { %1170 = vst [vmem:[#allocation2 + $0xf0] sm:$0xff] %v1138_v23  ;;  %v1028_v24 = vpop.f32.mrf.mxu2 }
 0x178   : > { %v1117_v26 = vpop.f32.mrf.mxu3 }
 0x179   : > { %v1118_v27 = vadd.f32 %v1117_v26, %v1028_v24  ;;  %v991_v28 = vpop.f32.mrf.mxu0 }
 0x17a   : > { %v1080_v30 = vpop.f32.mrf.mxu1 }
 0x17b   : > { %v1154_v31 = vadd.f32 %v1118_v27, %v656_v25  ;;  %v1081_v32 = vadd.f32 %v1080_v30, %v991_v28 }
 0x17d   : > { %1186 = vst [vmem:[#allocation2 + $0xf8] sm:$0xff] %v1154_v31  ;;  %v1139_v33 = vadd.f32 %v1081_v32, %v641_v29 }
 0x17f   : > { %1171 = vst [vmem:[#allocation2 + $0x8] sm:$0xff] %v1139_v33  ;;  %v1031_v34 = vpop.f32.mrf.mxu2 }
 0x180   : > { %v1120_v36 = vpop.f32.mrf.mxu3 }
 0x181   : > { %v1121_v37 = vadd.f32 %v1120_v36, %v1031_v34  ;;  %v993_v38 = vpop.f32.mrf.mxu0 }
 0x182   : > { %v1082_v40 = vpop.f32.mrf.mxu1 }
 0x183   : > { %v1155_v41 = vadd.f32 %v1121_v37, %v657_v35  ;;  %v1083_v42 = vadd.f32 %v1082_v40, %v993_v38 }
 0x185   : > { %1187 = vst [vmem:[#allocation2 + $0x20] sm:$0xff] %v1155_v41  ;;  %v1140_v43 = vadd.f32 %v1083_v42, %v642_v39 }
 0x187   : > { %1172 = vst [vmem:[#allocation2 + $0x78] sm:$0xff] %v1140_v43  ;;  %v1033_v44 = vpop.f32.mrf.mxu2 }
 0x188   : > { %v1122_v46 = vpop.f32.mrf.mxu3 }
 0x189   : > { %v1123_v47 = vadd.f32 %v1122_v46, %v1033_v44  ;;  %1192 = sbr.rel (%p2269_p12) target bundleno = 630 (0x276), region = 102 }
 0x18b   : > { %v1156_v48 = vadd.f32 %v1123_v47, %v658_v45 }
 0x18d   : > { %1188 = vst [vmem:[#allocation2 + $0x98] sm:$0xff] %v1156_v48 }
 0x18e   : > { %v2360_v49 = vld [vmem:[%s3360_s2 + $0x38] sm:$0xff]  ;;  %v2359_v50 = vld [vmem:[%s3360_s2 + $0x30] sm:$0xff]  ;;  %v1194_v52 = vld [vmem:[#allocation2] sm:$0xff] }
 0x18f   : > { %1621 = vmatpush.bf16.msra.mxu0 %v2360_v49  ;;  %2567 = vmatpush.bf16.msra.mxu1 %v2360_v49  ;;  %v1193_v51 = vld [vmem:[#allocation2 + $0xb0] sm:$0xff]  ;;  %v3007_v53 = vld [vmem:[%s3365_s7] ss:$0 sm:$0xff]  ;;  %vm1226_vm1 = vcmp.ge.f32.partialorder %v1194_v52, 0.0  ;;  %v2358_v56 = vld [vmem:[%s3360_s2 + $0x28] sm:$0xff] }
 0x190   : > { %2568 = vmatpush.bf16.msra.mxu2 %v2360_v49  ;;  %2569 = vmatpush.bf16.msra.mxu3 %v2360_v49  ;;  %vm1225_vm0 = vcmp.ge.f32.partialorder %v1193_v51, 0.0  ;;  %v3012_v54 = vld [vmem:[%s3361_s3] ss:$0 sm:$0xff]  ;;  %v1261_v57 = vmul.f32 %v3007_v53, %v1193_v51  ;;  %v1262_v58 = vmul.f32 %v3007_v53, %v1194_v52  ;;  %v1202_v59 = vld [vmem:[#allocation2 + $0x88] sm:$0xff]  ;;  %v1209_v63 = vld [vmem:[#allocation2 + $0x38] sm:$0xff] }
 0x191   : > { %v1201_v55 = vld [vmem:[#allocation2 + $0x80] sm:$0xff]  ;;  %vm1234_vm3 = vcmp.ge.f32.partialorder %v1202_v59, 0.0  ;;  %v1270_v62 = vmul.f32 %v3007_v53, %v1202_v59  ;;  %v1210_v0 = vld [vmem:[#allocation2 + $0x58] sm:$0xff]  ;;  %vm1241_vm4 = vcmp.ge.f32.partialorder %v1209_v63, 0.0  ;;  %v1217_v8 = vld [vmem:[#allocation2 + $0xa8] sm:$0xff]  ;;  %v1277_v10 = vmul.f32 %v3007_v53, %v1209_v63 }
 0x192   : > { %vm1233_vm2 = vcmp.ge.f32.partialorder %v1201_v55, 0.0  ;;  %v1269_v60 = vmul.f32 %v3007_v53, %v1201_v55  ;;  %v3023_v61 = vld [vmem:[%s3362_s4] ss:$0 sm:$0xff]  ;;  %v1293_v1 = vsel %vm1225_vm0, %v1193_v51, %v1261_v57  ;;  %v1294_v2 = vsel %vm1226_vm1, %v1194_v52, %v1262_v58  ;;  %v1218_v23 = vld [vmem:[#allocation2 + $0xd0] sm:$0xff]  ;;  %v1195_v28 = vld [vmem:[#allocation2 + $0xd8] sm:$0xff] }
 0x193   : > { %1622 = vmatpush.bf16.msra.mxu0 %v2359_v50  ;;  %2570 = vmatpush.bf16.msra.mxu1 %v2359_v50  ;;  %v1329_v4 = vmul.f32 %v3012_v54, %v1293_v1  ;;  %v1330_v5 = vmul.f32 %v3012_v54, %v1294_v2  ;;  %v1302_v6 = vsel %vm1234_vm3, %v1202_v59, %v1270_v62  ;;  %vm1242_vm5 = vcmp.ge.f32.partialorder %v1210_v0, 0.0  ;;  %v2357_v12 = vld [vmem:[%s3360_s2 + $0x20] sm:$0xff]  ;;  %v2356_v29 = vld [vmem:[%s3360_s2 + $0x18] sm:$0xff]  ;;  %v1203_v44 = vld [vmem:[#allocation2 + $0xe8] sm:$0xff] }
 0x194   : > { %2571 = vmatpush.bf16.msra.mxu2 %v2359_v50  ;;  %2572 = vmatpush.bf16.msra.mxu3 %v2359_v50  ;;  %v1301_v3 = vsel %vm1233_vm2, %v1201_v55, %v1269_v60  ;;  %v1338_v9 = vmul.f32 %v3012_v54, %v1302_v6  ;;  %v1278_v11 = vmul.f32 %v3007_v53, %v1210_v0  ;;  %vm1249_vm6 = vcmp.ge.f32.partialorder %v1217_v8, 0.0  ;;  %v1196_v37 = vld [vmem:[#allocation2 + $0x18] sm:$0xff]  ;;  %v2355_v45 = vld [vmem:[%s3360_s2 + $0x10] sm:$0xff]  ;;  %v1211_v62 = vld [vmem:[#allocation2 + $0x40] sm:$0xff] }
 0x195   : > { %v1337_v7 = vmul.f32 %v3012_v54, %v1301_v3  ;;  %v1365_v13 = vadd.f32 %v3023_v61, %v1329_v4  ;;  %v1366_v14 = vadd.f32 %v3023_v61, %v1330_v5  ;;  %v1309_v17 = vsel %vm1241_vm4, %v1209_v63, %v1277_v10  ;;  %v1204_v49 = vld [vmem:[#allocation2 + $0xb8] sm:$0xff]  ;;  %v2354_v63 = vld [vmem:[%s3360_s2 + $0x8] sm:$0xff] }
 0x196   : > { %v1374_v16 = vadd.f32 %v3023_v61, %v1338_v9  ;;  %v1310_v18 = vsel %vm1242_vm5, %v1210_v0, %v1278_v11  ;;  %v1345_v26 = vmul.f32 %v3012_v54, %v1309_v17  ;;  %v1285_v33 = vmul.f32 %v3007_v53, %v1217_v8  ;;  %v1212_v11 = vld [vmem:[#allocation2 + $0xc8] sm:$0xff]  ;;  %v2353_v17 = vld [vmem:[%s3360_s2] sm:$0xff] }
 0x197   : > { %1623 = vmatpush.bf16.msra.mxu0 %v2358_v56  ;;  %2573 = vmatpush.bf16.msra.mxu1 %v2358_v56  ;;  %v1373_v15 = vadd.f32 %v3023_v61, %v1337_v7  ;;  %v1397_v19 = vpack.c.bf16 %v1365_v13, %v1365_v13  ;;  %v1398_v20 = vpack.c.bf16 %v1366_v14, %v1366_v14  ;;  %vm1250_vm7 = vcmp.ge.f32.partialorder %v1218_v23, 0.0 }
 0x198   : > { %2574 = vmatpush.bf16.msra.mxu2 %v2358_v56  ;;  %2575 = vmatpush.bf16.msra.mxu3 %v2358_v56  ;;  %v2364_v21 = vpack.c.bf16 %v1366_v14, %v1365_v13  ;;  %v1406_v24 = vpack.c.bf16 %v1374_v16, %v1374_v16  ;;  %v1346_v27 = vmul.f32 %v3012_v54, %v1310_v18  ;;  %vm1227_vm8 = vcmp.ge.f32.partialorder %v1195_v28, 0.0 }
 0x199   : > { %v1405_v22 = vpack.c.bf16 %v1373_v15, %v1373_v15  ;;  %v2384_v25 = vpack.c.bf16 %v1374_v16, %v1373_v15  ;;  %v3048_v30 = vunpack.c.l.b16 %v1397_v19  ;;  %v3050_v31 = vunpack.c.l.b16 %v1398_v20  ;;  %v1219_v16 = vld [vmem:[#allocation2 + $0x10] sm:$0xff] }
 0x19a   : > { %2365 = vst [vmem:[%s2901_s29] sm:$0xff] %v2364_v21   ;;  %v3056_v34 = vunpack.c.l.b16 %v1406_v24  ;;  %v1381_v35 = vadd.f32 %v3023_v61, %v1345_v26  ;;  %v1382_v36 = vadd.f32 %v3023_v61, %v1346_v27  ;;  %v1286_v38 = vmul.f32 %v3007_v53, %v1218_v23  ;;  %v1220_v27 = vld [vmem:[#allocation2 + $0x28] sm:$0xff] }
 0x19b   : > { %1624 = vmatpush.bf16.msra.mxu0 %v2357_v12  ;;  %2576 = vmatpush.bf16.msra.mxu1 %v2357_v12  ;;  %v3052_v32 = vunpack.c.l.b16 %v1405_v22  ;;  %2524 = vst [vmem:[%s2901_s29 + $0x20] sm:$0xff] %v2384_v25   ;;  %v1317_v39 = vsel %vm1249_vm6, %v1217_v8, %v1285_v33  ;;  %v1541_v40 = vpack.c.b16 %v3050_v31, %v3048_v30  ;;  %vm1228_vm9 = vcmp.ge.f32.partialorder %v1196_v37, 0.0  ;;  %v1206_v31 = vld [vmem:[#allocation2 + $0xf0] sm:$0xff] }
 0x19c   : > { %2577 = vmatpush.bf16.msra.mxu2 %v2357_v12  ;;  %2578 = vmatpush.bf16.msra.mxu3 %v2357_v12  ;;  %v1413_v42 = vpack.c.bf16 %v1381_v35, %v1381_v35  ;;  %v2404_v43 = vpack.c.bf16 %v1382_v36, %v1381_v35  ;;  %v1318_v46 = vsel %vm1250_vm7, %v1218_v23, %v1286_v38  ;;  %vm1235_vm10 = vcmp.ge.f32.partialorder %v1203_v44, 0.0 }
 0x19d   : > { %v1545_v41 = vpack.c.b16 %v3056_v34, %v3052_v32  ;;  %v1353_v47 = vmul.f32 %v3012_v54, %v1317_v39  ;;  %v1263_v48 = vmul.f32 %v3007_v53, %v1195_v28  ;;  %v1414_v50 = vpack.c.bf16 %v1382_v36, %v1382_v36  ;;  %v1197_v36 = vld [vmem:[#allocation2 + $0x50] sm:$0xff] }
 0x19e   : > { %2528 = vst [vmem:[%s2901_s29 + $0x40] sm:$0xff] %v2404_v43   ;;  %v1354_v51 = vmul.f32 %v3012_v54, %v1318_v46  ;;  %v1264_v52 = vmul.f32 %v3007_v53, %v1196_v37  ;;  %v1271_v57 = vmul.f32 %v3007_v53, %v1203_v44  ;;  %vm1236_vm11 = vcmp.ge.f32.partialorder %v1204_v49, 0.0  ;;  %v1198_v43 = vld [vmem:[#allocation2 + $0x68] sm:$0xff] }
 0x19f   : > { %1625 = vmatpush.bf16.msra.mxu0 %v2356_v29  ;;  %2579 = vmatpush.bf16.msra.mxu1 %v2356_v29  ;;  %v1389_v55 = vadd.f32 %v3023_v61, %v1353_v47  ;;  %v1295_v56 = vsel %vm1227_vm8, %v1195_v28, %v1263_v48  ;;  %v3082_v0 = vunpack.c.l.b16 %v1413_v42  ;;  %v1272_v3 = vmul.f32 %v3007_v53, %v1204_v49 }
 0x1a0   : > { %2580 = vmatpush.bf16.msra.mxu2 %v2356_v29  ;;  %2581 = vmatpush.bf16.msra.mxu3 %v2356_v29  ;;  %v1390_v58 = vadd.f32 %v3023_v61, %v1354_v51  ;;  %v1296_v59 = vsel %vm1228_vm9, %v1196_v37, %v1264_v52  ;;  %v1331_v60 = vmul.f32 %v3012_v54, %v1295_v56  ;;  %v3086_v4 = vunpack.c.l.b16 %v1414_v50  ;;  %v1205_v50 = vld [vmem:[#allocation2 + $0x60] sm:$0xff] }
 0x1a1   : > { %v1421_v1 = vpack.c.bf16 %v1389_v55, %v1389_v55  ;;  %v1332_v2 = vmul.f32 %v3012_v54, %v1296_v59  ;;  %v1303_v9 = vsel %vm1235_vm10, %v1203_v44, %v1271_v57  ;;  %v1304_v10 = vsel %vm1236_vm11, %v1204_v49, %v1272_v3 }
 0x1a2   : > { %v1422_v5 = vpack.c.bf16 %v1390_v58, %v1390_v58  ;;  %v2424_v6 = vpack.c.bf16 %v1390_v58, %v1389_v55  ;;  %v1367_v7 = vadd.f32 %v3023_v61, %v1331_v60  ;;  %vm1243_vm12 = vcmp.ge.f32.partialorder %v1211_v62, 0.0 }
 0x1a3   : > { %1626 = vmatpush.bf16.msra.mxu0 %v2355_v45  ;;  %2582 = vmatpush.bf16.msra.mxu1 %v2355_v45  ;;  %v1368_v8 = vadd.f32 %v3023_v61, %v1332_v2  ;;  %v1533_v12 = vunpack.c.l.b16 %v1421_v1  ;;  %v1339_v14 = vmul.f32 %v3012_v54, %v1303_v9  ;;  %v1340_v15 = vmul.f32 %v3012_v54, %v1304_v10  ;;  %v1213_v2 = vld [vmem:[#allocation2 + $0xe0] sm:$0xff] }
 0x1a4   : > { %2583 = vmatpush.bf16.msra.mxu2 %v2355_v45  ;;  %2584 = vmatpush.bf16.msra.mxu3 %v2355_v45  ;;  %2532 = vst [vmem:[%s2901_s29 + $0x60] sm:$0xff] %v2424_v6   ;;  %v1534_v13 = vunpack.c.l.b16 %v1422_v5  ;;  %v1399_v18 = vpack.c.bf16 %v1367_v7, %v1367_v7  ;;  %v1279_v20 = vmul.f32 %v3007_v53, %v1211_v62  ;;  %vm1244_vm13 = vcmp.ge.f32.partialorder %v1212_v11, 0.0 }
 0x1a5   : > { %v2369_v19 = vpack.c.bf16 %v1368_v8, %v1367_v7  ;;  %v1400_v21 = vpack.c.bf16 %v1368_v8, %v1368_v8  ;;  %v1375_v22 = vadd.f32 %v3023_v61, %v1339_v14  ;;  %v1376_v23 = vadd.f32 %v3023_v61, %v1340_v15 }
 0x1a6   : > { %v1549_v24 = vpack.c.b16 %v3086_v4, %v3082_v0  ;;  %v1280_v25 = vmul.f32 %v3007_v53, %v1212_v11  ;;  %v1311_v26 = vsel %vm1243_vm12, %v1211_v62, %v1279_v20  ;;  %vm1251_vm14 = vcmp.ge.f32.partialorder %v1219_v16, 0.0 }
 0x1a7   : > { %1627 = vmatpush.bf16.msra.mxu0 %v2354_v63  ;;  %2585 = vmatpush.bf16.msra.mxu1 %v2354_v63  ;;  %2521 = vst [vmem:[%s2901_s29 + $0x8] sm:$0xff] %v2369_v19   ;;  %v1553_v28 = vpack.c.b16 %v1534_v13, %v1533_v12  ;;  %v1407_v29 = vpack.c.bf16 %v1375_v22, %v1375_v22  ;;  %v3107_v37 = vunpack.c.l.b16 %v1399_v18  ;;  %v3111_v44 = vunpack.c.l.b16 %v1400_v21 }
 0x1a8   : > { %2586 = vmatpush.bf16.msra.mxu2 %v2354_v63  ;;  %2587 = vmatpush.bf16.msra.mxu3 %v2354_v63  ;;  %v2389_v33 = vpack.c.bf16 %v1376_v23, %v1375_v22  ;;  %v1347_v35 = vmul.f32 %v3012_v54, %v1311_v26  ;;  %v1408_v38 = vpack.c.bf16 %v1376_v23, %v1376_v23  ;;  %vm1252_vm15 = vcmp.ge.f32.partialorder %v1220_v27, 0.0 }
 0x1a9   : > { %v1312_v39 = vsel %vm1244_vm13, %v1212_v11, %v1280_v25  ;;  %v1287_v42 = vmul.f32 %v3007_v53, %v1219_v16  ;;  %v1288_v47 = vmul.f32 %v3007_v53, %v1220_v27  ;;  %vm1229_vm0 = vcmp.ge.f32.partialorder %v1197_v36, 0.0  ;;  %v1214_v11 = vld [vmem:[#allocation2 + $0x90] sm:$0xff]  ;;  %v1221_v25 = vld [vmem:[#allocation2 + $0xa0] sm:$0xff] }
 0x1aa   : > { %2525 = vst [vmem:[%s2901_s29 + $0x28] sm:$0xff] %v2389_v33   ;;  %v1348_v45 = vmul.f32 %v3012_v54, %v1312_v39  ;;  %v1383_v46 = vadd.f32 %v3023_v61, %v1347_v35  ;;  %v1265_v49 = vmul.f32 %v3007_v53, %v1197_v36  ;;  %v3125_v51 = vunpack.c.l.b16 %v1407_v29  ;;  %v1222_v33 = vld [vmem:[#allocation2 + $0xf8] sm:$0xff]  ;;  %v1199_v39 = vld [vmem:[#allocation2 + $0x30] sm:$0xff] }
 0x1ab   : > { %1628 = vmatpush.bf16.msra.mxu0 %v2353_v17  ;;  %2588 = vmatpush.bf16.msra.mxu1 %v2353_v17  ;;  %v1319_v48 = vsel %vm1251_vm14, %v1219_v16, %v1287_v42  ;;  %vm1230_vm1 = vcmp.ge.f32.partialorder %v1198_v43, 0.0  ;;  %v3128_v56 = vunpack.c.l.b16 %v1408_v38  ;;  %v1320_v57 = vsel %vm1252_vm15, %v1220_v27, %v1288_v47 }
 0x1ac   : > { %2589 = vmatpush.bf16.msra.mxu2 %v2353_v17  ;;  %2590 = vmatpush.bf16.msra.mxu3 %v2353_v17  ;;  %v1384_v52 = vadd.f32 %v3023_v61, %v1348_v45  ;;  %v1415_v55 = vpack.c.bf16 %v1383_v46, %v1383_v46  ;;  %v1355_v58 = vmul.f32 %v3012_v54, %v1319_v48  ;;  %vm1237_vm2 = vcmp.ge.f32.partialorder %v1205_v50, 0.0  ;;  %v1200_v45 = vld [vmem:[#allocation2 + $0x48] sm:$0xff] }
 0x1ad   : > { %v1266_v30 = vmul.f32 %v3007_v53, %v1198_v43  ;;  %v1356_v34 = vmul.f32 %v3012_v54, %v1320_v57  ;;  %v1297_v59 = vsel %vm1229_vm0, %v1197_v36, %v1265_v49  ;;  %v1273_v62 = vmul.f32 %v3007_v53, %v1205_v50  ;;  %v1207_v49 = vld [vmem:[#allocation2 + $0x8] sm:$0xff] }
 0x1ae   : > { %1629 = vmatmul.bf16.vlgmr.msra.gmra.mxu0 %v1541_v40  ;;  %1649 = vmatmul.bf16.vlgmr.msra.gmra.mxu1 %v1545_v41  ;;  %v1416_v40 = vpack.c.bf16 %v1384_v52, %v1384_v52  ;;  %v2409_v32 = vpack.c.bf16 %v1384_v52, %v1383_v46  ;;  %v1391_v41 = vadd.f32 %v3023_v61, %v1355_v58  ;;  %vm1238_vm3 = vcmp.ge.f32.partialorder %v1206_v31, 0.0 }
 0x1af   : > { %1669 = vmatmul.bf16.vlgmr.msra.gmra.mxu2 %v1549_v24  ;;  %1689 = vmatmul.bf16.vlgmr.msra.gmra.mxu3 %v1553_v28  ;;  %v1298_v60 = vsel %vm1230_vm1, %v1198_v43, %v1266_v30  ;;  %v1392_v63 = vadd.f32 %v3023_v61, %v1356_v34  ;;  %v1333_v0 = vmul.f32 %v3012_v54, %v1297_v59  ;;  %v1527_v3 = vunpack.c.l.b16 %v1415_v55 }
 0x1b0   : > { %2529 = vst [vmem:[%s2901_s29 + $0x48] sm:$0xff] %v2409_v32   ;;  %v1334_v1 = vmul.f32 %v3012_v54, %v1298_v60  ;;  %v1423_v4 = vpack.c.bf16 %v1391_v41, %v1391_v41  ;;  %v1274_v5 = vmul.f32 %v3007_v53, %v1206_v31  ;;  %v1305_v6 = vsel %vm1237_vm2, %v1205_v50, %v1273_v62 }
 0x1b1   : > { %v1528_v7 = vunpack.c.l.b16 %v1416_v40  ;;  %v1424_v8 = vpack.c.bf16 %v1392_v63, %v1392_v63  ;;  %v2429_v9 = vpack.c.bf16 %v1392_v63, %v1391_v41  ;;  %v1369_v10 = vadd.f32 %v3023_v61, %v1333_v0 }
 0x1b2   : > { %v1370_v12 = vadd.f32 %v3023_v61, %v1334_v1  ;;  %v1306_v13 = vsel %vm1238_vm3, %v1206_v31, %v1274_v5  ;;  %v1341_v14 = vmul.f32 %v3012_v54, %v1305_v6  ;;  %vm1245_vm4 = vcmp.ge.f32.partialorder %v1213_v2, 0.0 }
 0x1b3   : > { %2533 = vst [vmem:[%s2901_s29 + $0x68] sm:$0xff] %v2429_v9   ;;  %v1535_v15 = vunpack.c.l.b16 %v1423_v4  ;;  %v1536_v16 = vunpack.c.l.b16 %v1424_v8  ;;  %v1401_v17 = vpack.c.bf16 %v1369_v10, %v1369_v10  ;;  %v1342_v18 = vmul.f32 %v3012_v54, %v1306_v13  ;;  %v1215_v8 = vld [vmem:[#allocation2 + $0x70] sm:$0xff]  ;;  %v1216_v13 = vld [vmem:[#allocation2 + $0xc0] sm:$0xff] }
 0x1b4   : > { %v2374_v19 = vpack.c.bf16 %v1370_v12, %v1369_v10  ;;  %v1377_v20 = vadd.f32 %v3023_v61, %v1341_v14  ;;  %vm1246_vm5 = vcmp.ge.f32.partialorder %v1214_v11, 0.0  ;;  %v1281_v21 = vmul.f32 %v3007_v53, %v1213_v2 }
 0x1b5   : > { %v1542_v22 = vpack.c.b16 %v3111_v44, %v3107_v37  ;;  %v1378_v23 = vadd.f32 %v3023_v61, %v1342_v18  ;;  %v1282_v24 = vmul.f32 %v3007_v53, %v1214_v11  ;;  %v1546_v26 = vpack.c.b16 %v3128_v56, %v3125_v51  ;;  %v1208_v56 = vld [vmem:[#allocation2 + $0x78] sm:$0xff] }
 0x1b6   : > { %v1550_v27 = vpack.c.b16 %v1528_v7, %v1527_v3  ;;  %v1402_v28 = vpack.c.bf16 %v1370_v12, %v1370_v12  ;;  %2522 = vst [vmem:[%s2901_s29 + $0x10] sm:$0xff] %v2374_v19   ;;  %v1313_v29 = vsel %vm1245_vm4, %v1213_v2, %v1281_v21  ;;  %v1409_v35 = vpack.c.bf16 %v1377_v20, %v1377_v20 }
 0x1b7   : > { %v2394_v36 = vpack.c.bf16 %v1378_v23, %v1377_v20  ;;  %v1314_v38 = vsel %vm1246_vm5, %v1214_v11, %v1282_v24  ;;  %v1349_v37 = vmul.f32 %v3012_v54, %v1313_v29  ;;  %v1554_v42 = vpack.c.b16 %v1536_v16, %v1535_v15 }
 0x1b8   : > { %v3157_v43 = vunpack.c.l.b16 %v1401_v17  ;;  %v1350_v44 = vmul.f32 %v3012_v54, %v1314_v38  ;;  %vm1253_vm6 = vcmp.ge.f32.partialorder %v1221_v25, 0.0  ;;  %vm1254_vm7 = vcmp.ge.f32.partialorder %v1222_v33, 0.0 }
 0x1b9   : > { %2526 = vst [vmem:[%s2901_s29 + $0x30] sm:$0xff] %v2394_v36   ;;  %v1385_v46 = vadd.f32 %v3023_v61, %v1349_v37  ;;  %v1289_v47 = vmul.f32 %v3007_v53, %v1221_v25  ;;  %v1290_v48 = vmul.f32 %v3007_v53, %v1222_v33  ;;  %v3164_v50 = vunpack.c.l.b16 %v1402_v28 }
 0x1ba   : > { %v1410_v51 = vpack.c.bf16 %v1378_v23, %v1378_v23  ;;  %v1386_v52 = vadd.f32 %v3023_v61, %v1350_v44  ;;  %v1267_v55 = vmul.f32 %v3007_v53, %v1199_v39  ;;  %v3168_v57 = vunpack.c.l.b16 %v1409_v35 }
 0x1bb   : > { %v1321_v58 = vsel %vm1253_vm6, %v1221_v25, %v1289_v47  ;;  %vm1231_vm8 = vcmp.ge.f32.partialorder %v1199_v39, 0.0  ;;  %vm1232_vm9 = vcmp.ge.f32.partialorder %v1200_v45, 0.0  ;;  %v1417_v30 = vpack.c.bf16 %v1385_v46, %v1385_v46 }
 0x1bc   : > { %v2414_v31 = vpack.c.bf16 %v1386_v52, %v1385_v46  ;;  %v1322_v40 = vsel %vm1254_vm7, %v1222_v33, %v1290_v48  ;;  %vm1239_vm10 = vcmp.ge.f32.partialorder %v1207_v49, 0.0  ;;  %v1357_v32 = vmul.f32 %v3012_v54, %v1321_v58 }
 0x1bd   : > { %v1358_v34 = vmul.f32 %v3012_v54, %v1322_v40  ;;  %v1268_v41 = vmul.f32 %v3007_v53, %v1200_v45  ;;  %vm1240_vm11 = vcmp.ge.f32.partialorder %v1208_v56, 0.0  ;;  %v1418_v59 = vpack.c.bf16 %v1386_v52, %v1386_v52 }
 0x1be   : > { %1634 = vmatmul.bf16.gmra.mxu0 %v1542_v22  ;;  %1654 = vmatmul.bf16.gmra.mxu1 %v1546_v26  ;;  %2530 = vst [vmem:[%s2901_s29 + $0x50] sm:$0xff] %v2414_v31   ;;  %v1299_v60 = vsel %vm1231_vm8, %v1199_v39, %v1267_v55  ;;  %v1275_v62 = vmul.f32 %v3007_v53, %v1207_v49  ;;  %v1522_v4 = vunpack.c.l.b16 %v1410_v51  ;;  %v1529_v9 = vunpack.c.l.b16 %v1417_v30  ;;  %v1223_v26 = vld [vmem:[#allocation2 + $0x20] sm:$0xff] }
 0x1bf   : > { %1674 = vmatmul.bf16.gmra.mxu2 %v1550_v27  ;;  %1694 = vmatmul.bf16.gmra.mxu3 %v1554_v42  ;;  %v1276_v63 = vmul.f32 %v3007_v53, %v1208_v56  ;;  %v1393_v0 = vadd.f32 %v3023_v61, %v1357_v32  ;;  %v1394_v1 = vadd.f32 %v3023_v61, %v1358_v34  ;;  %v1530_v18 = vunpack.c.l.b16 %v1418_v59  ;;  %v1224_v27 = vld [vmem:[#allocation2 + $0x98] sm:$0xff] }
 0x1c0   : > { %v1300_v2 = vsel %vm1232_vm9, %v1200_v45, %v1268_v41  ;;  %v1335_v3 = vmul.f32 %v3012_v54, %v1299_v60  ;;  %v1307_v6 = vsel %vm1239_vm10, %v1207_v49, %v1275_v62  ;;  %vm1247_vm12 = vcmp.ge.f32.partialorder %v1215_v8, 0.0 }
 0x1c1   : > { %v1336_v5 = vmul.f32 %v3012_v54, %v1300_v2  ;;  %v1308_v7 = vsel %vm1240_vm11, %v1208_v56, %v1276_v63  ;;  %v1425_v10 = vpack.c.bf16 %v1393_v0, %v1393_v0  ;;  %v1426_v11 = vpack.c.bf16 %v1394_v1, %v1394_v1 }
 0x1c2   : > { %v2434_v12 = vpack.c.bf16 %v1394_v1, %v1393_v0  ;;  %v1371_v14 = vadd.f32 %v3023_v61, %v1335_v3  ;;  %v1343_v16 = vmul.f32 %v3012_v54, %v1307_v6  ;;  %v1344_v17 = vmul.f32 %v3012_v54, %v1308_v7 }
 0x1c3   : > { %v1372_v15 = vadd.f32 %v3023_v61, %v1336_v5  ;;  %v1537_v19 = vunpack.c.l.b16 %v1425_v10  ;;  %v1538_v20 = vunpack.c.l.b16 %v1426_v11  ;;  %vm1248_vm13 = vcmp.ge.f32.partialorder %v1216_v13, 0.0  ;;  %v3213_v5 = vld [vmem:[%s3363_s5] ss:$0 sm:$0xff] }
 0x1c4   : > { %2534 = vst [vmem:[%s2901_s29 + $0x70] sm:$0xff] %v2434_v12   ;;  %v1379_v22 = vadd.f32 %v3023_v61, %v1343_v16  ;;  %v1380_v23 = vadd.f32 %v3023_v61, %v1344_v17  ;;  %v1283_v24 = vmul.f32 %v3007_v53, %v1215_v8  ;;  %v1284_v25 = vmul.f32 %v3007_v53, %v1216_v13  ;;  %v3226_v12 = vld [vmem:[%s3366_s8] ss:$0 sm:$0xff] }
 0x1c5   : > { %v2379_v21 = vpack.c.bf16 %v1372_v15, %v1371_v14  ;;  %v1543_v28 = vpack.c.b16 %v3164_v50, %v3157_v43  ;;  %v1547_v33 = vpack.c.b16 %v1522_v4, %v3168_v57  ;;  %v1551_v35 = vpack.c.b16 %v1530_v18, %v1529_v9  ;;  %v3219_v9 = vld [vmem:[%s3364_s6] ss:$0 sm:$0xff] }
 0x1c6   : > { %v2399_v29 = vpack.c.bf16 %v1380_v23, %v1379_v22  ;;  %v1315_v36 = vsel %vm1247_vm12, %v1215_v8, %v1283_v24  ;;  %v1316_v38 = vsel %vm1248_vm13, %v1216_v13, %v1284_v25  ;;  %v1555_v37 = vpack.c.b16 %v1538_v20, %v1537_v19 }
 0x1c7   : > { %2523 = vst [vmem:[%s2901_s29 + $0x18] sm:$0xff] %v2379_v21   ;;  %v1351_v39 = vmul.f32 %v3012_v54, %v1315_v36  ;;  %vm1255_vm14 = vcmp.ge.f32.partialorder %v1223_v26, 0.0  ;;  %vm1256_vm15 = vcmp.ge.f32.partialorder %v1224_v27, 0.0  ;;  %v1352_v42 = vmul.f32 %v3012_v54, %v1316_v38 }
 0x1c8   : > { %2527 = vst [vmem:[%s2901_s29 + $0x38] sm:$0xff] %v2399_v29   ;;  %v1291_v44 = vmul.f32 %v3007_v53, %v1223_v26  ;;  %v1292_v45 = vmul.f32 %v3007_v53, %v1224_v27  ;;  %v1403_v52 = vpack.c.bf16 %v1371_v14, %v1371_v14  ;;  %v1404_v56 = vpack.c.bf16 %v1372_v15, %v1372_v15 }
 0x1c9   : > { %v1387_v43 = vadd.f32 %v3023_v61, %v1351_v39  ;;  %v1388_v46 = vadd.f32 %v3023_v61, %v1352_v42  ;;  %v1411_v57 = vpack.c.bf16 %v1379_v22, %v1379_v22  ;;  %v1412_v58 = vpack.c.bf16 %v1380_v23, %v1380_v23 }
 0x1ca   : > { %v1323_v47 = vsel %vm1255_vm14, %v1223_v26, %v1291_v44  ;;  %v1324_v48 = vsel %vm1256_vm15, %v1224_v27, %v1292_v45  ;;  %v1515_v41 = vunpack.c.l.b16 %v1403_v52  ;;  %v1516_v59 = vunpack.c.l.b16 %v1404_v56 }
 0x1cb   : > { %v1359_v49 = vmul.f32 %v3012_v54, %v1323_v47  ;;  %v1360_v50 = vmul.f32 %v3012_v54, %v1324_v48  ;;  %v2419_v51 = vpack.c.bf16 %v1388_v46, %v1387_v43  ;;  %v1419_v30 = vpack.c.bf16 %v1387_v43, %v1387_v43 }
 0x1cc   : > { %v1420_v31 = vpack.c.bf16 %v1388_v46, %v1388_v46  ;;  %v1523_v60 = vunpack.c.l.b16 %v1411_v57  ;;  %v1524_v54 = vunpack.c.l.b16 %v1412_v58  ;;  %v1544_v2 = vpack.c.b16 %v1516_v59, %v1515_v41 }
 0x1cd   : > { %v1395_v53 = vadd.f32 %v3023_v61, %v1359_v49  ;;  %v1396_v55 = vadd.f32 %v3023_v61, %v1360_v50  ;;  %2531 = vst [vmem:[%s2901_s29 + $0x58] sm:$0xff] %v2419_v51   ;;  %v1531_v62 = vunpack.c.l.b16 %v1419_v30 }
 0x1ce   : > { %1639 = vmatmul.bf16.gmra.mxu0 %v1543_v28  ;;  %1659 = vmatmul.bf16.gmra.mxu1 %v1547_v33  ;;  %v1532_v63 = vunpack.c.l.b16 %v1420_v31  ;;  %v1548_v61 = vpack.c.b16 %v1524_v54, %v1523_v60 }
 0x1cf   : > { %1679 = vmatmul.bf16.gmra.mxu2 %v1551_v35  ;;  %1699 = vmatmul.bf16.gmra.mxu3 %v1555_v37  ;;  %v1427_v40 = vpack.c.bf16 %v1395_v53, %v1395_v53  ;;  %v1428_v32 = vpack.c.bf16 %v1396_v55, %v1396_v55  ;;  %v2439_v34 = vpack.c.bf16 %v1396_v55, %v1395_v53 }
 0x1d0   : > { %v1552_v3 = vpack.c.b16 %v1532_v63, %v1531_v62 }
 0x1d1   : > { %2535 = vst [vmem:[%s2901_s29 + $0x78] sm:$0xff] %v2439_v34   ;;  %v1539_v0 = vunpack.c.l.b16 %v1427_v40  ;;  %v1540_v1 = vunpack.c.l.b16 %v1428_v32 }
 0x1d3   : > { %v1556_v4 = vpack.c.b16 %v1540_v1, %v1539_v0 }
 0x1de   : > { %1644 = vmatmul.bf16.gmra.mxu0 %v1544_v2  ;;  %1664 = vmatmul.bf16.gmra.mxu1 %v1548_v61 }
 0x1df   : > { %1684 = vmatmul.bf16.gmra.mxu2 %v1552_v3  ;;  %1704 = vmatmul.bf16.gmra.mxu3 %v1556_v4 }
 0x22b   : > { %v1630_v6 = vpop.f32.mrf.mxu0  ;;  %v1650_v7 = vpop.f32.mrf.mxu1 }
 0x22c   : > { %v1714_v8 = vmul.f32 %v3213_v5, %v1630_v6  ;;  %v1722_v10 = vmul.f32 %v3213_v5, %v1650_v7 }
 0x22e   : > { %v1750_v11 = vadd.f32 %v3219_v9, %v1714_v8  ;;  %v1758_v13 = vadd.f32 %v3219_v9, %v1722_v10 }
 0x230   : > { %v1818_v22 = vmul.f32 %v3226_v12, %v1750_v11  ;;  %v1826_v23 = vmul.f32 %v3226_v12, %v1758_v13  ;;  %vm1782_vm0 = vcmp.ge.f32.partialorder %v1750_v11, 0.0  ;;  %vm1790_vm1 = vcmp.ge.f32.partialorder %v1758_v13, 0.0 }
 0x232   : > { %v1670_v14 = vpop.f32.mrf.mxu2  ;;  %v1690_v15 = vpop.f32.mrf.mxu3  ;;  %v1850_v33 = vsel %vm1782_vm0, %v1750_v11, %v1818_v22  ;;  %v1858_v35 = vsel %vm1790_vm1, %v1758_v13, %v1826_v23 }
 0x233   : > { %v1632_v16 = vpop.f32.mrf.mxu0  ;;  %v1652_v17 = vpop.f32.mrf.mxu1  ;;  %v1730_v20 = vmul.f32 %v3213_v5, %v1670_v14  ;;  %v1738_v21 = vmul.f32 %v3213_v5, %v1690_v15 }
 0x234   : > { %v1715_v18 = vmul.f32 %v3213_v5, %v1632_v16  ;;  %v1723_v19 = vmul.f32 %v3213_v5, %v1652_v17 }
 0x235   : > { %v1766_v28 = vadd.f32 %v3219_v9, %v1730_v20  ;;  %v1774_v29 = vadd.f32 %v3219_v9, %v1738_v21 }
 0x236   : > { %v1751_v24 = vadd.f32 %v3219_v9, %v1715_v18  ;;  %v1759_v25 = vadd.f32 %v3219_v9, %v1723_v19 }
 0x237   : > { %v1834_v48 = vmul.f32 %v3226_v12, %v1766_v28  ;;  %v1842_v49 = vmul.f32 %v3226_v12, %v1774_v29  ;;  %vm1798_vm4 = vcmp.ge.f32.partialorder %v1766_v28, 0.0  ;;  %vm1806_vm5 = vcmp.ge.f32.partialorder %v1774_v29, 0.0 }
 0x238   : > { %vm1783_vm2 = vcmp.ge.f32.partialorder %v1751_v24, 0.0  ;;  %v1819_v26 = vmul.f32 %v3226_v12, %v1751_v24  ;;  %vm1791_vm3 = vcmp.ge.f32.partialorder %v1759_v25, 0.0  ;;  %v1827_v27 = vmul.f32 %v3226_v12, %v1759_v25 }
 0x239   : > { %v1866_v57 = vsel %vm1798_vm4, %v1766_v28, %v1834_v48  ;;  %v1874_v58 = vsel %vm1806_vm5, %v1774_v29, %v1842_v49 }
 0x23a   : > { %v1851_v36 = vsel %vm1783_vm2, %v1751_v24, %v1819_v26  ;;  %v1859_v38 = vsel %vm1791_vm3, %v1759_v25, %v1827_v27  ;;  %v1672_v37 = vpop.f32.mrf.mxu2  ;;  %v1692_v39 = vpop.f32.mrf.mxu3 }
 0x23b   : > { %v2444_v42 = vpack.c.bf16 %v1851_v36, %v1850_v33  ;;  %v2464_v44 = vpack.c.bf16 %v1859_v38, %v1858_v35  ;;  %v1731_v45 = vmul.f32 %v3213_v5, %v1672_v37  ;;  %v1739_v43 = vmul.f32 %v3213_v5, %v1692_v39  ;;  %v1635_v46 = vpop.f32.mrf.mxu0  ;;  %v1655_v47 = vpop.f32.mrf.mxu1 }
 0x23c   : > { %v1716_v52 = vmul.f32 %v3213_v5, %v1635_v46  ;;  %v1724_v53 = vmul.f32 %v3213_v5, %v1655_v47 }
 0x23d   : > { %2445 = vst [vmem:[%s2906_s12] sm:$0xff] %v2444_v42   ;;  %v1767_v50 = vadd.f32 %v3219_v9, %v1731_v45  ;;  %v1775_v51 = vadd.f32 %v3219_v9, %v1739_v43 }
 0x23e   : > { %2539 = vst [vmem:[%s2906_s12 + $0x20] sm:$0xff] %v2464_v44   ;;  %v1752_v34 = vadd.f32 %v3219_v9, %v1716_v52  ;;  %v1760_v41 = vadd.f32 %v3219_v9, %v1724_v53 }
 0x23f   : > { %vm1799_vm6 = vcmp.ge.f32.partialorder %v1767_v50, 0.0  ;;  %v1835_v55 = vmul.f32 %v3226_v12, %v1767_v50  ;;  %vm1807_vm7 = vcmp.ge.f32.partialorder %v1775_v51, 0.0  ;;  %v1843_v56 = vmul.f32 %v3226_v12, %v1775_v51 }
 0x240   : > { %v1820_v61 = vmul.f32 %v3226_v12, %v1752_v34  ;;  %v1828_v3 = vmul.f32 %v3226_v12, %v1760_v41  ;;  %vm1784_vm8 = vcmp.ge.f32.partialorder %v1752_v34, 0.0  ;;  %vm1792_vm9 = vcmp.ge.f32.partialorder %v1760_v41, 0.0 }
 0x241   : > { %v1867_v30 = vsel %vm1799_vm6, %v1767_v50, %v1835_v55  ;;  %v1875_v31 = vsel %vm1807_vm7, %v1775_v51, %v1843_v56 }
 0x242   : > { %v2484_v40 = vpack.c.bf16 %v1867_v30, %v1866_v57  ;;  %v2504_v32 = vpack.c.bf16 %v1875_v31, %v1874_v58  ;;  %v1675_v59 = vpop.f32.mrf.mxu2  ;;  %v1695_v60 = vpop.f32.mrf.mxu3  ;;  %v1852_v13 = vsel %vm1784_vm8, %v1752_v34, %v1820_v61  ;;  %v1860_v14 = vsel %vm1792_vm9, %v1760_v41, %v1828_v3 }
 0x243   : > { %v1637_v54 = vpop.f32.mrf.mxu0  ;;  %v1657_v62 = vpop.f32.mrf.mxu1  ;;  %v1732_v1 = vmul.f32 %v3213_v5, %v1675_v59  ;;  %v1740_v2 = vmul.f32 %v3213_v5, %v1695_v60 }
 0x244   : > { %2543 = vst [vmem:[%s2906_s12 + $0x40] sm:$0xff] %v2484_v40   ;;  %v1717_v63 = vmul.f32 %v3213_v5, %v1637_v54  ;;  %v1725_v0 = vmul.f32 %v3213_v5, %v1657_v62 }
 0x245   : > { %2547 = vst [vmem:[%s2906_s12 + $0x60] sm:$0xff] %v2504_v32   ;;  %v1768_v10 = vadd.f32 %v3219_v9, %v1732_v1  ;;  %v1776_v11 = vadd.f32 %v3219_v9, %v1740_v2 }
 0x246   : > { %v1753_v4 = vadd.f32 %v3219_v9, %v1717_v63  ;;  %v1761_v6 = vadd.f32 %v3219_v9, %v1725_v0 }
 0x247   : > { %v1836_v25 = vmul.f32 %v3226_v12, %v1768_v10  ;;  %v1844_v26 = vmul.f32 %v3226_v12, %v1776_v11  ;;  %vm1800_vm12 = vcmp.ge.f32.partialorder %v1768_v10, 0.0  ;;  %vm1808_vm13 = vcmp.ge.f32.partialorder %v1776_v11, 0.0 }
 0x248   : > { %vm1785_vm10 = vcmp.ge.f32.partialorder %v1753_v4, 0.0  ;;  %v1821_v7 = vmul.f32 %v3226_v12, %v1753_v4  ;;  %vm1793_vm11 = vcmp.ge.f32.partialorder %v1761_v6, 0.0  ;;  %v1829_v8 = vmul.f32 %v3226_v12, %v1761_v6 }
 0x249   : > { %v1868_v38 = vsel %vm1800_vm12, %v1768_v10, %v1836_v25  ;;  %v1876_v37 = vsel %vm1808_vm13, %v1776_v11, %v1844_v26 }
 0x24a   : > { %v1853_v15 = vsel %vm1785_vm10, %v1753_v4, %v1821_v7  ;;  %v1861_v16 = vsel %vm1793_vm11, %v1761_v6, %v1829_v8  ;;  %v1677_v17 = vpop.f32.mrf.mxu2  ;;  %v1697_v18 = vpop.f32.mrf.mxu3 }
 0x24b   : > { %v2449_v19 = vpack.c.bf16 %v1853_v15, %v1852_v13  ;;  %v2469_v20 = vpack.c.bf16 %v1861_v16, %v1860_v14  ;;  %v1733_v21 = vmul.f32 %v3213_v5, %v1677_v17  ;;  %v1741_v22 = vmul.f32 %v3213_v5, %v1697_v18  ;;  %v1640_v23 = vpop.f32.mrf.mxu0  ;;  %v1660_v24 = vpop.f32.mrf.mxu1 }
 0x24c   : > { %v1718_v29 = vmul.f32 %v3213_v5, %v1640_v23  ;;  %v1726_v33 = vmul.f32 %v3213_v5, %v1660_v24 }
 0x24d   : > { %2536 = vst [vmem:[%s2906_s12 + $0x8] sm:$0xff] %v2449_v19   ;;  %v1769_v27 = vadd.f32 %v3219_v9, %v1733_v21  ;;  %v1777_v28 = vadd.f32 %v3219_v9, %v1741_v22 }
 0x24e   : > { %2540 = vst [vmem:[%s2906_s12 + $0x28] sm:$0xff] %v2469_v20   ;;  %v1754_v43 = vadd.f32 %v3219_v9, %v1718_v29  ;;  %v1762_v46 = vadd.f32 %v3219_v9, %v1726_v33 }
 0x24f   : > { %vm1801_vm14 = vcmp.ge.f32.partialorder %v1769_v27, 0.0  ;;  %v1837_v35 = vmul.f32 %v3226_v12, %v1769_v27  ;;  %vm1809_vm15 = vcmp.ge.f32.partialorder %v1777_v28, 0.0  ;;  %v1845_v36 = vmul.f32 %v3226_v12, %v1777_v28 }
 0x250   : > { %v1822_v56 = vmul.f32 %v3226_v12, %v1754_v43  ;;  %v1830_v57 = vmul.f32 %v3226_v12, %v1762_v46  ;;  %vm1786_vm0 = vcmp.ge.f32.partialorder %v1754_v43, 0.0  ;;  %vm1794_vm1 = vcmp.ge.f32.partialorder %v1762_v46, 0.0 }
 0x251   : > { %v1869_v39 = vsel %vm1801_vm14, %v1769_v27, %v1837_v35  ;;  %v1877_v42 = vsel %vm1809_vm15, %v1777_v28, %v1845_v36 }
 0x252   : > { %v2489_v44 = vpack.c.bf16 %v1869_v39, %v1868_v38  ;;  %v2509_v45 = vpack.c.bf16 %v1877_v42, %v1876_v37  ;;  %v1680_v47 = vpop.f32.mrf.mxu2  ;;  %v1700_v48 = vpop.f32.mrf.mxu3  ;;  %v1854_v41 = vsel %vm1786_vm0, %v1754_v43, %v1822_v56  ;;  %v1862_v59 = vsel %vm1794_vm1, %v1762_v46, %v1830_v57 }
 0x253   : > { %v1642_v49 = vpop.f32.mrf.mxu0  ;;  %v1662_v50 = vpop.f32.mrf.mxu1  ;;  %v1734_v53 = vmul.f32 %v3213_v5, %v1680_v47  ;;  %v1742_v55 = vmul.f32 %v3213_v5, %v1700_v48 }
 0x254   : > { %2544 = vst [vmem:[%s2906_s12 + $0x48] sm:$0xff] %v2489_v44   ;;  %v1719_v51 = vmul.f32 %v3213_v5, %v1642_v49  ;;  %v1727_v52 = vmul.f32 %v3213_v5, %v1662_v50 }
 0x255   : > { %2548 = vst [vmem:[%s2906_s12 + $0x68] sm:$0xff] %v2509_v45   ;;  %v1770_v32 = vadd.f32 %v3219_v9, %v1734_v53  ;;  %v1778_v34 = vadd.f32 %v3219_v9, %v1742_v55 }
 0x256   : > { %v1755_v58 = vadd.f32 %v3219_v9, %v1719_v51  ;;  %v1763_v30 = vadd.f32 %v3219_v9, %v1727_v52 }
 0x257   : > { %v1838_v6 = vmul.f32 %v3226_v12, %v1770_v32  ;;  %v1846_v7 = vmul.f32 %v3226_v12, %v1778_v34  ;;  %vm1802_vm4 = vcmp.ge.f32.partialorder %v1770_v32, 0.0  ;;  %vm1810_vm5 = vcmp.ge.f32.partialorder %v1778_v34, 0.0 }
 0x258   : > { %vm1787_vm2 = vcmp.ge.f32.partialorder %v1755_v58, 0.0  ;;  %v1823_v31 = vmul.f32 %v3226_v12, %v1755_v58  ;;  %vm1795_vm3 = vcmp.ge.f32.partialorder %v1763_v30, 0.0  ;;  %v1831_v40 = vmul.f32 %v3226_v12, %v1763_v30 }
 0x259   : > { %v1870_v16 = vsel %vm1802_vm4, %v1770_v32, %v1838_v6  ;;  %v1878_v17 = vsel %vm1810_vm5, %v1778_v34, %v1846_v7 }
 0x25a   : > { %v1855_v60 = vsel %vm1787_vm2, %v1755_v58, %v1823_v31  ;;  %v1863_v54 = vsel %vm1795_vm3, %v1763_v30, %v1831_v40  ;;  %v1682_v62 = vpop.f32.mrf.mxu2  ;;  %v1702_v63 = vpop.f32.mrf.mxu3 }
 0x25b   : > { %v2454_v0 = vpack.c.bf16 %v1855_v60, %v1854_v41  ;;  %v2474_v1 = vpack.c.bf16 %v1863_v54, %v1862_v59  ;;  %v1735_v2 = vmul.f32 %v3213_v5, %v1682_v62  ;;  %v1743_v61 = vmul.f32 %v3213_v5, %v1702_v63  ;;  %v1645_v3 = vpop.f32.mrf.mxu0  ;;  %v1665_v4 = vpop.f32.mrf.mxu1 }
 0x25c   : > { %v1720_v11 = vmul.f32 %v3213_v5, %v1645_v3  ;;  %v1728_v13 = vmul.f32 %v3213_v5, %v1665_v4 }
 0x25d   : > { %2537 = vst [vmem:[%s2906_s12 + $0x10] sm:$0xff] %v2454_v0   ;;  %v1771_v8 = vadd.f32 %v3219_v9, %v1735_v2  ;;  %v1779_v10 = vadd.f32 %v3219_v9, %v1743_v61 }
 0x25e   : > { %2541 = vst [vmem:[%s2906_s12 + $0x30] sm:$0xff] %v2474_v1   ;;  %v1756_v22 = vadd.f32 %v3219_v9, %v1720_v11  ;;  %v1764_v23 = vadd.f32 %v3219_v9, %v1728_v13 }
 0x25f   : > { %vm1803_vm6 = vcmp.ge.f32.partialorder %v1771_v8, 0.0  ;;  %v1839_v14 = vmul.f32 %v3226_v12, %v1771_v8  ;;  %vm1811_vm7 = vcmp.ge.f32.partialorder %v1779_v10, 0.0  ;;  %v1847_v15 = vmul.f32 %v3226_v12, %v1779_v10 }
 0x260   : > { %v1824_v36 = vmul.f32 %v3226_v12, %v1756_v22  ;;  %v1832_v38 = vmul.f32 %v3226_v12, %v1764_v23  ;;  %vm1788_vm8 = vcmp.ge.f32.partialorder %v1756_v22, 0.0  ;;  %vm1796_vm9 = vcmp.ge.f32.partialorder %v1764_v23, 0.0 }
 0x261   : > { %v1871_v18 = vsel %vm1803_vm6, %v1771_v8, %v1839_v14  ;;  %v1879_v19 = vsel %vm1811_vm7, %v1779_v10, %v1847_v15 }
 0x262   : > { %v2494_v20 = vpack.c.bf16 %v1871_v18, %v1870_v16  ;;  %v2514_v21 = vpack.c.bf16 %v1879_v19, %v1878_v17  ;;  %v1685_v24 = vpop.f32.mrf.mxu2  ;;  %v1705_v25 = vpop.f32.mrf.mxu3  ;;  %v1856_v46 = vsel %vm1788_vm8, %v1756_v22, %v1824_v36  ;;  %v1864_v47 = vsel %vm1796_vm9, %v1764_v23, %v1832_v38 }
 0x263   : > { %v1647_v26 = vpop.f32.mrf.mxu0  ;;  %v1667_v27 = vpop.f32.mrf.mxu1  ;;  %v1736_v33 = vmul.f32 %v3213_v5, %v1685_v24  ;;  %v1744_v35 = vmul.f32 %v3213_v5, %v1705_v25 }
 0x264   : > { %2545 = vst [vmem:[%s2906_s12 + $0x50] sm:$0xff] %v2494_v20   ;;  %v1721_v28 = vmul.f32 %v3213_v5, %v1647_v26  ;;  %v1729_v29 = vmul.f32 %v3213_v5, %v1667_v27 }
 0x265   : > { %2549 = vst [vmem:[%s2906_s12 + $0x70] sm:$0xff] %v2514_v21   ;;  %v1772_v45 = vadd.f32 %v3219_v9, %v1736_v33  ;;  %v1780_v43 = vadd.f32 %v3219_v9, %v1744_v35 }
 0x266   : > { %v1757_v37 = vadd.f32 %v3219_v9, %v1721_v28  ;;  %v1765_v39 = vadd.f32 %v3219_v9, %v1729_v29 }
 0x267   : > { %v1840_v57 = vmul.f32 %v3226_v12, %v1772_v45  ;;  %v1848_v58 = vmul.f32 %v3226_v12, %v1780_v43  ;;  %vm1804_vm12 = vcmp.ge.f32.partialorder %v1772_v45, 0.0  ;;  %vm1812_vm13 = vcmp.ge.f32.partialorder %v1780_v43, 0.0 }
 0x268   : > { %vm1789_vm10 = vcmp.ge.f32.partialorder %v1757_v37, 0.0  ;;  %v1825_v42 = vmul.f32 %v3226_v12, %v1757_v37  ;;  %vm1797_vm11 = vcmp.ge.f32.partialorder %v1765_v39, 0.0  ;;  %v1833_v44 = vmul.f32 %v3226_v12, %v1765_v39 }
 0x269   : > { %v1872_v32 = vsel %vm1804_vm12, %v1772_v45, %v1840_v57  ;;  %v1880_v34 = vsel %vm1812_vm13, %v1780_v43, %v1848_v58 }
 0x26a   : > { %v1857_v48 = vsel %vm1789_vm10, %v1757_v37, %v1825_v42  ;;  %v1865_v49 = vsel %vm1797_vm11, %v1765_v39, %v1833_v44  ;;  %v1687_v50 = vpop.f32.mrf.mxu2  ;;  %v1707_v51 = vpop.f32.mrf.mxu3 }
 0x26b   : > { %v2459_v52 = vpack.c.bf16 %v1857_v48, %v1856_v46  ;;  %v2479_v53 = vpack.c.bf16 %v1865_v49, %v1864_v47  ;;  %v1737_v55 = vmul.f32 %v3213_v5, %v1687_v50  ;;  %v1745_v56 = vmul.f32 %v3213_v5, %v1707_v51 }
 0x26d   : > { %2538 = vst [vmem:[%s2906_s12 + $0x18] sm:$0xff] %v2459_v52   ;;  %v1773_v30 = vadd.f32 %v3219_v9, %v1737_v55  ;;  %v1781_v31 = vadd.f32 %v3219_v9, %v1745_v56 }
 0x26e   : > { %2542 = vst [vmem:[%s2906_s12 + $0x38] sm:$0xff] %v2479_v53  }
 0x26f   : > { %vm1805_vm14 = vcmp.ge.f32.partialorder %v1773_v30, 0.0  ;;  %v1841_v40 = vmul.f32 %v3226_v12, %v1773_v30  ;;  %vm1813_vm15 = vcmp.ge.f32.partialorder %v1781_v31, 0.0  ;;  %v1849_v5 = vmul.f32 %v3226_v12, %v1781_v31 }
 0x271   : > { %v1873_v41 = vsel %vm1805_vm14, %v1773_v30, %v1841_v40  ;;  %v1881_v59 = vsel %vm1813_vm15, %v1781_v31, %v1849_v5 }
 0x272   : > { %v2499_v60 = vpack.c.bf16 %v1873_v41, %v1872_v32  ;;  %v2519_v54 = vpack.c.bf16 %v1881_v59, %v1880_v34 }
 0x274   : > { %2546 = vst [vmem:[%s2906_s12 + $0x58] sm:$0xff] %v2499_v60  }
 0x275   : > { %2550 = vst [vmem:[%s2906_s12 + $0x78] sm:$0xff] %v2519_v54  }
 0x276 PF: > { %s21_s19 = sadd.s32 1, %s2708_s19   ;;  %s3373_s27 = sld [smem:[#allocation4_spill]] }
 0x277   : > { %p18_p13 = scmp.ge.s32.totalorder %s21_s19, 6   ;;  %s3374_s28 = sld [smem:[#allocation5_spill]] }
 0x278   : > { %s3375_s13 = smov %s2688_s14  ;;  %s3376_s14 = smov %s2817_s26 }
 0x279   : > { %s3377_s15 = smov %s2700_s17  ;;  %s3378_s16 = smov %s2704_s18 }
 0x27a   :  { %20 = sbr.rel (!%p18_p13) target bundleno = 4 (0x4), region = 150 }
 0x27c   : > { %s3379_s17 = smov %s3373_s27 }
 0x27d   : > { %s3380_s18 = smov %s3374_s28 }

// kernel: gconv2_forward.2
= control target key start
LH: loop header
LB: loop body
LE: loop exit
PB: predicated region body
PF: predicated region fallthrough
CT: control target
= control target key end

     0   :  { %s1638_s9 = smov 0   ;;  %s1640_s10 = smov 0   ;;  %s1902_s0 = inlined_call_operand.vmem [shape: bf16[512,512], index: 0, kind: input, shape index: {}]   ;;  %s1903_s1 = inlined_call_operand.vmem [shape: bf16[512,128], index: 1, kind: input, shape index: {}]   ;;  %s1904_s2 = inlined_call_operand.vmem [shape: bf16[512,128], index: 2, kind: output, shape index: {}]  }
   0x1   :  { %s1642_s11 = smov 0   ;;  %s1644_s12 = smov 0  }
   0x2   :  { %s1646_s13 = smov 0   ;;  %s1648_s14 = smov 0  }
   0x3   :  { %s1650_s15 = smov 0  }
   0x4 LB: > { %s21_s16 = sadd.s32 1, %s1612_s13  ;;  %s24_s17 = sadd.s32 1, %s1616_s14  ;;  %s1620_s15 = sphi %s1650_s15, %s12_s15   ;;  %s1616_s14 = sphi %s1648_s14, %s1910_s14   ;;  %s1612_s13 = sphi %s1646_s13, %s1909_s13   ;;  %s1608_s12 = sphi %s1644_s12, %s1908_s12   ;;  %s1604_s11 = sphi %s1642_s11, %s1907_s11   ;;  %s1600_s10 = sphi %s1640_s10, %s1906_s10   ;;  %s1596_s9 = sphi %s1638_s9, %s1905_s9  }
   0x5   : > { %p22_p0 = scmp.ge.s32.totalorder %s21_s16, 2  ;;  %p40_p1 = scmp.ne.s32.totalorder %s1600_s10, %s1596_s9 }
   0x6   : > { %p41_p2 = scmp.eq.s32.totalorder %s1620_s15, 0  ;;  %s33_s21 = sadd.s32 1, %s1600_s10 }
   0x7   : > { %s1912_s16 = smov (%p22_p0, %s21_s16), 0  ;;  %s1914_s17 = smov (!%p22_p0, %s24_s17), %s1616_s14 }
   0x8   : > { %p42_p3 = por %p41_p2, %p40_p1  ;;  %p26_p4 = scmp.ge.s32.totalorder %s1914_s17, 2 }
   0x9   : > { %s29_s18 = ssub.s32 %s1612_s13, %s1912_s16  ;;  %p1141_p6 = scmp.ge.s32.totalorder %s1620_s15, 4 }
   0xa   : > { %s1916_s17 = smov (%p26_p4, %s1914_s17), 0 }
   0xb   : > { %s28_s19 = ssub.s32 %s1616_s14, %s1916_s17  ;;  %116 = sbr.rel (%p1141_p6) target bundleno = 55 (0x37), region = 20 }
   0xc   : > { %s30_s20 = sor.u32 %s29_s18, %s28_s19 }
   0xd   : > { %p31_p5 = scmp.eq.s32.totalorder %s30_s20, 0 }
   0xf   : > { %s1689_s22 = scalar_select %p31_p5, %s1600_s10, %s33_s21  }
  0x10   : > { %119 = sbr.rel (!%p42_p3) target bundleno = 55 (0x37), region = 24  ;;  %s121_s23 = sand.u32 (%p42_p3), 1, %s1600_s10  }
  0x11   : > { %s1144_s24 = sshll.u32 (%p42_p3), %s1612_s13, 1  ;;  %s1142_s25 = sshll.u32 (%p42_p3), %s121_s23, 8 }
  0x12   : > { %s1349_s26 = sshll.u32 (%p42_p3), %s1616_s14, 7  ;;  %s1703_s4 = scalar_lea.vmem (%p42_p3), [#allocation3], %s1142_s25 }
  0x13   : > { %s127_s27 = sadd.s32 (%p42_p3), %s1349_s26, %s1144_s24 }
  0x14   : > { %s1146_s28 = sshll.u32 (%p42_p3), %s127_s27, 2 }
  0x15   : > { %s1698_s3 = scalar_lea.vmem %s1902_s0, %s1146_s28 }
  0x16   : > { %v220_v0 = vld [vmem:[%s1698_s3] sm:$0xff]  ;;  %v222_v1 = vld [vmem:[%s1698_s3 + $0x10] sm:$0xff] }
  0x17   : > { %v224_v2 = vld [vmem:[%s1698_s3 + $0x20] sm:$0xff]  ;;  %221 = vst [vmem:[%s1703_s4] sm:$0xff] %v220_v0  ;;  %v226_v3 = vld [vmem:[%s1698_s3 + $0x30] sm:$0xff] }
  0x18   : > { %223 = vst [vmem:[%s1703_s4 + $0x8] sm:$0xff] %v222_v1  ;;  %v228_v4 = vld [vmem:[%s1698_s3 + $0x40] sm:$0xff]  ;;  %v230_v5 = vld [vmem:[%s1698_s3 + $0x50] sm:$0xff] }
  0x19   : > { %225 = vst [vmem:[%s1703_s4 + $0x10] sm:$0xff] %v224_v2  ;;  %v232_v6 = vld [vmem:[%s1698_s3 + $0x60] sm:$0xff]  ;;  %v234_v7 = vld [vmem:[%s1698_s3 + $0x70] sm:$0xff] }
  0x1a   : > { %227 = vst [vmem:[%s1703_s4 + $0x18] sm:$0xff] %v226_v3  ;;  %v236_v8 = vld [vmem:[%s1698_s3 + $0x80] sm:$0xff]  ;;  %v238_v9 = vld [vmem:[%s1698_s3 + $0x90] sm:$0xff] }
  0x1b   : > { %229 = vst [vmem:[%s1703_s4 + $0x20] sm:$0xff] %v228_v4  ;;  %v240_v10 = vld [vmem:[%s1698_s3 + $0xa0] sm:$0xff]  ;;  %v242_v11 = vld [vmem:[%s1698_s3 + $0xb0] sm:$0xff] }
  0x1c   : > { %231 = vst [vmem:[%s1703_s4 + $0x28] sm:$0xff] %v230_v5  ;;  %v244_v12 = vld [vmem:[%s1698_s3 + $0xc0] sm:$0xff]  ;;  %v246_v13 = vld [vmem:[%s1698_s3 + $0xd0] sm:$0xff] }
  0x1d   : > { %233 = vst [vmem:[%s1703_s4 + $0x30] sm:$0xff] %v232_v6  ;;  %v248_v14 = vld [vmem:[%s1698_s3 + $0xe0] sm:$0xff]  ;;  %v250_v15 = vld [vmem:[%s1698_s3 + $0xf0] sm:$0xff] }
  0x1e   : > { %235 = vst [vmem:[%s1703_s4 + $0x38] sm:$0xff] %v234_v7  ;;  %v252_v16 = vld [vmem:[%s1698_s3 + $0x100] sm:$0xff]  ;;  %v254_v17 = vld [vmem:[%s1698_s3 + $0x110] sm:$0xff] }
  0x1f   : > { %237 = vst [vmem:[%s1703_s4 + $0x40] sm:$0xff] %v236_v8  ;;  %v256_v18 = vld [vmem:[%s1698_s3 + $0x120] sm:$0xff]  ;;  %v258_v19 = vld [vmem:[%s1698_s3 + $0x130] sm:$0xff] }
  0x20   : > { %239 = vst [vmem:[%s1703_s4 + $0x48] sm:$0xff] %v238_v9  ;;  %v260_v20 = vld [vmem:[%s1698_s3 + $0x140] sm:$0xff]  ;;  %v262_v21 = vld [vmem:[%s1698_s3 + $0x150] sm:$0xff] }
  0x21   : > { %241 = vst [vmem:[%s1703_s4 + $0x50] sm:$0xff] %v240_v10  ;;  %v264_v22 = vld [vmem:[%s1698_s3 + $0x160] sm:$0xff]  ;;  %v266_v23 = vld [vmem:[%s1698_s3 + $0x170] sm:$0xff] }
  0x22   : > { %243 = vst [vmem:[%s1703_s4 + $0x58] sm:$0xff] %v242_v11  ;;  %v268_v24 = vld [vmem:[%s1698_s3 + $0x180] sm:$0xff]  ;;  %v270_v25 = vld [vmem:[%s1698_s3 + $0x190] sm:$0xff] }
  0x23   : > { %245 = vst [vmem:[%s1703_s4 + $0x60] sm:$0xff] %v244_v12  ;;  %v272_v26 = vld [vmem:[%s1698_s3 + $0x1a0] sm:$0xff]  ;;  %v274_v27 = vld [vmem:[%s1698_s3 + $0x1b0] sm:$0xff] }
  0x24   : > { %247 = vst [vmem:[%s1703_s4 + $0x68] sm:$0xff] %v246_v13  ;;  %v276_v28 = vld [vmem:[%s1698_s3 + $0x1c0] sm:$0xff]  ;;  %v278_v29 = vld [vmem:[%s1698_s3 + $0x1d0] sm:$0xff] }
  0x25   : > { %249 = vst [vmem:[%s1703_s4 + $0x70] sm:$0xff] %v248_v14  ;;  %v280_v30 = vld [vmem:[%s1698_s3 + $0x1e0] sm:$0xff]  ;;  %v282_v31 = vld [vmem:[%s1698_s3 + $0x1f0] sm:$0xff] }
  0x26   : > { %251 = vst [vmem:[%s1703_s4 + $0x78] sm:$0xff] %v250_v15 }
  0x27   : > { %253 = vst [vmem:[%s1703_s4 + $0x80] sm:$0xff] %v252_v16 }
  0x28   : > { %255 = vst [vmem:[%s1703_s4 + $0x88] sm:$0xff] %v254_v17 }
  0x29   : > { %257 = vst [vmem:[%s1703_s4 + $0x90] sm:$0xff] %v256_v18 }
  0x2a   : > { %259 = vst [vmem:[%s1703_s4 + $0x98] sm:$0xff] %v258_v19 }
  0x2b   : > { %261 = vst [vmem:[%s1703_s4 + $0xa0] sm:$0xff] %v260_v20 }
  0x2c   : > { %263 = vst [vmem:[%s1703_s4 + $0xa8] sm:$0xff] %v262_v21 }
  0x2d   : > { %265 = vst [vmem:[%s1703_s4 + $0xb0] sm:$0xff] %v264_v22 }
  0x2e   : > { %267 = vst [vmem:[%s1703_s4 + $0xb8] sm:$0xff] %v266_v23 }
  0x2f   : > { %269 = vst [vmem:[%s1703_s4 + $0xc0] sm:$0xff] %v268_v24 }
  0x30   : > { %271 = vst [vmem:[%s1703_s4 + $0xc8] sm:$0xff] %v270_v25 }
  0x31   : > { %273 = vst [vmem:[%s1703_s4 + $0xd0] sm:$0xff] %v272_v26 }
  0x32   : > { %275 = vst [vmem:[%s1703_s4 + $0xd8] sm:$0xff] %v274_v27 }
  0x33   : > { %277 = vst [vmem:[%s1703_s4 + $0xe0] sm:$0xff] %v276_v28 }
  0x34   : > { %279 = vst [vmem:[%s1703_s4 + $0xe8] sm:$0xff] %v278_v29 }
  0x35   : > { %281 = vst [vmem:[%s1703_s4 + $0xf0] sm:$0xff] %v280_v30 }
  0x36   : > { %283 = vst [vmem:[%s1703_s4 + $0xf8] sm:$0xff] %v282_v31 }
  0x37 PF: > { %p1147_p7 = scmp.ge.s32.totalorder %s1620_s15, 1  ;;  %p288_p8 = scmp.lt.s32.totalorder %s1620_s15, 5 }
  0x39   : > { %p289_p9 = pnand %p1147_p7, %p288_p8 }
  0x3a   : > { %s295_s5 = sand.u32 (!%p289_p9), 1, %s1596_s9   ;;  %s1149_s6 = sshll.u32 (!%p289_p9), %s1608_s12, 5 }
  0x3b   : > { %292 = sbr.rel (%p289_p9) target bundleno = 415 (0x19f), region = 62  ;;  %s1148_s7 = sshll.u32 (!%p289_p9), %s295_s5, 8 }
  0x3c   : > { %p319_p10 = scmp.lt.s32.totalorder (!%p289_p9), %s1149_s6, 63  ;;  %s1775_s21 = scalar_lea.vmem (!%p289_p9), [#allocation3], %s1148_s7 }
  0x3d   : > { %p1151_p11 = scmp.ne.s32.totalorder (!%p289_p9), %s1604_s11, 0 }
  0x40   : > { %s1918_s6 = smov (!%p319_p10, %s1149_s6), 63  ;;  %327 = sbr.rel (%p1151_p11) target bundleno = 102 (0x66), region = 70 }
  0x41   : > { %s1150_s8 = sshll.u32 %s1918_s6, 2 }
  0x42   : > { %s1773_s20 = scalar_lea.vmem %s1904_s2, %s1150_s8 }
  0x45   : > { %v1622_v32 = vmov 0.0  }
  0x46   : > { %328 = vst [vmem:[#allocation2 + $0xb0] sm:$0xff] %v1622_v32 }
  0x47   : > { %329 = vst [vmem:[#allocation2] sm:$0xff] %v1622_v32 }
  0x48   : > { %330 = vst [vmem:[#allocation2 + $0xd8] sm:$0xff] %v1622_v32 }
  0x49   : > { %331 = vst [vmem:[#allocation2 + $0x18] sm:$0xff] %v1622_v32 }
  0x4a   : > { %332 = vst [vmem:[#allocation2 + $0x50] sm:$0xff] %v1622_v32 }
  0x4b   : > { %333 = vst [vmem:[#allocation2 + $0x68] sm:$0xff] %v1622_v32 }
  0x4c   : > { %334 = vst [vmem:[#allocation2 + $0x30] sm:$0xff] %v1622_v32 }
  0x4d   : > { %335 = vst [vmem:[#allocation2 + $0x48] sm:$0xff] %v1622_v32 }
  0x4e   : > { %336 = vst [vmem:[#allocation2 + $0x80] sm:$0xff] %v1622_v32 }
  0x4f   : > { %337 = vst [vmem:[#allocation2 + $0x88] sm:$0xff] %v1622_v32 }
  0x50   : > { %338 = vst [vmem:[#allocation2 + $0xe8] sm:$0xff] %v1622_v32 }
  0x51   : > { %339 = vst [vmem:[#allocation2 + $0xb8] sm:$0xff] %v1622_v32 }
  0x52   : > { %340 = vst [vmem:[#allocation2 + $0x60] sm:$0xff] %v1622_v32 }
  0x53   : > { %341 = vst [vmem:[#allocation2 + $0xf0] sm:$0xff] %v1622_v32 }
  0x54   : > { %342 = vst [vmem:[#allocation2 + $0x8] sm:$0xff] %v1622_v32 }
  0x55   : > { %343 = vst [vmem:[#allocation2 + $0x78] sm:$0xff] %v1622_v32 }
  0x56   : > { %344 = vst [vmem:[#allocation2 + $0x38] sm:$0xff] %v1622_v32 }
  0x57   : > { %345 = vst [vmem:[#allocation2 + $0x58] sm:$0xff] %v1622_v32 }
  0x58   : > { %346 = vst [vmem:[#allocation2 + $0x40] sm:$0xff] %v1622_v32 }
  0x59   : > { %347 = vst [vmem:[#allocation2 + $0xc8] sm:$0xff] %v1622_v32 }
  0x5a   : > { %348 = vst [vmem:[#allocation2 + $0xe0] sm:$0xff] %v1622_v32 }
  0x5b   : > { %349 = vst [vmem:[#allocation2 + $0x90] sm:$0xff] %v1622_v32 }
  0x5c   : > { %350 = vst [vmem:[#allocation2 + $0x70] sm:$0xff] %v1622_v32 }
  0x5d   : > { %351 = vst [vmem:[#allocation2 + $0xc0] sm:$0xff] %v1622_v32 }
  0x5e   : > { %352 = vst [vmem:[#allocation2 + $0xa8] sm:$0xff] %v1622_v32 }
  0x5f   : > { %353 = vst [vmem:[#allocation2 + $0xd0] sm:$0xff] %v1622_v32 }
  0x60   : > { %354 = vst [vmem:[#allocation2 + $0x10] sm:$0xff] %v1622_v32 }
  0x61   : > { %355 = vst [vmem:[#allocation2 + $0x28] sm:$0xff] %v1622_v32 }
  0x62   : > { %356 = vst [vmem:[#allocation2 + $0xa0] sm:$0xff] %v1622_v32 }
  0x63   : > { %357 = vst [vmem:[#allocation2 + $0xf8] sm:$0xff] %v1622_v32 }
  0x64   : > { %358 = vst [vmem:[#allocation2 + $0x20] sm:$0xff] %v1622_v32 }
  0x65   : > { %359 = vst [vmem:[#allocation2 + $0x98] sm:$0xff] %v1622_v32 }
  0x66 PF: > { %s1152_s9 = sshll.u32 %s1604_s11, 8  ;;  %v1156_v47 = vld [vmem:[%s1775_s21] sm:$0xf]  ;;  %v1367_v49 = vld [vmem:[%s1775_s21 + $0x4] sm:$0xf0]  ;;  %p1346_p12 = scmp.ne.s32.totalorder %s1604_s11, 1 }
  0x67   : > { %s361_s12 = sshra.s32 %s1152_s9, 3  ;;  %v1220_v50 = vld [vmem:[%s1775_s21 + $0x80] sm:$0xf]  ;;  %v1383_v52 = vld [vmem:[%s1775_s21 + $0x84] sm:$0xf0]  ;;  %v1157_v57 = vor.u32 %v1367_v49, %v1156_v47 }
  0x68   : > { %s1153_s23 = sshll.u32 %s361_s12, 2  ;;  %v1366_v53 = vld [vmem:[%s1775_s21 + $0x4] sm:$0xf]  ;;  %v1158_v54 = vld [vmem:[%s1775_s21 + $0x8] sm:$0xf0]  ;;  %v1221_v58 = vor.u32 %v1383_v52, %v1220_v50 }
  0x69   : > { %s1782_s26 = scalar_lea.vmem %s1903_s1, %s1153_s23  ;;  %v1382_v55 = vld [vmem:[%s1775_s21 + $0x84] sm:$0xf]  ;;  %v1222_v56 = vld [vmem:[%s1775_s21 + $0x88] sm:$0xf0]  ;;  %v1161_v59 = vor.u32 %v1366_v53, %v1158_v54  ;;  %v1164_v61 = vld [vmem:[%s1775_s21 + $0x10] sm:$0xf] }
  0x6a   : > { %v1357_v33 = vld [vmem:[%s1782_s26 + $0x38] sm:$0xff]  ;;  %v1356_v35 = vld [vmem:[%s1782_s26 + $0x30] sm:$0xff]  ;;  %v1355_v37 = vld [vmem:[%s1782_s26 + $0x28] sm:$0xff]  ;;  %v1225_v60 = vor.u32 %v1382_v55, %v1222_v56 }
  0x6b   : > { %v1365_v34 = vld [vmem:[%s1782_s26 + $0x78] sm:$0xff]  ;;  %717 = vmatpush.bf16.msra.mxu0 %v1357_v33  ;;  %1493 = vmatpush.bf16.msra.mxu2 %v1357_v33  ;;  %v1364_v36 = vld [vmem:[%s1782_s26 + $0x70] sm:$0xff]  ;;  %v1363_v38 = vld [vmem:[%s1782_s26 + $0x68] sm:$0xff] }
  0x6c   : > { %806 = vmatpush.bf16.msra.mxu1 %v1365_v34  ;;  %1501 = vmatpush.bf16.msra.mxu3 %v1365_v34  ;;  %v1354_v39 = vld [vmem:[%s1782_s26 + $0x20] sm:$0xff]  ;;  %v1353_v41 = vld [vmem:[%s1782_s26 + $0x18] sm:$0xff]  ;;  %v1352_v43 = vld [vmem:[%s1782_s26 + $0x10] sm:$0xff] }
  0x6d   : > { %v1362_v40 = vld [vmem:[%s1782_s26 + $0x60] sm:$0xff]  ;;  %v1361_v42 = vld [vmem:[%s1782_s26 + $0x58] sm:$0xff]  ;;  %v1360_v44 = vld [vmem:[%s1782_s26 + $0x50] sm:$0xff] }
  0x6e   : > { %v1351_v45 = vld [vmem:[%s1782_s26 + $0x8] sm:$0xff]  ;;  %v1350_v48 = vld [vmem:[%s1782_s26] sm:$0xff]  ;;  %v1369_v62 = vld [vmem:[%s1775_s21 + $0x14] sm:$0xf0] }
  0x6f   : > { %718 = vmatpush.bf16.msra.mxu0 %v1356_v35  ;;  %1494 = vmatpush.bf16.msra.mxu2 %v1356_v35  ;;  %v1359_v46 = vld [vmem:[%s1782_s26 + $0x48] sm:$0xff]  ;;  %v1358_v51 = vld [vmem:[%s1782_s26 + $0x40] sm:$0xff]  ;;  %v1228_v63 = vld [vmem:[%s1775_s21 + $0x90] sm:$0xf]  ;;  %v1165_v5 = vor.u32 %v1369_v62, %v1164_v61 }
  0x70   : > { %807 = vmatpush.bf16.msra.mxu1 %v1364_v36  ;;  %1502 = vmatpush.bf16.msra.mxu3 %v1364_v36  ;;  %v1385_v0 = vld [vmem:[%s1775_s21 + $0x94] sm:$0xf0]  ;;  %v1368_v1 = vld [vmem:[%s1775_s21 + $0x14] sm:$0xf]  ;;  %v1166_v2 = vld [vmem:[%s1775_s21 + $0x18] sm:$0xf0] }
  0x71   : > { %v1384_v3 = vld [vmem:[%s1775_s21 + $0x94] sm:$0xf]  ;;  %v1230_v4 = vld [vmem:[%s1775_s21 + $0x98] sm:$0xf0]  ;;  %v1229_v6 = vor.u32 %v1385_v0, %v1228_v63  ;;  %v1169_v7 = vor.u32 %v1368_v1, %v1166_v2  ;;  %v1172_v9 = vld [vmem:[%s1775_s21 + $0x20] sm:$0xf] }
  0x72   : > { %v1233_v8 = vor.u32 %v1384_v3, %v1230_v4  ;;  %v1371_v10 = vld [vmem:[%s1775_s21 + $0x24] sm:$0xf0]  ;;  %v1236_v11 = vld [vmem:[%s1775_s21 + $0xa0] sm:$0xf]  ;;  %v1370_v13 = vld [vmem:[%s1775_s21 + $0x24] sm:$0xf] }
  0x73   : > { %719 = vmatpush.bf16.msra.mxu0 %v1355_v37  ;;  %1495 = vmatpush.bf16.msra.mxu2 %v1355_v37  ;;  %v1387_v12 = vld [vmem:[%s1775_s21 + $0xa4] sm:$0xf0]  ;;  %v1174_v14 = vld [vmem:[%s1775_s21 + $0x28] sm:$0xf0]  ;;  %v1386_v15 = vld [vmem:[%s1775_s21 + $0xa4] sm:$0xf]  ;;  %v1173_v17 = vor.u32 %v1371_v10, %v1172_v9 }
  0x74   : > { %808 = vmatpush.bf16.msra.mxu1 %v1363_v38  ;;  %1503 = vmatpush.bf16.msra.mxu3 %v1363_v38  ;;  %v1238_v16 = vld [vmem:[%s1775_s21 + $0xa8] sm:$0xf0]  ;;  %v1237_v18 = vor.u32 %v1387_v12, %v1236_v11  ;;  %v1177_v19 = vor.u32 %v1370_v13, %v1174_v14  ;;  %v1180_v21 = vld [vmem:[%s1775_s21 + $0x30] sm:$0xf]  ;;  %v1373_v22 = vld [vmem:[%s1775_s21 + $0x34] sm:$0xf0] }
  0x75   : > { %v1241_v20 = vor.u32 %v1386_v15, %v1238_v16  ;;  %v1244_v23 = vld [vmem:[%s1775_s21 + $0xb0] sm:$0xf]  ;;  %v1389_v24 = vld [vmem:[%s1775_s21 + $0xb4] sm:$0xf0]  ;;  %v1372_v25 = vld [vmem:[%s1775_s21 + $0x34] sm:$0xf]  ;;  %v1181_v29 = vor.u32 %v1373_v22, %v1180_v21 }
  0x76   : > { %v1182_v26 = vld [vmem:[%s1775_s21 + $0x38] sm:$0xf0]  ;;  %v1388_v27 = vld [vmem:[%s1775_s21 + $0xb4] sm:$0xf]  ;;  %v1245_v30 = vor.u32 %v1389_v24, %v1244_v23  ;;  %v1188_v33 = vld [vmem:[%s1775_s21 + $0x40] sm:$0xf] }
  0x77   : > { %720 = vmatpush.bf16.msra.mxu0 %v1354_v39  ;;  %1496 = vmatpush.bf16.msra.mxu2 %v1354_v39  ;;  %v1246_v28 = vld [vmem:[%s1775_s21 + $0xb8] sm:$0xf0]  ;;  %v1185_v31 = vor.u32 %v1372_v25, %v1182_v26  ;;  %v1375_v34 = vld [vmem:[%s1775_s21 + $0x44] sm:$0xf0]  ;;  %v1252_v35 = vld [vmem:[%s1775_s21 + $0xc0] sm:$0xf] }
  0x78   : > { %809 = vmatpush.bf16.msra.mxu1 %v1362_v40  ;;  %1504 = vmatpush.bf16.msra.mxu3 %v1362_v40  ;;  %v1249_v32 = vor.u32 %v1388_v27, %v1246_v28  ;;  %v1391_v36 = vld [vmem:[%s1775_s21 + $0xc4] sm:$0xf0]  ;;  %v1374_v37 = vld [vmem:[%s1775_s21 + $0x44] sm:$0xf]  ;;  %v1190_v38 = vld [vmem:[%s1775_s21 + $0x48] sm:$0xf0] }
  0x79   : > { %v1390_v39 = vld [vmem:[%s1775_s21 + $0xc4] sm:$0xf]  ;;  %v1254_v40 = vld [vmem:[%s1775_s21 + $0xc8] sm:$0xf0]  ;;  %v1260_v47 = vld [vmem:[%s1775_s21 + $0xd0] sm:$0xf] }
  0x7a   : > { %v1376_v49 = vld [vmem:[%s1775_s21 + $0x54] sm:$0xf]  ;;  %v1198_v50 = vld [vmem:[%s1775_s21 + $0x58] sm:$0xf0]  ;;  %v1378_v61 = vld [vmem:[%s1775_s21 + $0x64] sm:$0xf] }
  0x7b   : > { %721 = vmatpush.bf16.msra.mxu0 %v1353_v41  ;;  %1497 = vmatpush.bf16.msra.mxu2 %v1353_v41  ;;  %v1189_v41 = vor.u32 %v1375_v34, %v1188_v33  ;;  %v1262_v52 = vld [vmem:[%s1775_s21 + $0xd8] sm:$0xf0]  ;;  %v1201_v55 = vor.u32 %v1376_v49, %v1198_v50  ;;  %v1206_v62 = vld [vmem:[%s1775_s21 + $0x68] sm:$0xf0]  ;;  %v1394_v63 = vld [vmem:[%s1775_s21 + $0xe4] sm:$0xf] }
  0x7c   : > { %810 = vmatpush.bf16.msra.mxu1 %v1361_v42  ;;  %1505 = vmatpush.bf16.msra.mxu3 %v1361_v42  ;;  %v1253_v42 = vor.u32 %v1391_v36, %v1252_v35  ;;  %v1270_v0 = vld [vmem:[%s1775_s21 + $0xe8] sm:$0xf0]  ;;  %v1209_v3 = vor.u32 %v1378_v61, %v1206_v62  ;;  %v1380_v9 = vld [vmem:[%s1775_s21 + $0x74] sm:$0xf]  ;;  %v1214_v10 = vld [vmem:[%s1775_s21 + $0x78] sm:$0xf0] }
  0x7d   : > { %v1273_v4 = vor.u32 %v1394_v63, %v1270_v0  ;;  %v1396_v11 = vld [vmem:[%s1775_s21 + $0xf4] sm:$0xf]  ;;  %v1278_v12 = vld [vmem:[%s1775_s21 + $0xf8] sm:$0xf0]  ;;  %v1217_v15 = vor.u32 %v1380_v9, %v1214_v10  ;;  %v398_v27 = vld [vmem:[#allocation2] sm:$0xff] }
  0x7e   : > { %v1281_v16 = vor.u32 %v1396_v11, %v1278_v12  ;;  %v413_v23 = vld [vmem:[#allocation2 + $0x38] sm:$0xff]  ;;  %v417_v63 = vld [vmem:[#allocation2 + $0xe0] sm:$0xff]  ;;  %v418_v9 = vld [vmem:[#allocation2 + $0x90] sm:$0xff] }
  0x7f   : > { %722 = vmatpush.bf16.msra.mxu0 %v1352_v43  ;;  %1498 = vmatpush.bf16.msra.mxu2 %v1352_v43  ;;  %v1193_v43 = vor.u32 %v1374_v37, %v1190_v38  ;;  %v414_v33 = vld [vmem:[#allocation2 + $0x58] sm:$0xff] }
  0x80   : > { %811 = vmatpush.bf16.msra.mxu1 %v1360_v44  ;;  %1506 = vmatpush.bf16.msra.mxu3 %v1360_v44  ;;  %v1257_v44 = vor.u32 %v1390_v39, %v1254_v40  ;;  %v399_v37 = vld [vmem:[#allocation2 + $0xd8] sm:$0xff] }
  0x83   : > { %723 = vmatpush.bf16.msra.mxu0 %v1351_v45  ;;  %1499 = vmatpush.bf16.msra.mxu2 %v1351_v45  ;;  %v1196_v45 = vld [vmem:[%s1775_s21 + $0x50] sm:$0xf] }
  0x84   : > { %812 = vmatpush.bf16.msra.mxu1 %v1359_v46  ;;  %1507 = vmatpush.bf16.msra.mxu3 %v1359_v46  ;;  %v1377_v46 = vld [vmem:[%s1775_s21 + $0x54] sm:$0xf0] }
  0x85   : > { %v1197_v53 = vor.u32 %v1377_v46, %v1196_v45 }
  0x87   : > { %724 = vmatpush.bf16.msra.mxu0 %v1350_v48  ;;  %1500 = vmatpush.bf16.msra.mxu2 %v1350_v48  ;;  %v1393_v48 = vld [vmem:[%s1775_s21 + $0xd4] sm:$0xf0] }
  0x88   : > { %813 = vmatpush.bf16.msra.mxu1 %v1358_v51  ;;  %1508 = vmatpush.bf16.msra.mxu3 %v1358_v51  ;;  %v1392_v51 = vld [vmem:[%s1775_s21 + $0xd4] sm:$0xf]  ;;  %v1261_v54 = vor.u32 %v1393_v48, %v1260_v47  ;;  %v400_v47 = vld [vmem:[#allocation2 + $0x18] sm:$0xff] }
  0x89   : > { %v1265_v56 = vor.u32 %v1392_v51, %v1262_v52 }
  0x8a   : > { %725 = vmatmul.bf16.vlgmr.msra.gmra.mxu0 %v1157_v57  ;;  %765 = vmatmul.bf16.vlgmr.msra.gmra.mxu2 %v1221_v58  ;;  %v1204_v57 = vld [vmem:[%s1775_s21 + $0x60] sm:$0xf]  ;;  %v1379_v58 = vld [vmem:[%s1775_s21 + $0x64] sm:$0xf0] }
  0x8b   : > { %814 = vmatmul.bf16.vlgmr.msra.gmra.mxu1 %v1161_v59  ;;  %854 = vmatmul.bf16.vlgmr.msra.gmra.mxu3 %v1225_v60  ;;  %v1268_v59 = vld [vmem:[%s1775_s21 + $0xe0] sm:$0xf]  ;;  %v1395_v60 = vld [vmem:[%s1775_s21 + $0xe4] sm:$0xf0]  ;;  %v1205_v1 = vor.u32 %v1379_v58, %v1204_v57  ;;  %v401_v57 = vld [vmem:[#allocation2 + $0x50] sm:$0xff] }
  0x8c   : > { %v1269_v2 = vor.u32 %v1395_v60, %v1268_v59 }
  0x9a   : > { %730 = vmatmul.bf16.gmra.mxu0 %v1165_v5  ;;  %770 = vmatmul.bf16.gmra.mxu2 %v1229_v6  ;;  %v1212_v5 = vld [vmem:[%s1775_s21 + $0x70] sm:$0xf]  ;;  %v1381_v6 = vld [vmem:[%s1775_s21 + $0x74] sm:$0xf0] }
  0x9b   : > { %819 = vmatmul.bf16.gmra.mxu1 %v1169_v7  ;;  %859 = vmatmul.bf16.gmra.mxu3 %v1233_v8  ;;  %v1276_v7 = vld [vmem:[%s1775_s21 + $0xf0] sm:$0xf]  ;;  %v1397_v8 = vld [vmem:[%s1775_s21 + $0xf4] sm:$0xf0]  ;;  %v1213_v13 = vor.u32 %v1381_v6, %v1212_v5 }
  0x9c   : > { %v1277_v14 = vor.u32 %v1397_v8, %v1276_v7 }
  0xaa   : > { %735 = vmatmul.bf16.gmra.mxu0 %v1173_v17  ;;  %775 = vmatmul.bf16.gmra.mxu2 %v1237_v18  ;;  %v397_v18 = vld [vmem:[#allocation2 + $0xb0] sm:$0xff] }
  0xab   : > { %824 = vmatmul.bf16.gmra.mxu1 %v1177_v19  ;;  %864 = vmatmul.bf16.gmra.mxu3 %v1241_v20 }
  0xba   : > { %740 = vmatmul.bf16.gmra.mxu0 %v1181_v29  ;;  %780 = vmatmul.bf16.gmra.mxu2 %v1245_v30 }
  0xbb   : > { %829 = vmatmul.bf16.gmra.mxu1 %v1185_v31  ;;  %869 = vmatmul.bf16.gmra.mxu3 %v1249_v32 }
  0xca   : > { %745 = vmatmul.bf16.gmra.mxu0 %v1189_v41  ;;  %785 = vmatmul.bf16.gmra.mxu2 %v1253_v42 }
  0xcb   : > { %834 = vmatmul.bf16.gmra.mxu1 %v1193_v43  ;;  %874 = vmatmul.bf16.gmra.mxu3 %v1257_v44  ;;  %v415_v43 = vld [vmem:[#allocation2 + $0x40] sm:$0xff] }
  0xda   : > { %750 = vmatmul.bf16.gmra.mxu0 %v1197_v53  ;;  %790 = vmatmul.bf16.gmra.mxu2 %v1261_v54  ;;  %v416_v53 = vld [vmem:[#allocation2 + $0xc8] sm:$0xff] }
  0xdb   : > { %839 = vmatmul.bf16.gmra.mxu1 %v1201_v55  ;;  %879 = vmatmul.bf16.gmra.mxu3 %v1265_v56 }
  0xea   : > { %755 = vmatmul.bf16.gmra.mxu0 %v1205_v1  ;;  %795 = vmatmul.bf16.gmra.mxu2 %v1269_v2 }
  0xeb   : > { %844 = vmatmul.bf16.gmra.mxu1 %v1209_v3  ;;  %884 = vmatmul.bf16.gmra.mxu3 %v1273_v4  ;;  %v402_v3 = vld [vmem:[#allocation2 + $0x68] sm:$0xff] }
  0xfa   : > { %760 = vmatmul.bf16.gmra.mxu0 %v1213_v13  ;;  %800 = vmatmul.bf16.gmra.mxu2 %v1277_v14  ;;  %v403_v13 = vld [vmem:[#allocation2 + $0x30] sm:$0xff] }
  0xfb   : > { %849 = vmatmul.bf16.gmra.mxu1 %v1217_v15  ;;  %889 = vmatmul.bf16.gmra.mxu3 %v1281_v16 }
 0x107   : > { %v726_v17 = vpop.f32.mrf.mxu0 }
 0x108   : > { %v815_v19 = vpop.f32.mrf.mxu1 }
 0x109   : > { %v816_v20 = vadd.f32 %v815_v19, %v726_v17  ;;  %v419_v19 = vld [vmem:[#allocation2 + $0x70] sm:$0xff] }
 0x10b   : > { %v895_v21 = vadd.f32 %v816_v20, %v397_v18 }
 0x10d   : > { %927 = vst [vmem:[#allocation2 + $0xb0] sm:$0xff] %v895_v21  ;;  %v766_v22 = vpop.f32.mrf.mxu2 }
 0x10e   : > { %v855_v24 = vpop.f32.mrf.mxu3 }
 0x10f   : > { %v856_v25 = vadd.f32 %v855_v24, %v766_v22  ;;  %v728_v26 = vpop.f32.mrf.mxu0 }
 0x110   : > { %v817_v28 = vpop.f32.mrf.mxu1 }
 0x111   : > { %v911_v29 = vadd.f32 %v856_v25, %v413_v23  ;;  %v818_v30 = vadd.f32 %v817_v28, %v728_v26  ;;  %v404_v23 = vld [vmem:[#allocation2 + $0x48] sm:$0xff] }
 0x113   : > { %943 = vst [vmem:[#allocation2 + $0x38] sm:$0xff] %v911_v29  ;;  %v896_v31 = vadd.f32 %v818_v30, %v398_v27  ;;  %v420_v29 = vld [vmem:[#allocation2 + $0xc0] sm:$0xff] }
 0x115   : > { %928 = vst [vmem:[#allocation2] sm:$0xff] %v896_v31  ;;  %v768_v32 = vpop.f32.mrf.mxu2 }
 0x116   : > { %v857_v34 = vpop.f32.mrf.mxu3 }
 0x117   : > { %v858_v35 = vadd.f32 %v857_v34, %v768_v32  ;;  %v731_v36 = vpop.f32.mrf.mxu0 }
 0x118   : > { %v820_v38 = vpop.f32.mrf.mxu1 }
 0x119   : > { %v912_v39 = vadd.f32 %v858_v35, %v414_v33  ;;  %v821_v40 = vadd.f32 %v820_v38, %v731_v36  ;;  %v405_v33 = vld [vmem:[#allocation2 + $0x80] sm:$0xff] }
 0x11b   : > { %944 = vst [vmem:[#allocation2 + $0x58] sm:$0xff] %v912_v39  ;;  %v897_v41 = vadd.f32 %v821_v40, %v399_v37  ;;  %v421_v39 = vld [vmem:[#allocation2 + $0xa8] sm:$0xff] }
 0x11d   : > { %929 = vst [vmem:[#allocation2 + $0xd8] sm:$0xff] %v897_v41  ;;  %v771_v42 = vpop.f32.mrf.mxu2 }
 0x11e   : > { %v860_v44 = vpop.f32.mrf.mxu3 }
 0x11f   : > { %v861_v45 = vadd.f32 %v860_v44, %v771_v42  ;;  %v733_v46 = vpop.f32.mrf.mxu0 }
 0x120   : > { %v822_v48 = vpop.f32.mrf.mxu1 }
 0x121   : > { %v913_v49 = vadd.f32 %v861_v45, %v415_v43  ;;  %v823_v50 = vadd.f32 %v822_v48, %v733_v46  ;;  %v406_v43 = vld [vmem:[#allocation2 + $0x88] sm:$0xff] }
 0x123   : > { %945 = vst [vmem:[#allocation2 + $0x40] sm:$0xff] %v913_v49  ;;  %v898_v51 = vadd.f32 %v823_v50, %v400_v47  ;;  %v422_v49 = vld [vmem:[#allocation2 + $0xd0] sm:$0xff] }
 0x125   : > { %930 = vst [vmem:[#allocation2 + $0x18] sm:$0xff] %v898_v51  ;;  %v773_v52 = vpop.f32.mrf.mxu2 }
 0x126   : > { %v862_v54 = vpop.f32.mrf.mxu3 }
 0x127   : > { %v863_v55 = vadd.f32 %v862_v54, %v773_v52  ;;  %v736_v56 = vpop.f32.mrf.mxu0 }
 0x128   : > { %v825_v58 = vpop.f32.mrf.mxu1 }
 0x129   : > { %v914_v59 = vadd.f32 %v863_v55, %v416_v53  ;;  %v826_v60 = vadd.f32 %v825_v58, %v736_v56  ;;  %v407_v53 = vld [vmem:[#allocation2 + $0xe8] sm:$0xff] }
 0x12b   : > { %946 = vst [vmem:[#allocation2 + $0xc8] sm:$0xff] %v914_v59  ;;  %v899_v61 = vadd.f32 %v826_v60, %v401_v57  ;;  %v423_v59 = vld [vmem:[#allocation2 + $0x10] sm:$0xff] }
 0x12d   : > { %931 = vst [vmem:[#allocation2 + $0x50] sm:$0xff] %v899_v61  ;;  %v776_v62 = vpop.f32.mrf.mxu2 }
 0x12e   : > { %v865_v0 = vpop.f32.mrf.mxu3 }
 0x12f   : > { %v866_v1 = vadd.f32 %v865_v0, %v776_v62  ;;  %v738_v2 = vpop.f32.mrf.mxu0 }
 0x130   : > { %v827_v4 = vpop.f32.mrf.mxu1 }
 0x131   : > { %v915_v5 = vadd.f32 %v866_v1, %v417_v63  ;;  %v828_v6 = vadd.f32 %v827_v4, %v738_v2  ;;  %v408_v63 = vld [vmem:[#allocation2 + $0xb8] sm:$0xff] }
 0x133   : > { %947 = vst [vmem:[#allocation2 + $0xe0] sm:$0xff] %v915_v5  ;;  %v900_v7 = vadd.f32 %v828_v6, %v402_v3  ;;  %v424_v5 = vld [vmem:[#allocation2 + $0x28] sm:$0xff] }
 0x135   : > { %932 = vst [vmem:[#allocation2 + $0x68] sm:$0xff] %v900_v7  ;;  %v778_v8 = vpop.f32.mrf.mxu2 }
 0x136   : > { %v867_v10 = vpop.f32.mrf.mxu3 }
 0x137   : > { %v868_v11 = vadd.f32 %v867_v10, %v778_v8  ;;  %v741_v12 = vpop.f32.mrf.mxu0 }
 0x138   : > { %v830_v14 = vpop.f32.mrf.mxu1 }
 0x139   : > { %v916_v15 = vadd.f32 %v868_v11, %v418_v9  ;;  %v831_v16 = vadd.f32 %v830_v14, %v741_v12  ;;  %v409_v9 = vld [vmem:[#allocation2 + $0x60] sm:$0xff] }
 0x13b   : > { %948 = vst [vmem:[#allocation2 + $0x90] sm:$0xff] %v916_v15  ;;  %v901_v17 = vadd.f32 %v831_v16, %v403_v13  ;;  %v425_v15 = vld [vmem:[#allocation2 + $0xa0] sm:$0xff] }
 0x13d   : > { %933 = vst [vmem:[#allocation2 + $0x30] sm:$0xff] %v901_v17  ;;  %v781_v18 = vpop.f32.mrf.mxu2 }
 0x13e   : > { %v870_v20 = vpop.f32.mrf.mxu3 }
 0x13f   : > { %v871_v21 = vadd.f32 %v870_v20, %v781_v18  ;;  %v743_v22 = vpop.f32.mrf.mxu0 }
 0x140   : > { %v832_v24 = vpop.f32.mrf.mxu1 }
 0x141   : > { %v917_v25 = vadd.f32 %v871_v21, %v419_v19  ;;  %v833_v26 = vadd.f32 %v832_v24, %v743_v22  ;;  %v410_v19 = vld [vmem:[#allocation2 + $0xf0] sm:$0xff] }
 0x143   : > { %949 = vst [vmem:[#allocation2 + $0x70] sm:$0xff] %v917_v25  ;;  %v902_v27 = vadd.f32 %v833_v26, %v404_v23  ;;  %v426_v25 = vld [vmem:[#allocation2 + $0xf8] sm:$0xff] }
 0x145   : > { %934 = vst [vmem:[#allocation2 + $0x48] sm:$0xff] %v902_v27  ;;  %v783_v28 = vpop.f32.mrf.mxu2 }
 0x146   : > { %v872_v30 = vpop.f32.mrf.mxu3 }
 0x147   : > { %v873_v31 = vadd.f32 %v872_v30, %v783_v28  ;;  %v746_v32 = vpop.f32.mrf.mxu0 }
 0x148   : > { %v835_v34 = vpop.f32.mrf.mxu1 }
 0x149   : > { %v918_v35 = vadd.f32 %v873_v31, %v420_v29  ;;  %v836_v36 = vadd.f32 %v835_v34, %v746_v32  ;;  %v411_v29 = vld [vmem:[#allocation2 + $0x8] sm:$0xff] }
 0x14b   : > { %950 = vst [vmem:[#allocation2 + $0xc0] sm:$0xff] %v918_v35  ;;  %v903_v37 = vadd.f32 %v836_v36, %v405_v33  ;;  %v427_v35 = vld [vmem:[#allocation2 + $0x20] sm:$0xff] }
 0x14d   : > { %935 = vst [vmem:[#allocation2 + $0x80] sm:$0xff] %v903_v37  ;;  %v786_v38 = vpop.f32.mrf.mxu2 }
 0x14e   : > { %v875_v40 = vpop.f32.mrf.mxu3 }
 0x14f   : > { %v876_v41 = vadd.f32 %v875_v40, %v786_v38  ;;  %v748_v42 = vpop.f32.mrf.mxu0 }
 0x150   : > { %v837_v44 = vpop.f32.mrf.mxu1 }
 0x151   : > { %v919_v45 = vadd.f32 %v876_v41, %v421_v39  ;;  %v838_v46 = vadd.f32 %v837_v44, %v748_v42  ;;  %v412_v39 = vld [vmem:[#allocation2 + $0x78] sm:$0xff] }
 0x153   : > { %951 = vst [vmem:[#allocation2 + $0xa8] sm:$0xff] %v919_v45  ;;  %v904_v47 = vadd.f32 %v838_v46, %v406_v43  ;;  %v428_v45 = vld [vmem:[#allocation2 + $0x98] sm:$0xff] }
 0x155   : > { %936 = vst [vmem:[#allocation2 + $0x88] sm:$0xff] %v904_v47  ;;  %v788_v48 = vpop.f32.mrf.mxu2 }
 0x156   : > { %v877_v50 = vpop.f32.mrf.mxu3 }
 0x157   : > { %v878_v51 = vadd.f32 %v877_v50, %v788_v48  ;;  %v751_v52 = vpop.f32.mrf.mxu0 }
 0x158   : > { %v840_v54 = vpop.f32.mrf.mxu1 }
 0x159   : > { %v920_v55 = vadd.f32 %v878_v51, %v422_v49  ;;  %v841_v56 = vadd.f32 %v840_v54, %v751_v52 }
 0x15b   : > { %952 = vst [vmem:[#allocation2 + $0xd0] sm:$0xff] %v920_v55  ;;  %v905_v57 = vadd.f32 %v841_v56, %v407_v53 }
 0x15d   : > { %937 = vst [vmem:[#allocation2 + $0xe8] sm:$0xff] %v905_v57  ;;  %v791_v58 = vpop.f32.mrf.mxu2 }
 0x15e   : > { %v880_v60 = vpop.f32.mrf.mxu3 }
 0x15f   : > { %v881_v61 = vadd.f32 %v880_v60, %v791_v58  ;;  %v753_v62 = vpop.f32.mrf.mxu0 }
 0x160   : > { %v842_v0 = vpop.f32.mrf.mxu1 }
 0x161   : > { %v921_v1 = vadd.f32 %v881_v61, %v423_v59  ;;  %v843_v2 = vadd.f32 %v842_v0, %v753_v62 }
 0x163   : > { %953 = vst [vmem:[#allocation2 + $0x10] sm:$0xff] %v921_v1  ;;  %v906_v3 = vadd.f32 %v843_v2, %v408_v63 }
 0x165   : > { %938 = vst [vmem:[#allocation2 + $0xb8] sm:$0xff] %v906_v3  ;;  %v793_v4 = vpop.f32.mrf.mxu2 }
 0x166   : > { %v882_v6 = vpop.f32.mrf.mxu3 }
 0x167   : > { %v883_v7 = vadd.f32 %v882_v6, %v793_v4  ;;  %v756_v8 = vpop.f32.mrf.mxu0 }
 0x168   : > { %v845_v10 = vpop.f32.mrf.mxu1 }
 0x169   : > { %v922_v11 = vadd.f32 %v883_v7, %v424_v5  ;;  %v846_v12 = vadd.f32 %v845_v10, %v756_v8 }
 0x16b   : > { %954 = vst [vmem:[#allocation2 + $0x28] sm:$0xff] %v922_v11  ;;  %v907_v13 = vadd.f32 %v846_v12, %v409_v9 }
 0x16d   : > { %939 = vst [vmem:[#allocation2 + $0x60] sm:$0xff] %v907_v13  ;;  %v796_v14 = vpop.f32.mrf.mxu2 }
 0x16e   : > { %v885_v16 = vpop.f32.mrf.mxu3 }
 0x16f   : > { %v886_v17 = vadd.f32 %v885_v16, %v796_v14  ;;  %v758_v18 = vpop.f32.mrf.mxu0 }
 0x170   : > { %v847_v20 = vpop.f32.mrf.mxu1 }
 0x171   : > { %v923_v21 = vadd.f32 %v886_v17, %v425_v15  ;;  %v848_v22 = vadd.f32 %v847_v20, %v758_v18 }
 0x173   : > { %955 = vst [vmem:[#allocation2 + $0xa0] sm:$0xff] %v923_v21  ;;  %v908_v23 = vadd.f32 %v848_v22, %v410_v19 }
 0x175   : > { %940 = vst [vmem:[#allocation2 + $0xf0] sm:$0xff] %v908_v23  ;;  %v798_v24 = vpop.f32.mrf.mxu2 }
 0x176   : > { %v887_v26 = vpop.f32.mrf.mxu3 }
 0x177   : > { %v888_v27 = vadd.f32 %v887_v26, %v798_v24  ;;  %v761_v28 = vpop.f32.mrf.mxu0 }
 0x178   : > { %v850_v30 = vpop.f32.mrf.mxu1 }
 0x179   : > { %v924_v31 = vadd.f32 %v888_v27, %v426_v25  ;;  %v851_v32 = vadd.f32 %v850_v30, %v761_v28 }
 0x17b   : > { %956 = vst [vmem:[#allocation2 + $0xf8] sm:$0xff] %v924_v31  ;;  %v909_v33 = vadd.f32 %v851_v32, %v411_v29 }
 0x17d   : > { %941 = vst [vmem:[#allocation2 + $0x8] sm:$0xff] %v909_v33  ;;  %v801_v34 = vpop.f32.mrf.mxu2 }
 0x17e   : > { %v890_v36 = vpop.f32.mrf.mxu3 }
 0x17f   : > { %v891_v37 = vadd.f32 %v890_v36, %v801_v34  ;;  %v763_v38 = vpop.f32.mrf.mxu0 }
 0x180   : > { %v852_v40 = vpop.f32.mrf.mxu1 }
 0x181   : > { %v925_v41 = vadd.f32 %v891_v37, %v427_v35  ;;  %v853_v42 = vadd.f32 %v852_v40, %v763_v38 }
 0x183   : > { %957 = vst [vmem:[#allocation2 + $0x20] sm:$0xff] %v925_v41  ;;  %v910_v43 = vadd.f32 %v853_v42, %v412_v39 }
 0x185   : > { %942 = vst [vmem:[#allocation2 + $0x78] sm:$0xff] %v910_v43  ;;  %v803_v44 = vpop.f32.mrf.mxu2 }
 0x186   : > { %v892_v46 = vpop.f32.mrf.mxu3 }
 0x187   : > { %v893_v47 = vadd.f32 %v892_v46, %v803_v44  ;;  %962 = sbr.rel (%p1346_p12) target bundleno = 415 (0x19f), region = 74 }
 0x189   : > { %v926_v48 = vadd.f32 %v893_v47, %v428_v45 }
 0x18b   : > { %958 = vst [vmem:[#allocation2 + $0x98] sm:$0xff] %v926_v48 }
 0x18c   : > { %v963_v49 = vld [vmem:[#allocation2 + $0xb0] sm:$0xff]  ;;  %v964_v50 = vld [vmem:[#allocation2] sm:$0xff]  ;;  %v965_v51 = vld [vmem:[#allocation2 + $0xd8] sm:$0xff] }
 0x18d   : > { %v1401_v52 = vpack.c.bf16 %v964_v50, %v963_v49  ;;  %v966_v53 = vld [vmem:[#allocation2 + $0x18] sm:$0xff]  ;;  %v967_v54 = vld [vmem:[#allocation2 + $0x50] sm:$0xff]  ;;  %v968_v55 = vld [vmem:[#allocation2 + $0x68] sm:$0xff] }
 0x18e   : > { %v1406_v56 = vpack.c.bf16 %v966_v53, %v965_v51  ;;  %v1411_v57 = vpack.c.bf16 %v968_v55, %v967_v54  ;;  %v969_v58 = vld [vmem:[#allocation2 + $0x30] sm:$0xff]  ;;  %v970_v59 = vld [vmem:[#allocation2 + $0x48] sm:$0xff]  ;;  %v971_v60 = vld [vmem:[#allocation2 + $0x80] sm:$0xff] }
 0x18f   : > { %1402 = vst [vmem:[%s1773_s20] sm:$0xff] %v1401_v52   ;;  %v1416_v61 = vpack.c.bf16 %v970_v59, %v969_v58  ;;  %v972_v62 = vld [vmem:[#allocation2 + $0x88] sm:$0xff]  ;;  %v974_v0 = vld [vmem:[#allocation2 + $0xb8] sm:$0xff]  ;;  %v975_v3 = vld [vmem:[#allocation2 + $0x60] sm:$0xff] }
 0x190   : > { %v973_v63 = vld [vmem:[#allocation2 + $0xe8] sm:$0xff]  ;;  %1478 = vst [vmem:[%s1773_s20 + $0x8] sm:$0xff] %v1406_v56   ;;  %v1421_v1 = vpack.c.bf16 %v972_v62, %v971_v60  ;;  %v976_v4 = vld [vmem:[#allocation2 + $0xf0] sm:$0xff]  ;;  %v978_v7 = vld [vmem:[#allocation2 + $0x78] sm:$0xff] }
 0x191   : > { %v1426_v2 = vpack.c.bf16 %v974_v0, %v973_v63  ;;  %v977_v5 = vld [vmem:[#allocation2 + $0x8] sm:$0xff]  ;;  %1479 = vst [vmem:[%s1773_s20 + $0x10] sm:$0xff] %v1411_v57   ;;  %v1431_v6 = vpack.c.bf16 %v976_v4, %v975_v3  ;;  %v979_v8 = vld [vmem:[#allocation2 + $0x38] sm:$0xff]  ;;  %v981_v11 = vld [vmem:[#allocation2 + $0x40] sm:$0xff] }
 0x192   : > { %v980_v9 = vld [vmem:[#allocation2 + $0x58] sm:$0xff]  ;;  %1480 = vst [vmem:[%s1773_s20 + $0x18] sm:$0xff] %v1416_v61   ;;  %v1436_v10 = vpack.c.bf16 %v978_v7, %v977_v5  ;;  %v982_v12 = vld [vmem:[#allocation2 + $0xc8] sm:$0xff]  ;;  %v983_v13 = vld [vmem:[#allocation2 + $0xe0] sm:$0xff] }
 0x193   : > { %1481 = vst [vmem:[%s1773_s20 + $0x20] sm:$0xff] %v1421_v1   ;;  %v1441_v14 = vpack.c.bf16 %v980_v9, %v979_v8  ;;  %v984_v15 = vld [vmem:[#allocation2 + $0x90] sm:$0xff]  ;;  %v986_v17 = vld [vmem:[#allocation2 + $0xc0] sm:$0xff]  ;;  %v1446_v18 = vpack.c.bf16 %v982_v12, %v981_v11  ;;  %v987_v19 = vld [vmem:[#allocation2 + $0xa8] sm:$0xff] }
 0x194   : > { %v985_v16 = vld [vmem:[#allocation2 + $0x70] sm:$0xff]  ;;  %1482 = vst [vmem:[%s1773_s20 + $0x28] sm:$0xff] %v1426_v2   ;;  %v1451_v21 = vpack.c.bf16 %v984_v15, %v983_v13  ;;  %v990_v23 = vld [vmem:[#allocation2 + $0x28] sm:$0xff]  ;;  %v991_v25 = vld [vmem:[#allocation2 + $0xa0] sm:$0xff] }
 0x195   : > { %v988_v20 = vld [vmem:[#allocation2 + $0xd0] sm:$0xff]  ;;  %1483 = vst [vmem:[%s1773_s20 + $0x30] sm:$0xff] %v1431_v6   ;;  %v1456_v24 = vpack.c.bf16 %v986_v17, %v985_v16  ;;  %v992_v26 = vld [vmem:[#allocation2 + $0xf8] sm:$0xff]  ;;  %v993_v28 = vld [vmem:[#allocation2 + $0x20] sm:$0xff] }
 0x196   : > { %v989_v22 = vld [vmem:[#allocation2 + $0x10] sm:$0xff]  ;;  %1484 = vst [vmem:[%s1773_s20 + $0x38] sm:$0xff] %v1436_v10   ;;  %v1461_v27 = vpack.c.bf16 %v988_v20, %v987_v19  ;;  %v994_v29 = vld [vmem:[#allocation2 + $0x98] sm:$0xff]  ;;  %v1471_v31 = vpack.c.bf16 %v992_v26, %v991_v25 }
 0x197   : > { %1485 = vst [vmem:[%s1773_s20 + $0x40] sm:$0xff] %v1441_v14   ;;  %v1466_v30 = vpack.c.bf16 %v990_v23, %v989_v22  ;;  %v1476_v32 = vpack.c.bf16 %v994_v29, %v993_v28 }
 0x198   : > { %1486 = vst [vmem:[%s1773_s20 + $0x48] sm:$0xff] %v1446_v18  }
 0x199   : > { %1487 = vst [vmem:[%s1773_s20 + $0x50] sm:$0xff] %v1451_v21  }
 0x19a   : > { %1488 = vst [vmem:[%s1773_s20 + $0x58] sm:$0xff] %v1456_v24  }
 0x19b   : > { %1489 = vst [vmem:[%s1773_s20 + $0x60] sm:$0xff] %v1461_v27  }
 0x19c   : > { %1490 = vst [vmem:[%s1773_s20 + $0x68] sm:$0xff] %v1466_v30  }
 0x19d   : > { %1491 = vst [vmem:[%s1773_s20 + $0x70] sm:$0xff] %v1471_v31  }
 0x19e   : > { %1492 = vst [vmem:[%s1773_s20 + $0x78] sm:$0xff] %v1476_v32  }
 0x19f PF: > { %s12_s15 = sadd.s32 1, %s1620_s15   ;;  %s1905_s9 = smov %s1600_s10 }
 0x1a0   : > { %p9_p13 = scmp.ge.s32.totalorder %s12_s15, 6   ;;  %s1906_s10 = smov %s1689_s22 }
 0x1a1   : > { %s1907_s11 = smov %s1612_s13  ;;  %s1908_s12 = smov %s1616_s14 }
 0x1a2   : > { %s1909_s13 = smov %s1912_s16  ;;  %s1910_s14 = smov %s1916_s17 }
 0x1a3   :  { %11 = sbr.rel (!%p9_p13) target bundleno = 4 (0x4), region = 110 }

// kernel: gconv2_forward.3
= control target key start
LH: loop header
LB: loop body
LE: loop exit
PB: predicated region body
PF: predicated region fallthrough
CT: control target
= control target key end

     0   :  { %s2766_s13 = smov 0   ;;  %s2768_s14 = smov 0   ;;  %s3358_s0 = inlined_call_operand.vmem [shape: bf16[512,512], index: 0, kind: input, shape index: {}]   ;;  %s3359_s1 = inlined_call_operand.vmem [shape: bf16[512,128], index: 1, kind: input, shape index: {}]   ;;  %s3360_s2 = inlined_call_operand.vmem [shape: bf16[128,128], index: 2, kind: input, shape index: {}]   ;;  %s3361_s3 = inlined_call_operand.vmem [shape: f32[1,128], index: 3, kind: input, shape index: {}]   ;;  %s3362_s4 = inlined_call_operand.vmem [shape: f32[1,128], index: 4, kind: input, shape index: {}]   ;;  %s3363_s5 = inlined_call_operand.vmem [shape: f32[1,128], index: 5, kind: input, shape index: {}]   ;;  %s3364_s6 = inlined_call_operand.vmem [shape: f32[1,128], index: 6, kind: input, shape index: {}]   ;;  %s3365_s7 = inlined_call_operand.vmem [shape: f32[1,128], index: 7, kind: input, shape index: {}]   ;;  %s3366_s8 = inlined_call_operand.vmem [shape: f32[1,128], index: 8, kind: input, shape index: {}]   ;;  %s3367_s9 = inlined_call_operand.vmem [shape: bf16[512,128], index: 9, kind: output, shape index: {0}]   ;;  %s3368_s10 = inlined_call_operand.vmem [shape: bf16[512,128], index: 10, kind: output, shape index: {1}]  }
   0x1   :  { %s2770_s15 = smov 0   ;;  %s2772_s16 = smov 0  }
   0x2   :  { %s2774_s17 = smov 0   ;;  %s2776_s18 = smov 0  }
   0x3   :  { %s2778_s19 = smov 0  }
   0x4 LB: > { %s30_s20 = sadd.s32 1, %s2700_s17  ;;  %s33_s21 = sadd.s32 1, %s2704_s18  ;;  %s2708_s19 = sphi %s2778_s19, %s21_s19   ;;  %s2704_s18 = sphi %s2776_s18, %s3380_s18   ;;  %s2700_s17 = sphi %s2774_s17, %s3379_s17   ;;  %s2696_s16 = sphi %s2772_s16, %s3378_s16   ;;  %s2692_s15 = sphi %s2770_s15, %s3377_s15   ;;  %s2688_s14 = sphi %s2768_s14, %s3376_s14   ;;  %s2684_s13 = sphi %s2766_s13, %s3375_s13  }
   0x5   : > { %p31_p0 = scmp.ge.s32.totalorder %s30_s20, 2  ;;  %p49_p1 = scmp.ne.s32.totalorder %s2688_s14, %s2684_s13 }
   0x6   : > { %p50_p2 = scmp.eq.s32.totalorder %s2708_s19, 0  ;;  %s42_s25 = sadd.s32 1, %s2688_s14 }
   0x7   : > { %s3382_s20 = smov (%p31_p0, %s30_s20), 0  ;;  %s3384_s21 = smov (!%p31_p0, %s33_s21), %s2704_s18 }
   0x8   : > { %3371 = sst [smem:[#allocation4_spill]] %s3382_s20  ;;  %p51_p3 = por %p50_p2, %p49_p1 }
   0x9   : > { %p35_p4 = scmp.ge.s32.totalorder %s3384_s21, 2  ;;  %s38_s22 = ssub.s32 %s2700_s17, %s3382_s20 }
   0xa   : > { %p2062_p6 = scmp.ge.s32.totalorder %s2708_s19, 4 }
   0xb   : > { %s3386_s21 = smov (%p35_p4, %s3384_s21), 0 }
   0xc   : > { %3372 = sst [smem:[#allocation5_spill]] %s3386_s21  ;;  %s37_s23 = ssub.s32 %s2704_s18, %s3386_s21 }
   0xd   : > { %s39_s24 = sor.u32 %s38_s22, %s37_s23  ;;  %319 = sbr.rel (%p2062_p6) target bundleno = 57 (0x39), region = 48 }
   0xe   : > { %p40_p5 = scmp.eq.s32.totalorder %s39_s24, 0 }
  0x10   : > { %s2817_s26 = scalar_select %p40_p5, %s2688_s14, %s42_s25  }
  0x12   : > { %322 = sbr.rel (!%p51_p3) target bundleno = 57 (0x39), region = 52  ;;  %s324_s27 = sand.u32 (%p51_p3), 1, %s2688_s14  }
  0x13   : > { %s2065_s28 = sshll.u32 (%p51_p3), %s2700_s17, 1  ;;  %s2063_s29 = sshll.u32 (%p51_p3), %s324_s27, 8 }
  0x14   : > { %s2304_s30 = sshll.u32 (%p51_p3), %s2704_s18, 7  ;;  %s2831_s23 = scalar_lea.vmem (%p51_p3), [#allocation3], %s2063_s29 }
  0x15   : > { %s330_s11 = sadd.s32 (%p51_p3), %s2304_s30, %s2065_s28 }
  0x16   : > { %s2067_s12 = sshll.u32 (%p51_p3), %s330_s11, 2 }
  0x17   : > { %s2826_s22 = scalar_lea.vmem %s3358_s0, %s2067_s12 }
  0x18   : > { %v423_v0 = vld [vmem:[%s2826_s22] sm:$0xff]  ;;  %v425_v1 = vld [vmem:[%s2826_s22 + $0x10] sm:$0xff] }
  0x19   : > { %v427_v2 = vld [vmem:[%s2826_s22 + $0x20] sm:$0xff]  ;;  %424 = vst [vmem:[%s2831_s23] sm:$0xff] %v423_v0  ;;  %v429_v3 = vld [vmem:[%s2826_s22 + $0x30] sm:$0xff] }
  0x1a   : > { %426 = vst [vmem:[%s2831_s23 + $0x8] sm:$0xff] %v425_v1  ;;  %v431_v4 = vld [vmem:[%s2826_s22 + $0x40] sm:$0xff]  ;;  %v433_v5 = vld [vmem:[%s2826_s22 + $0x50] sm:$0xff] }
  0x1b   : > { %428 = vst [vmem:[%s2831_s23 + $0x10] sm:$0xff] %v427_v2  ;;  %v435_v6 = vld [vmem:[%s2826_s22 + $0x60] sm:$0xff]  ;;  %v437_v7 = vld [vmem:[%s2826_s22 + $0x70] sm:$0xff] }
  0x1c   : > { %430 = vst [vmem:[%s2831_s23 + $0x18] sm:$0xff] %v429_v3  ;;  %v439_v8 = vld [vmem:[%s2826_s22 + $0x80] sm:$0xff]  ;;  %v441_v9 = vld [vmem:[%s2826_s22 + $0x90] sm:$0xff] }
  0x1d   : > { %432 = vst [vmem:[%s2831_s23 + $0x20] sm:$0xff] %v431_v4  ;;  %v443_v10 = vld [vmem:[%s2826_s22 + $0xa0] sm:$0xff]  ;;  %v445_v11 = vld [vmem:[%s2826_s22 + $0xb0] sm:$0xff] }
  0x1e   : > { %434 = vst [vmem:[%s2831_s23 + $0x28] sm:$0xff] %v433_v5  ;;  %v447_v12 = vld [vmem:[%s2826_s22 + $0xc0] sm:$0xff]  ;;  %v449_v13 = vld [vmem:[%s2826_s22 + $0xd0] sm:$0xff] }
  0x1f   : > { %436 = vst [vmem:[%s2831_s23 + $0x30] sm:$0xff] %v435_v6  ;;  %v451_v14 = vld [vmem:[%s2826_s22 + $0xe0] sm:$0xff]  ;;  %v453_v15 = vld [vmem:[%s2826_s22 + $0xf0] sm:$0xff] }
  0x20   : > { %438 = vst [vmem:[%s2831_s23 + $0x38] sm:$0xff] %v437_v7  ;;  %v455_v16 = vld [vmem:[%s2826_s22 + $0x100] sm:$0xff]  ;;  %v457_v17 = vld [vmem:[%s2826_s22 + $0x110] sm:$0xff] }
  0x21   : > { %440 = vst [vmem:[%s2831_s23 + $0x40] sm:$0xff] %v439_v8  ;;  %v459_v18 = vld [vmem:[%s2826_s22 + $0x120] sm:$0xff]  ;;  %v461_v19 = vld [vmem:[%s2826_s22 + $0x130] sm:$0xff] }
  0x22   : > { %442 = vst [vmem:[%s2831_s23 + $0x48] sm:$0xff] %v441_v9  ;;  %v463_v20 = vld [vmem:[%s2826_s22 + $0x140] sm:$0xff]  ;;  %v465_v21 = vld [vmem:[%s2826_s22 + $0x150] sm:$0xff] }
  0x23   : > { %444 = vst [vmem:[%s2831_s23 + $0x50] sm:$0xff] %v443_v10  ;;  %v467_v22 = vld [vmem:[%s2826_s22 + $0x160] sm:$0xff]  ;;  %v469_v23 = vld [vmem:[%s2826_s22 + $0x170] sm:$0xff] }
  0x24   : > { %446 = vst [vmem:[%s2831_s23 + $0x58] sm:$0xff] %v445_v11  ;;  %v471_v24 = vld [vmem:[%s2826_s22 + $0x180] sm:$0xff]  ;;  %v473_v25 = vld [vmem:[%s2826_s22 + $0x190] sm:$0xff] }
  0x25   : > { %448 = vst [vmem:[%s2831_s23 + $0x60] sm:$0xff] %v447_v12  ;;  %v475_v26 = vld [vmem:[%s2826_s22 + $0x1a0] sm:$0xff]  ;;  %v477_v27 = vld [vmem:[%s2826_s22 + $0x1b0] sm:$0xff] }
  0x26   : > { %450 = vst [vmem:[%s2831_s23 + $0x68] sm:$0xff] %v449_v13  ;;  %v479_v28 = vld [vmem:[%s2826_s22 + $0x1c0] sm:$0xff]  ;;  %v481_v29 = vld [vmem:[%s2826_s22 + $0x1d0] sm:$0xff] }
  0x27   : > { %452 = vst [vmem:[%s2831_s23 + $0x70] sm:$0xff] %v451_v14  ;;  %v483_v30 = vld [vmem:[%s2826_s22 + $0x1e0] sm:$0xff]  ;;  %v485_v31 = vld [vmem:[%s2826_s22 + $0x1f0] sm:$0xff] }
  0x28   : > { %454 = vst [vmem:[%s2831_s23 + $0x78] sm:$0xff] %v453_v15 }
  0x29   : > { %456 = vst [vmem:[%s2831_s23 + $0x80] sm:$0xff] %v455_v16 }
  0x2a   : > { %458 = vst [vmem:[%s2831_s23 + $0x88] sm:$0xff] %v457_v17 }
  0x2b   : > { %460 = vst [vmem:[%s2831_s23 + $0x90] sm:$0xff] %v459_v18 }
  0x2c   : > { %462 = vst [vmem:[%s2831_s23 + $0x98] sm:$0xff] %v461_v19 }
  0x2d   : > { %464 = vst [vmem:[%s2831_s23 + $0xa0] sm:$0xff] %v463_v20 }
  0x2e   : > { %466 = vst [vmem:[%s2831_s23 + $0xa8] sm:$0xff] %v465_v21 }
  0x2f   : > { %468 = vst [vmem:[%s2831_s23 + $0xb0] sm:$0xff] %v467_v22 }
  0x30   : > { %470 = vst [vmem:[%s2831_s23 + $0xb8] sm:$0xff] %v469_v23 }
  0x31   : > { %472 = vst [vmem:[%s2831_s23 + $0xc0] sm:$0xff] %v471_v24 }
  0x32   : > { %474 = vst [vmem:[%s2831_s23 + $0xc8] sm:$0xff] %v473_v25 }
  0x33   : > { %476 = vst [vmem:[%s2831_s23 + $0xd0] sm:$0xff] %v475_v26 }
  0x34   : > { %478 = vst [vmem:[%s2831_s23 + $0xd8] sm:$0xff] %v477_v27 }
  0x35   : > { %480 = vst [vmem:[%s2831_s23 + $0xe0] sm:$0xff] %v479_v28 }
  0x36   : > { %482 = vst [vmem:[%s2831_s23 + $0xe8] sm:$0xff] %v481_v29 }
  0x37   : > { %484 = vst [vmem:[%s2831_s23 + $0xf0] sm:$0xff] %v483_v30 }
  0x38   : > { %486 = vst [vmem:[%s2831_s23 + $0xf8] sm:$0xff] %v485_v31 }
  0x39 PF: > { %p2068_p7 = scmp.ge.s32.totalorder %s2708_s19, 1  ;;  %p491_p8 = scmp.lt.s32.totalorder %s2708_s19, 5 }
  0x3b   : > { %p492_p9 = pnand %p2068_p7, %p491_p8 }
  0x3c   : > { %s498_s20 = sand.u32 (!%p492_p9), 1, %s2684_s13   ;;  %s2070_s21 = sshll.u32 (!%p492_p9), %s2696_s16, 5 }
  0x3d   : > { %495 = sbr.rel (%p492_p9) target bundleno = 630 (0x276), region = 90  ;;  %s2069_s24 = sshll.u32 (!%p492_p9), %s498_s20, 8 }
  0x3e   : > { %p543_p10 = scmp.lt.s32.totalorder (!%p492_p9), %s2070_s21, 63  ;;  %s2908_s22 = scalar_lea.vmem (!%p492_p9), [#allocation3], %s2069_s24 }
  0x3f   : > { %p2074_p11 = scmp.ne.s32.totalorder (!%p492_p9), %s2692_s15, 0 }
  0x42   : > { %s3388_s21 = smov (!%p543_p10, %s2070_s21), 63  ;;  %557 = sbr.rel (%p2074_p11) target bundleno = 104 (0x68), region = 98 }
  0x43   : > { %s2071_s25 = sshll.u32 %s3388_s21, 2 }
  0x44   : > { %s2901_s29 = scalar_lea.vmem %s3367_s9, %s2071_s25  ;;  %s2906_s12 = scalar_lea.vmem %s3368_s10, %s2071_s25 }
  0x47   : > { %v2710_v32 = vmov 0.0  }
  0x48   : > { %558 = vst [vmem:[#allocation2 + $0xb0] sm:$0xff] %v2710_v32 }
  0x49   : > { %559 = vst [vmem:[#allocation2] sm:$0xff] %v2710_v32 }
  0x4a   : > { %560 = vst [vmem:[#allocation2 + $0xd8] sm:$0xff] %v2710_v32 }
  0x4b   : > { %561 = vst [vmem:[#allocation2 + $0x18] sm:$0xff] %v2710_v32 }
  0x4c   : > { %562 = vst [vmem:[#allocation2 + $0x50] sm:$0xff] %v2710_v32 }
  0x4d   : > { %563 = vst [vmem:[#allocation2 + $0x68] sm:$0xff] %v2710_v32 }
  0x4e   : > { %564 = vst [vmem:[#allocation2 + $0x30] sm:$0xff] %v2710_v32 }
  0x4f   : > { %565 = vst [vmem:[#allocation2 + $0x48] sm:$0xff] %v2710_v32 }
  0x50   : > { %566 = vst [vmem:[#allocation2 + $0x80] sm:$0xff] %v2710_v32 }
  0x51   : > { %567 = vst [vmem:[#allocation2 + $0x88] sm:$0xff] %v2710_v32 }
  0x52   : > { %568 = vst [vmem:[#allocation2 + $0xe8] sm:$0xff] %v2710_v32 }
  0x53   : > { %569 = vst [vmem:[#allocation2 + $0xb8] sm:$0xff] %v2710_v32 }
  0x54   : > { %570 = vst [vmem:[#allocation2 + $0x60] sm:$0xff] %v2710_v32 }
  0x55   : > { %571 = vst [vmem:[#allocation2 + $0xf0] sm:$0xff] %v2710_v32 }
  0x56   : > { %572 = vst [vmem:[#allocation2 + $0x8] sm:$0xff] %v2710_v32 }
  0x57   : > { %573 = vst [vmem:[#allocation2 + $0x78] sm:$0xff] %v2710_v32 }
  0x58   : > { %574 = vst [vmem:[#allocation2 + $0x38] sm:$0xff] %v2710_v32 }
  0x59   : > { %575 = vst [vmem:[#allocation2 + $0x58] sm:$0xff] %v2710_v32 }
  0x5a   : > { %576 = vst [vmem:[#allocation2 + $0x40] sm:$0xff] %v2710_v32 }
  0x5b   : > { %577 = vst [vmem:[#allocation2 + $0xc8] sm:$0xff] %v2710_v32 }
  0x5c   : > { %578 = vst [vmem:[#allocation2 + $0xe0] sm:$0xff] %v2710_v32 }
  0x5d   : > { %579 = vst [vmem:[#allocation2 + $0x90] sm:$0xff] %v2710_v32 }
  0x5e   : > { %580 = vst [vmem:[#allocation2 + $0x70] sm:$0xff] %v2710_v32 }
  0x5f   : > { %581 = vst [vmem:[#allocation2 + $0xc0] sm:$0xff] %v2710_v32 }
  0x60   : > { %582 = vst [vmem:[#allocation2 + $0xa8] sm:$0xff] %v2710_v32 }
  0x61   : > { %583 = vst [vmem:[#allocation2 + $0xd0] sm:$0xff] %v2710_v32 }
  0x62   : > { %584 = vst [vmem:[#allocation2 + $0x10] sm:$0xff] %v2710_v32 }
  0x63   : > { %585 = vst [vmem:[#allocation2 + $0x28] sm:$0xff] %v2710_v32 }
  0x64   : > { %586 = vst [vmem:[#allocation2 + $0xa0] sm:$0xff] %v2710_v32 }
  0x65   : > { %587 = vst [vmem:[#allocation2 + $0xf8] sm:$0xff] %v2710_v32 }
  0x66   : > { %588 = vst [vmem:[#allocation2 + $0x20] sm:$0xff] %v2710_v32 }
  0x67   : > { %589 = vst [vmem:[#allocation2 + $0x98] sm:$0xff] %v2710_v32 }
  0x68 PF: > { %s2075_s13 = sshll.u32 %s2692_s15, 8  ;;  %v2079_v47 = vld [vmem:[%s2908_s22] sm:$0xf]  ;;  %v2322_v49 = vld [vmem:[%s2908_s22 + $0x4] sm:$0xf0]  ;;  %p2269_p12 = scmp.ne.s32.totalorder %s2692_s15, 1 }
  0x69   : > { %s591_s16 = sshra.s32 %s2075_s13, 3  ;;  %v2143_v50 = vld [vmem:[%s2908_s22 + $0x80] sm:$0xf]  ;;  %v2338_v52 = vld [vmem:[%s2908_s22 + $0x84] sm:$0xf0]  ;;  %v2080_v57 = vor.u32 %v2322_v49, %v2079_v47 }
  0x6a   : > { %s2076_s23 = sshll.u32 %s591_s16, 2  ;;  %v2321_v53 = vld [vmem:[%s2908_s22 + $0x4] sm:$0xf]  ;;  %v2081_v54 = vld [vmem:[%s2908_s22 + $0x8] sm:$0xf0]  ;;  %v2144_v58 = vor.u32 %v2338_v52, %v2143_v50 }
  0x6b   : > { %s2915_s24 = scalar_lea.vmem %s3359_s1, %s2076_s23  ;;  %v2337_v55 = vld [vmem:[%s2908_s22 + $0x84] sm:$0xf]  ;;  %v2145_v56 = vld [vmem:[%s2908_s22 + $0x88] sm:$0xf0]  ;;  %v2084_v59 = vor.u32 %v2321_v53, %v2081_v54  ;;  %v2087_v61 = vld [vmem:[%s2908_s22 + $0x10] sm:$0xf] }
  0x6c   : > { %v2312_v33 = vld [vmem:[%s2915_s24 + $0x38] sm:$0xff]  ;;  %v2311_v35 = vld [vmem:[%s2915_s24 + $0x30] sm:$0xff]  ;;  %v2310_v37 = vld [vmem:[%s2915_s24 + $0x28] sm:$0xff]  ;;  %v2148_v60 = vor.u32 %v2337_v55, %v2145_v56 }
  0x6d   : > { %v2320_v34 = vld [vmem:[%s2915_s24 + $0x78] sm:$0xff]  ;;  %947 = vmatpush.bf16.msra.mxu0 %v2312_v33  ;;  %2551 = vmatpush.bf16.msra.mxu2 %v2312_v33  ;;  %v2319_v36 = vld [vmem:[%s2915_s24 + $0x70] sm:$0xff]  ;;  %v2318_v38 = vld [vmem:[%s2915_s24 + $0x68] sm:$0xff] }
  0x6e   : > { %1036 = vmatpush.bf16.msra.mxu1 %v2320_v34  ;;  %2559 = vmatpush.bf16.msra.mxu3 %v2320_v34  ;;  %v2309_v39 = vld [vmem:[%s2915_s24 + $0x20] sm:$0xff]  ;;  %v2308_v41 = vld [vmem:[%s2915_s24 + $0x18] sm:$0xff]  ;;  %v2307_v43 = vld [vmem:[%s2915_s24 + $0x10] sm:$0xff] }
  0x6f   : > { %v2317_v40 = vld [vmem:[%s2915_s24 + $0x60] sm:$0xff]  ;;  %v2316_v42 = vld [vmem:[%s2915_s24 + $0x58] sm:$0xff]  ;;  %v2315_v44 = vld [vmem:[%s2915_s24 + $0x50] sm:$0xff] }
  0x70   : > { %v2306_v45 = vld [vmem:[%s2915_s24 + $0x8] sm:$0xff]  ;;  %v2305_v48 = vld [vmem:[%s2915_s24] sm:$0xff]  ;;  %v2324_v62 = vld [vmem:[%s2908_s22 + $0x14] sm:$0xf0] }
  0x71   : > { %948 = vmatpush.bf16.msra.mxu0 %v2311_v35  ;;  %2552 = vmatpush.bf16.msra.mxu2 %v2311_v35  ;;  %v2314_v46 = vld [vmem:[%s2915_s24 + $0x48] sm:$0xff]  ;;  %v2313_v51 = vld [vmem:[%s2915_s24 + $0x40] sm:$0xff]  ;;  %v2151_v63 = vld [vmem:[%s2908_s22 + $0x90] sm:$0xf]  ;;  %v2088_v5 = vor.u32 %v2324_v62, %v2087_v61 }
  0x72   : > { %1037 = vmatpush.bf16.msra.mxu1 %v2319_v36  ;;  %2560 = vmatpush.bf16.msra.mxu3 %v2319_v36  ;;  %v2340_v0 = vld [vmem:[%s2908_s22 + $0x94] sm:$0xf0]  ;;  %v2323_v1 = vld [vmem:[%s2908_s22 + $0x14] sm:$0xf]  ;;  %v2089_v2 = vld [vmem:[%s2908_s22 + $0x18] sm:$0xf0] }
  0x73   : > { %v2339_v3 = vld [vmem:[%s2908_s22 + $0x94] sm:$0xf]  ;;  %v2153_v4 = vld [vmem:[%s2908_s22 + $0x98] sm:$0xf0]  ;;  %v2152_v6 = vor.u32 %v2340_v0, %v2151_v63  ;;  %v2092_v7 = vor.u32 %v2323_v1, %v2089_v2  ;;  %v2095_v9 = vld [vmem:[%s2908_s22 + $0x20] sm:$0xf] }
  0x74   : > { %v2156_v8 = vor.u32 %v2339_v3, %v2153_v4  ;;  %v2326_v10 = vld [vmem:[%s2908_s22 + $0x24] sm:$0xf0]  ;;  %v2159_v11 = vld [vmem:[%s2908_s22 + $0xa0] sm:$0xf]  ;;  %v2325_v13 = vld [vmem:[%s2908_s22 + $0x24] sm:$0xf] }
  0x75   : > { %949 = vmatpush.bf16.msra.mxu0 %v2310_v37  ;;  %2553 = vmatpush.bf16.msra.mxu2 %v2310_v37  ;;  %v2342_v12 = vld [vmem:[%s2908_s22 + $0xa4] sm:$0xf0]  ;;  %v2097_v14 = vld [vmem:[%s2908_s22 + $0x28] sm:$0xf0]  ;;  %v2341_v15 = vld [vmem:[%s2908_s22 + $0xa4] sm:$0xf]  ;;  %v2096_v17 = vor.u32 %v2326_v10, %v2095_v9 }
  0x76   : > { %1038 = vmatpush.bf16.msra.mxu1 %v2318_v38  ;;  %2561 = vmatpush.bf16.msra.mxu3 %v2318_v38  ;;  %v2161_v16 = vld [vmem:[%s2908_s22 + $0xa8] sm:$0xf0]  ;;  %v2160_v18 = vor.u32 %v2342_v12, %v2159_v11  ;;  %v2100_v19 = vor.u32 %v2325_v13, %v2097_v14  ;;  %v2103_v21 = vld [vmem:[%s2908_s22 + $0x30] sm:$0xf]  ;;  %v2328_v22 = vld [vmem:[%s2908_s22 + $0x34] sm:$0xf0] }
  0x77   : > { %v2164_v20 = vor.u32 %v2341_v15, %v2161_v16  ;;  %v2167_v23 = vld [vmem:[%s2908_s22 + $0xb0] sm:$0xf]  ;;  %v2344_v24 = vld [vmem:[%s2908_s22 + $0xb4] sm:$0xf0]  ;;  %v2327_v25 = vld [vmem:[%s2908_s22 + $0x34] sm:$0xf]  ;;  %v2104_v29 = vor.u32 %v2328_v22, %v2103_v21 }
  0x78   : > { %v2105_v26 = vld [vmem:[%s2908_s22 + $0x38] sm:$0xf0]  ;;  %v2343_v27 = vld [vmem:[%s2908_s22 + $0xb4] sm:$0xf]  ;;  %v2168_v30 = vor.u32 %v2344_v24, %v2167_v23  ;;  %v2111_v33 = vld [vmem:[%s2908_s22 + $0x40] sm:$0xf] }
  0x79   : > { %950 = vmatpush.bf16.msra.mxu0 %v2309_v39  ;;  %2554 = vmatpush.bf16.msra.mxu2 %v2309_v39  ;;  %v2169_v28 = vld [vmem:[%s2908_s22 + $0xb8] sm:$0xf0]  ;;  %v2108_v31 = vor.u32 %v2327_v25, %v2105_v26  ;;  %v2330_v34 = vld [vmem:[%s2908_s22 + $0x44] sm:$0xf0]  ;;  %v2175_v35 = vld [vmem:[%s2908_s22 + $0xc0] sm:$0xf] }
  0x7a   : > { %1039 = vmatpush.bf16.msra.mxu1 %v2317_v40  ;;  %2562 = vmatpush.bf16.msra.mxu3 %v2317_v40  ;;  %v2172_v32 = vor.u32 %v2343_v27, %v2169_v28  ;;  %v2346_v36 = vld [vmem:[%s2908_s22 + $0xc4] sm:$0xf0]  ;;  %v2329_v37 = vld [vmem:[%s2908_s22 + $0x44] sm:$0xf]  ;;  %v2113_v38 = vld [vmem:[%s2908_s22 + $0x48] sm:$0xf0] }
  0x7b   : > { %v2345_v39 = vld [vmem:[%s2908_s22 + $0xc4] sm:$0xf]  ;;  %v2177_v40 = vld [vmem:[%s2908_s22 + $0xc8] sm:$0xf0]  ;;  %v2183_v47 = vld [vmem:[%s2908_s22 + $0xd0] sm:$0xf] }
  0x7c   : > { %v2331_v49 = vld [vmem:[%s2908_s22 + $0x54] sm:$0xf]  ;;  %v2121_v50 = vld [vmem:[%s2908_s22 + $0x58] sm:$0xf0]  ;;  %v2333_v61 = vld [vmem:[%s2908_s22 + $0x64] sm:$0xf] }
  0x7d   : > { %951 = vmatpush.bf16.msra.mxu0 %v2308_v41  ;;  %2555 = vmatpush.bf16.msra.mxu2 %v2308_v41  ;;  %v2112_v41 = vor.u32 %v2330_v34, %v2111_v33  ;;  %v2185_v52 = vld [vmem:[%s2908_s22 + $0xd8] sm:$0xf0]  ;;  %v2124_v55 = vor.u32 %v2331_v49, %v2121_v50  ;;  %v2129_v62 = vld [vmem:[%s2908_s22 + $0x68] sm:$0xf0]  ;;  %v2349_v63 = vld [vmem:[%s2908_s22 + $0xe4] sm:$0xf] }
  0x7e   : > { %1040 = vmatpush.bf16.msra.mxu1 %v2316_v42  ;;  %2563 = vmatpush.bf16.msra.mxu3 %v2316_v42  ;;  %v2176_v42 = vor.u32 %v2346_v36, %v2175_v35  ;;  %v2193_v0 = vld [vmem:[%s2908_s22 + $0xe8] sm:$0xf0]  ;;  %v2132_v3 = vor.u32 %v2333_v61, %v2129_v62  ;;  %v2335_v9 = vld [vmem:[%s2908_s22 + $0x74] sm:$0xf]  ;;  %v2137_v10 = vld [vmem:[%s2908_s22 + $0x78] sm:$0xf0] }
  0x7f   : > { %v2196_v4 = vor.u32 %v2349_v63, %v2193_v0  ;;  %v2351_v11 = vld [vmem:[%s2908_s22 + $0xf4] sm:$0xf]  ;;  %v2201_v12 = vld [vmem:[%s2908_s22 + $0xf8] sm:$0xf0]  ;;  %v2140_v15 = vor.u32 %v2335_v9, %v2137_v10  ;;  %v628_v27 = vld [vmem:[#allocation2] sm:$0xff] }
  0x80   : > { %v2204_v16 = vor.u32 %v2351_v11, %v2201_v12  ;;  %v643_v23 = vld [vmem:[#allocation2 + $0x38] sm:$0xff]  ;;  %v647_v63 = vld [vmem:[#allocation2 + $0xe0] sm:$0xff]  ;;  %v648_v9 = vld [vmem:[#allocation2 + $0x90] sm:$0xff] }
  0x81   : > { %952 = vmatpush.bf16.msra.mxu0 %v2307_v43  ;;  %2556 = vmatpush.bf16.msra.mxu2 %v2307_v43  ;;  %v2116_v43 = vor.u32 %v2329_v37, %v2113_v38  ;;  %v644_v33 = vld [vmem:[#allocation2 + $0x58] sm:$0xff] }
  0x82   : > { %1041 = vmatpush.bf16.msra.mxu1 %v2315_v44  ;;  %2564 = vmatpush.bf16.msra.mxu3 %v2315_v44  ;;  %v2180_v44 = vor.u32 %v2345_v39, %v2177_v40  ;;  %v629_v37 = vld [vmem:[#allocation2 + $0xd8] sm:$0xff] }
  0x85   : > { %953 = vmatpush.bf16.msra.mxu0 %v2306_v45  ;;  %2557 = vmatpush.bf16.msra.mxu2 %v2306_v45  ;;  %v2119_v45 = vld [vmem:[%s2908_s22 + $0x50] sm:$0xf] }
  0x86   : > { %1042 = vmatpush.bf16.msra.mxu1 %v2314_v46  ;;  %2565 = vmatpush.bf16.msra.mxu3 %v2314_v46  ;;  %v2332_v46 = vld [vmem:[%s2908_s22 + $0x54] sm:$0xf0] }
  0x87   : > { %v2120_v53 = vor.u32 %v2332_v46, %v2119_v45 }
  0x89   : > { %954 = vmatpush.bf16.msra.mxu0 %v2305_v48  ;;  %2558 = vmatpush.bf16.msra.mxu2 %v2305_v48  ;;  %v2348_v48 = vld [vmem:[%s2908_s22 + $0xd4] sm:$0xf0] }
  0x8a   : > { %1043 = vmatpush.bf16.msra.mxu1 %v2313_v51  ;;  %2566 = vmatpush.bf16.msra.mxu3 %v2313_v51  ;;  %v2347_v51 = vld [vmem:[%s2908_s22 + $0xd4] sm:$0xf]  ;;  %v2184_v54 = vor.u32 %v2348_v48, %v2183_v47  ;;  %v630_v47 = vld [vmem:[#allocation2 + $0x18] sm:$0xff] }
  0x8b   : > { %v2188_v56 = vor.u32 %v2347_v51, %v2185_v52 }
  0x8c   : > { %955 = vmatmul.bf16.vlgmr.msra.gmra.mxu0 %v2080_v57  ;;  %995 = vmatmul.bf16.vlgmr.msra.gmra.mxu2 %v2144_v58  ;;  %v2127_v57 = vld [vmem:[%s2908_s22 + $0x60] sm:$0xf]  ;;  %v2334_v58 = vld [vmem:[%s2908_s22 + $0x64] sm:$0xf0] }
  0x8d   : > { %1044 = vmatmul.bf16.vlgmr.msra.gmra.mxu1 %v2084_v59  ;;  %1084 = vmatmul.bf16.vlgmr.msra.gmra.mxu3 %v2148_v60  ;;  %v2191_v59 = vld [vmem:[%s2908_s22 + $0xe0] sm:$0xf]  ;;  %v2350_v60 = vld [vmem:[%s2908_s22 + $0xe4] sm:$0xf0]  ;;  %v2128_v1 = vor.u32 %v2334_v58, %v2127_v57  ;;  %v631_v57 = vld [vmem:[#allocation2 + $0x50] sm:$0xff] }
  0x8e   : > { %v2192_v2 = vor.u32 %v2350_v60, %v2191_v59 }
  0x9c   : > { %960 = vmatmul.bf16.gmra.mxu0 %v2088_v5  ;;  %1000 = vmatmul.bf16.gmra.mxu2 %v2152_v6  ;;  %v2135_v5 = vld [vmem:[%s2908_s22 + $0x70] sm:$0xf]  ;;  %v2336_v6 = vld [vmem:[%s2908_s22 + $0x74] sm:$0xf0] }
  0x9d   : > { %1049 = vmatmul.bf16.gmra.mxu1 %v2092_v7  ;;  %1089 = vmatmul.bf16.gmra.mxu3 %v2156_v8  ;;  %v2199_v7 = vld [vmem:[%s2908_s22 + $0xf0] sm:$0xf]  ;;  %v2352_v8 = vld [vmem:[%s2908_s22 + $0xf4] sm:$0xf0]  ;;  %v2136_v13 = vor.u32 %v2336_v6, %v2135_v5 }
  0x9e   : > { %v2200_v14 = vor.u32 %v2352_v8, %v2199_v7 }
  0xac   : > { %965 = vmatmul.bf16.gmra.mxu0 %v2096_v17  ;;  %1005 = vmatmul.bf16.gmra.mxu2 %v2160_v18  ;;  %v627_v18 = vld [vmem:[#allocation2 + $0xb0] sm:$0xff] }
  0xad   : > { %1054 = vmatmul.bf16.gmra.mxu1 %v2100_v19  ;;  %1094 = vmatmul.bf16.gmra.mxu3 %v2164_v20 }
  0xbc   : > { %970 = vmatmul.bf16.gmra.mxu0 %v2104_v29  ;;  %1010 = vmatmul.bf16.gmra.mxu2 %v2168_v30 }
  0xbd   : > { %1059 = vmatmul.bf16.gmra.mxu1 %v2108_v31  ;;  %1099 = vmatmul.bf16.gmra.mxu3 %v2172_v32 }
  0xcc   : > { %975 = vmatmul.bf16.gmra.mxu0 %v2112_v41  ;;  %1015 = vmatmul.bf16.gmra.mxu2 %v2176_v42 }
  0xcd   : > { %1064 = vmatmul.bf16.gmra.mxu1 %v2116_v43  ;;  %1104 = vmatmul.bf16.gmra.mxu3 %v2180_v44  ;;  %v645_v43 = vld [vmem:[#allocation2 + $0x40] sm:$0xff] }
  0xdc   : > { %980 = vmatmul.bf16.gmra.mxu0 %v2120_v53  ;;  %1020 = vmatmul.bf16.gmra.mxu2 %v2184_v54  ;;  %v646_v53 = vld [vmem:[#allocation2 + $0xc8] sm:$0xff] }
  0xdd   : > { %1069 = vmatmul.bf16.gmra.mxu1 %v2124_v55  ;;  %1109 = vmatmul.bf16.gmra.mxu3 %v2188_v56 }
  0xec   : > { %985 = vmatmul.bf16.gmra.mxu0 %v2128_v1  ;;  %1025 = vmatmul.bf16.gmra.mxu2 %v2192_v2 }
  0xed   : > { %1074 = vmatmul.bf16.gmra.mxu1 %v2132_v3  ;;  %1114 = vmatmul.bf16.gmra.mxu3 %v2196_v4  ;;  %v632_v3 = vld [vmem:[#allocation2 + $0x68] sm:$0xff] }
  0xfc   : > { %990 = vmatmul.bf16.gmra.mxu0 %v2136_v13  ;;  %1030 = vmatmul.bf16.gmra.mxu2 %v2200_v14  ;;  %v633_v13 = vld [vmem:[#allocation2 + $0x30] sm:$0xff] }
  0xfd   : > { %1079 = vmatmul.bf16.gmra.mxu1 %v2140_v15  ;;  %1119 = vmatmul.bf16.gmra.mxu3 %v2204_v16 }
 0x109   : > { %v956_v17 = vpop.f32.mrf.mxu0 }
 0x10a   : > { %v1045_v19 = vpop.f32.mrf.mxu1 }
 0x10b   : > { %v1046_v20 = vadd.f32 %v1045_v19, %v956_v17  ;;  %v649_v19 = vld [vmem:[#allocation2 + $0x70] sm:$0xff] }
 0x10d   : > { %v1125_v21 = vadd.f32 %v1046_v20, %v627_v18 }
 0x10f   : > { %1157 = vst [vmem:[#allocation2 + $0xb0] sm:$0xff] %v1125_v21  ;;  %v996_v22 = vpop.f32.mrf.mxu2 }
 0x110   : > { %v1085_v24 = vpop.f32.mrf.mxu3 }
 0x111   : > { %v1086_v25 = vadd.f32 %v1085_v24, %v996_v22  ;;  %v958_v26 = vpop.f32.mrf.mxu0 }
 0x112   : > { %v1047_v28 = vpop.f32.mrf.mxu1 }
 0x113   : > { %v1141_v29 = vadd.f32 %v1086_v25, %v643_v23  ;;  %v1048_v30 = vadd.f32 %v1047_v28, %v958_v26  ;;  %v634_v23 = vld [vmem:[#allocation2 + $0x48] sm:$0xff] }
 0x115   : > { %1173 = vst [vmem:[#allocation2 + $0x38] sm:$0xff] %v1141_v29  ;;  %v1126_v31 = vadd.f32 %v1048_v30, %v628_v27  ;;  %v650_v29 = vld [vmem:[#allocation2 + $0xc0] sm:$0xff] }
 0x117   : > { %1158 = vst [vmem:[#allocation2] sm:$0xff] %v1126_v31  ;;  %v998_v32 = vpop.f32.mrf.mxu2 }
 0x118   : > { %v1087_v34 = vpop.f32.mrf.mxu3 }
 0x119   : > { %v1088_v35 = vadd.f32 %v1087_v34, %v998_v32  ;;  %v961_v36 = vpop.f32.mrf.mxu0 }
 0x11a   : > { %v1050_v38 = vpop.f32.mrf.mxu1 }
 0x11b   : > { %v1142_v39 = vadd.f32 %v1088_v35, %v644_v33  ;;  %v1051_v40 = vadd.f32 %v1050_v38, %v961_v36  ;;  %v635_v33 = vld [vmem:[#allocation2 + $0x80] sm:$0xff] }
 0x11d   : > { %1174 = vst [vmem:[#allocation2 + $0x58] sm:$0xff] %v1142_v39  ;;  %v1127_v41 = vadd.f32 %v1051_v40, %v629_v37  ;;  %v651_v39 = vld [vmem:[#allocation2 + $0xa8] sm:$0xff] }
 0x11f   : > { %1159 = vst [vmem:[#allocation2 + $0xd8] sm:$0xff] %v1127_v41  ;;  %v1001_v42 = vpop.f32.mrf.mxu2 }
 0x120   : > { %v1090_v44 = vpop.f32.mrf.mxu3 }
 0x121   : > { %v1091_v45 = vadd.f32 %v1090_v44, %v1001_v42  ;;  %v963_v46 = vpop.f32.mrf.mxu0 }
 0x122   : > { %v1052_v48 = vpop.f32.mrf.mxu1 }
 0x123   : > { %v1143_v49 = vadd.f32 %v1091_v45, %v645_v43  ;;  %v1053_v50 = vadd.f32 %v1052_v48, %v963_v46  ;;  %v636_v43 = vld [vmem:[#allocation2 + $0x88] sm:$0xff] }
 0x125   : > { %1175 = vst [vmem:[#allocation2 + $0x40] sm:$0xff] %v1143_v49  ;;  %v1128_v51 = vadd.f32 %v1053_v50, %v630_v47  ;;  %v652_v49 = vld [vmem:[#allocation2 + $0xd0] sm:$0xff] }
 0x127   : > { %1160 = vst [vmem:[#allocation2 + $0x18] sm:$0xff] %v1128_v51  ;;  %v1003_v52 = vpop.f32.mrf.mxu2 }
 0x128   : > { %v1092_v54 = vpop.f32.mrf.mxu3 }
 0x129   : > { %v1093_v55 = vadd.f32 %v1092_v54, %v1003_v52  ;;  %v966_v56 = vpop.f32.mrf.mxu0 }
 0x12a   : > { %v1055_v58 = vpop.f32.mrf.mxu1 }
 0x12b   : > { %v1144_v59 = vadd.f32 %v1093_v55, %v646_v53  ;;  %v1056_v60 = vadd.f32 %v1055_v58, %v966_v56  ;;  %v637_v53 = vld [vmem:[#allocation2 + $0xe8] sm:$0xff] }
 0x12d   : > { %1176 = vst [vmem:[#allocation2 + $0xc8] sm:$0xff] %v1144_v59  ;;  %v1129_v61 = vadd.f32 %v1056_v60, %v631_v57  ;;  %v653_v59 = vld [vmem:[#allocation2 + $0x10] sm:$0xff] }
 0x12f   : > { %1161 = vst [vmem:[#allocation2 + $0x50] sm:$0xff] %v1129_v61  ;;  %v1006_v62 = vpop.f32.mrf.mxu2 }
 0x130   : > { %v1095_v0 = vpop.f32.mrf.mxu3 }
 0x131   : > { %v1096_v1 = vadd.f32 %v1095_v0, %v1006_v62  ;;  %v968_v2 = vpop.f32.mrf.mxu0 }
 0x132   : > { %v1057_v4 = vpop.f32.mrf.mxu1 }
 0x133   : > { %v1145_v5 = vadd.f32 %v1096_v1, %v647_v63  ;;  %v1058_v6 = vadd.f32 %v1057_v4, %v968_v2  ;;  %v638_v63 = vld [vmem:[#allocation2 + $0xb8] sm:$0xff] }
 0x135   : > { %1177 = vst [vmem:[#allocation2 + $0xe0] sm:$0xff] %v1145_v5  ;;  %v1130_v7 = vadd.f32 %v1058_v6, %v632_v3  ;;  %v654_v5 = vld [vmem:[#allocation2 + $0x28] sm:$0xff] }
 0x137   : > { %1162 = vst [vmem:[#allocation2 + $0x68] sm:$0xff] %v1130_v7  ;;  %v1008_v8 = vpop.f32.mrf.mxu2 }
 0x138   : > { %v1097_v10 = vpop.f32.mrf.mxu3 }
 0x139   : > { %v1098_v11 = vadd.f32 %v1097_v10, %v1008_v8  ;;  %v971_v12 = vpop.f32.mrf.mxu0 }
 0x13a   : > { %v1060_v14 = vpop.f32.mrf.mxu1 }
 0x13b   : > { %v1146_v15 = vadd.f32 %v1098_v11, %v648_v9  ;;  %v1061_v16 = vadd.f32 %v1060_v14, %v971_v12  ;;  %v639_v9 = vld [vmem:[#allocation2 + $0x60] sm:$0xff] }
 0x13d   : > { %1178 = vst [vmem:[#allocation2 + $0x90] sm:$0xff] %v1146_v15  ;;  %v1131_v17 = vadd.f32 %v1061_v16, %v633_v13  ;;  %v655_v15 = vld [vmem:[#allocation2 + $0xa0] sm:$0xff] }
 0x13f   : > { %1163 = vst [vmem:[#allocation2 + $0x30] sm:$0xff] %v1131_v17  ;;  %v1011_v18 = vpop.f32.mrf.mxu2 }
 0x140   : > { %v1100_v20 = vpop.f32.mrf.mxu3 }
 0x141   : > { %v1101_v21 = vadd.f32 %v1100_v20, %v1011_v18  ;;  %v973_v22 = vpop.f32.mrf.mxu0 }
 0x142   : > { %v1062_v24 = vpop.f32.mrf.mxu1 }
 0x143   : > { %v1147_v25 = vadd.f32 %v1101_v21, %v649_v19  ;;  %v1063_v26 = vadd.f32 %v1062_v24, %v973_v22  ;;  %v640_v19 = vld [vmem:[#allocation2 + $0xf0] sm:$0xff] }
 0x145   : > { %1179 = vst [vmem:[#allocation2 + $0x70] sm:$0xff] %v1147_v25  ;;  %v1132_v27 = vadd.f32 %v1063_v26, %v634_v23  ;;  %v656_v25 = vld [vmem:[#allocation2 + $0xf8] sm:$0xff] }
 0x147   : > { %1164 = vst [vmem:[#allocation2 + $0x48] sm:$0xff] %v1132_v27  ;;  %v1013_v28 = vpop.f32.mrf.mxu2 }
 0x148   : > { %v1102_v30 = vpop.f32.mrf.mxu3 }
 0x149   : > { %v1103_v31 = vadd.f32 %v1102_v30, %v1013_v28  ;;  %v976_v32 = vpop.f32.mrf.mxu0 }
 0x14a   : > { %v1065_v34 = vpop.f32.mrf.mxu1 }
 0x14b   : > { %v1148_v35 = vadd.f32 %v1103_v31, %v650_v29  ;;  %v1066_v36 = vadd.f32 %v1065_v34, %v976_v32  ;;  %v641_v29 = vld [vmem:[#allocation2 + $0x8] sm:$0xff] }
 0x14d   : > { %1180 = vst [vmem:[#allocation2 + $0xc0] sm:$0xff] %v1148_v35  ;;  %v1133_v37 = vadd.f32 %v1066_v36, %v635_v33  ;;  %v657_v35 = vld [vmem:[#allocation2 + $0x20] sm:$0xff] }
 0x14f   : > { %1165 = vst [vmem:[#allocation2 + $0x80] sm:$0xff] %v1133_v37  ;;  %v1016_v38 = vpop.f32.mrf.mxu2 }
 0x150   : > { %v1105_v40 = vpop.f32.mrf.mxu3 }
 0x151   : > { %v1106_v41 = vadd.f32 %v1105_v40, %v1016_v38  ;;  %v978_v42 = vpop.f32.mrf.mxu0 }
 0x152   : > { %v1067_v44 = vpop.f32.mrf.mxu1 }
 0x153   : > { %v1149_v45 = vadd.f32 %v1106_v41, %v651_v39  ;;  %v1068_v46 = vadd.f32 %v1067_v44, %v978_v42  ;;  %v642_v39 = vld [vmem:[#allocation2 + $0x78] sm:$0xff] }
 0x155   : > { %1181 = vst [vmem:[#allocation2 + $0xa8] sm:$0xff] %v1149_v45  ;;  %v1134_v47 = vadd.f32 %v1068_v46, %v636_v43  ;;  %v658_v45 = vld [vmem:[#allocation2 + $0x98] sm:$0xff] }
 0x157   : > { %1166 = vst [vmem:[#allocation2 + $0x88] sm:$0xff] %v1134_v47  ;;  %v1018_v48 = vpop.f32.mrf.mxu2 }
 0x158   : > { %v1107_v50 = vpop.f32.mrf.mxu3 }
 0x159   : > { %v1108_v51 = vadd.f32 %v1107_v50, %v1018_v48  ;;  %v981_v52 = vpop.f32.mrf.mxu0 }
 0x15a   : > { %v1070_v54 = vpop.f32.mrf.mxu1 }
 0x15b   : > { %v1150_v55 = vadd.f32 %v1108_v51, %v652_v49  ;;  %v1071_v56 = vadd.f32 %v1070_v54, %v981_v52 }
 0x15d   : > { %1182 = vst [vmem:[#allocation2 + $0xd0] sm:$0xff] %v1150_v55  ;;  %v1135_v57 = vadd.f32 %v1071_v56, %v637_v53 }
 0x15f   : > { %1167 = vst [vmem:[#allocation2 + $0xe8] sm:$0xff] %v1135_v57  ;;  %v1021_v58 = vpop.f32.mrf.mxu2 }
 0x160   : > { %v1110_v60 = vpop.f32.mrf.mxu3 }
 0x161   : > { %v1111_v61 = vadd.f32 %v1110_v60, %v1021_v58  ;;  %v983_v62 = vpop.f32.mrf.mxu0 }
 0x162   : > { %v1072_v0 = vpop.f32.mrf.mxu1 }
 0x163   : > { %v1151_v1 = vadd.f32 %v1111_v61, %v653_v59  ;;  %v1073_v2 = vadd.f32 %v1072_v0, %v983_v62 }
 0x165   : > { %1183 = vst [vmem:[#allocation2 + $0x10] sm:$0xff] %v1151_v1  ;;  %v1136_v3 = vadd.f32 %v1073_v2, %v638_v63 }
 0x167   : > { %1168 = vst [vmem:[#allocation2 + $0xb8] sm:$0xff] %v1136_v3  ;;  %v1023_v4 = vpop.f32.mrf.mxu2 }
 0x168   : > { %v1112_v6 = vpop.f32.mrf.mxu3 }
 0x169   : > { %v1113_v7 = vadd.f32 %v1112_v6, %v1023_v4  ;;  %v986_v8 = vpop.f32.mrf.mxu0 }
 0x16a   : > { %v1075_v10 = vpop.f32.mrf.mxu1 }
 0x16b   : > { %v1152_v11 = vadd.f32 %v1113_v7, %v654_v5  ;;  %v1076_v12 = vadd.f32 %v1075_v10, %v986_v8 }
 0x16d   : > { %1184 = vst [vmem:[#allocation2 + $0x28] sm:$0xff] %v1152_v11  ;;  %v1137_v13 = vadd.f32 %v1076_v12, %v639_v9 }
 0x16f   : > { %1169 = vst [vmem:[#allocation2 + $0x60] sm:$0xff] %v1137_v13  ;;  %v1026_v14 = vpop.f32.mrf.mxu2 }
 0x170   : > { %v1115_v16 = vpop.f32.mrf.mxu3 }
 0x171   : > { %v1116_v17 = vadd.f32 %v1115_v16, %v1026_v14  ;;  %v988_v18 = vpop.f32.mrf.mxu0 }
 0x172   : > { %v1077_v20 = vpop.f32.mrf.mxu1 }
 0x173   : > { %v1153_v21 = vadd.f32 %v1116_v17, %v655_v15  ;;  %v1078_v22 = vadd.f32 %v1077_v20, %v988_v18 }
 0x175   : > { %1185 = vst [vmem:[#allocation2 + $0xa0] sm:$0xff] %v1153_v21  ;;  %v1138_v23 = vadd.f32 %v1078_v22, %v640_v19 }
 0x177   : > { %1170 = vst [vmem:[#allocation2 + $0xf0] sm:$0xff] %v1138_v23  ;;  %v1028_v24 = vpop.f32.mrf.mxu2 }
 0x178   : > { %v1117_v26 = vpop.f32.mrf.mxu3 }
 0x179   : > { %v1118_v27 = vadd.f32 %v1117_v26, %v1028_v24  ;;  %v991_v28 = vpop.f32.mrf.mxu0 }
 0x17a   : > { %v1080_v30 = vpop.f32.mrf.mxu1 }
 0x17b   : > { %v1154_v31 = vadd.f32 %v1118_v27, %v656_v25  ;;  %v1081_v32 = vadd.f32 %v1080_v30, %v991_v28 }
 0x17d   : > { %1186 = vst [vmem:[#allocation2 + $0xf8] sm:$0xff] %v1154_v31  ;;  %v1139_v33 = vadd.f32 %v1081_v32, %v641_v29 }
 0x17f   : > { %1171 = vst [vmem:[#allocation2 + $0x8] sm:$0xff] %v1139_v33  ;;  %v1031_v34 = vpop.f32.mrf.mxu2 }
 0x180   : > { %v1120_v36 = vpop.f32.mrf.mxu3 }
 0x181   : > { %v1121_v37 = vadd.f32 %v1120_v36, %v1031_v34  ;;  %v993_v38 = vpop.f32.mrf.mxu0 }
 0x182   : > { %v1082_v40 = vpop.f32.mrf.mxu1 }
 0x183   : > { %v1155_v41 = vadd.f32 %v1121_v37, %v657_v35  ;;  %v1083_v42 = vadd.f32 %v1082_v40, %v993_v38 }
 0x185   : > { %1187 = vst [vmem:[#allocation2 + $0x20] sm:$0xff] %v1155_v41  ;;  %v1140_v43 = vadd.f32 %v1083_v42, %v642_v39 }
 0x187   : > { %1172 = vst [vmem:[#allocation2 + $0x78] sm:$0xff] %v1140_v43  ;;  %v1033_v44 = vpop.f32.mrf.mxu2 }
 0x188   : > { %v1122_v46 = vpop.f32.mrf.mxu3 }
 0x189   : > { %v1123_v47 = vadd.f32 %v1122_v46, %v1033_v44  ;;  %1192 = sbr.rel (%p2269_p12) target bundleno = 630 (0x276), region = 102 }
 0x18b   : > { %v1156_v48 = vadd.f32 %v1123_v47, %v658_v45 }
 0x18d   : > { %1188 = vst [vmem:[#allocation2 + $0x98] sm:$0xff] %v1156_v48 }
 0x18e   : > { %v2360_v49 = vld [vmem:[%s3360_s2 + $0x38] sm:$0xff]  ;;  %v2359_v50 = vld [vmem:[%s3360_s2 + $0x30] sm:$0xff]  ;;  %v1194_v52 = vld [vmem:[#allocation2] sm:$0xff] }
 0x18f   : > { %1621 = vmatpush.bf16.msra.mxu0 %v2360_v49  ;;  %2567 = vmatpush.bf16.msra.mxu1 %v2360_v49  ;;  %v1193_v51 = vld [vmem:[#allocation2 + $0xb0] sm:$0xff]  ;;  %v3007_v53 = vld [vmem:[%s3365_s7] ss:$0 sm:$0xff]  ;;  %vm1226_vm1 = vcmp.ge.f32.partialorder %v1194_v52, 0.0  ;;  %v2358_v56 = vld [vmem:[%s3360_s2 + $0x28] sm:$0xff] }
 0x190   : > { %2568 = vmatpush.bf16.msra.mxu2 %v2360_v49  ;;  %2569 = vmatpush.bf16.msra.mxu3 %v2360_v49  ;;  %vm1225_vm0 = vcmp.ge.f32.partialorder %v1193_v51, 0.0  ;;  %v3012_v54 = vld [vmem:[%s3361_s3] ss:$0 sm:$0xff]  ;;  %v1261_v57 = vmul.f32 %v3007_v53, %v1193_v51  ;;  %v1262_v58 = vmul.f32 %v3007_v53, %v1194_v52  ;;  %v1202_v59 = vld [vmem:[#allocation2 + $0x88] sm:$0xff]  ;;  %v1209_v63 = vld [vmem:[#allocation2 + $0x38] sm:$0xff] }
 0x191   : > { %v1201_v55 = vld [vmem:[#allocation2 + $0x80] sm:$0xff]  ;;  %vm1234_vm3 = vcmp.ge.f32.partialorder %v1202_v59, 0.0  ;;  %v1270_v62 = vmul.f32 %v3007_v53, %v1202_v59  ;;  %v1210_v0 = vld [vmem:[#allocation2 + $0x58] sm:$0xff]  ;;  %vm1241_vm4 = vcmp.ge.f32.partialorder %v1209_v63, 0.0  ;;  %v1217_v8 = vld [vmem:[#allocation2 + $0xa8] sm:$0xff]  ;;  %v1277_v10 = vmul.f32 %v3007_v53, %v1209_v63 }
 0x192   : > { %vm1233_vm2 = vcmp.ge.f32.partialorder %v1201_v55, 0.0  ;;  %v1269_v60 = vmul.f32 %v3007_v53, %v1201_v55  ;;  %v3023_v61 = vld [vmem:[%s3362_s4] ss:$0 sm:$0xff]  ;;  %v1293_v1 = vsel %vm1225_vm0, %v1193_v51, %v1261_v57  ;;  %v1294_v2 = vsel %vm1226_vm1, %v1194_v52, %v1262_v58  ;;  %v1218_v23 = vld [vmem:[#allocation2 + $0xd0] sm:$0xff]  ;;  %v1195_v28 = vld [vmem:[#allocation2 + $0xd8] sm:$0xff] }
 0x193   : > { %1622 = vmatpush.bf16.msra.mxu0 %v2359_v50  ;;  %2570 = vmatpush.bf16.msra.mxu1 %v2359_v50  ;;  %v1329_v4 = vmul.f32 %v3012_v54, %v1293_v1  ;;  %v1330_v5 = vmul.f32 %v3012_v54, %v1294_v2  ;;  %v1302_v6 = vsel %vm1234_vm3, %v1202_v59, %v1270_v62  ;;  %vm1242_vm5 = vcmp.ge.f32.partialorder %v1210_v0, 0.0  ;;  %v2357_v12 = vld [vmem:[%s3360_s2 + $0x20] sm:$0xff]  ;;  %v2356_v29 = vld [vmem:[%s3360_s2 + $0x18] sm:$0xff]  ;;  %v1203_v44 = vld [vmem:[#allocation2 + $0xe8] sm:$0xff] }
 0x194   : > { %2571 = vmatpush.bf16.msra.mxu2 %v2359_v50  ;;  %2572 = vmatpush.bf16.msra.mxu3 %v2359_v50  ;;  %v1301_v3 = vsel %vm1233_vm2, %v1201_v55, %v1269_v60  ;;  %v1338_v9 = vmul.f32 %v3012_v54, %v1302_v6  ;;  %v1278_v11 = vmul.f32 %v3007_v53, %v1210_v0  ;;  %vm1249_vm6 = vcmp.ge.f32.partialorder %v1217_v8, 0.0  ;;  %v1196_v37 = vld [vmem:[#allocation2 + $0x18] sm:$0xff]  ;;  %v2355_v45 = vld [vmem:[%s3360_s2 + $0x10] sm:$0xff]  ;;  %v1211_v62 = vld [vmem:[#allocation2 + $0x40] sm:$0xff] }
 0x195   : > { %v1337_v7 = vmul.f32 %v3012_v54, %v1301_v3  ;;  %v1365_v13 = vadd.f32 %v3023_v61, %v1329_v4  ;;  %v1366_v14 = vadd.f32 %v3023_v61, %v1330_v5  ;;  %v1309_v17 = vsel %vm1241_vm4, %v1209_v63, %v1277_v10  ;;  %v1204_v49 = vld [vmem:[#allocation2 + $0xb8] sm:$0xff]  ;;  %v2354_v63 = vld [vmem:[%s3360_s2 + $0x8] sm:$0xff] }
 0x196   : > { %v1374_v16 = vadd.f32 %v3023_v61, %v1338_v9  ;;  %v1310_v18 = vsel %vm1242_vm5, %v1210_v0, %v1278_v11  ;;  %v1345_v26 = vmul.f32 %v3012_v54, %v1309_v17  ;;  %v1285_v33 = vmul.f32 %v3007_v53, %v1217_v8  ;;  %v1212_v11 = vld [vmem:[#allocation2 + $0xc8] sm:$0xff]  ;;  %v2353_v17 = vld [vmem:[%s3360_s2] sm:$0xff] }
 0x197   : > { %1623 = vmatpush.bf16.msra.mxu0 %v2358_v56  ;;  %2573 = vmatpush.bf16.msra.mxu1 %v2358_v56  ;;  %v1373_v15 = vadd.f32 %v3023_v61, %v1337_v7  ;;  %v1397_v19 = vpack.c.bf16 %v1365_v13, %v1365_v13  ;;  %v1398_v20 = vpack.c.bf16 %v1366_v14, %v1366_v14  ;;  %vm1250_vm7 = vcmp.ge.f32.partialorder %v1218_v23, 0.0 }
 0x198   : > { %2574 = vmatpush.bf16.msra.mxu2 %v2358_v56  ;;  %2575 = vmatpush.bf16.msra.mxu3 %v2358_v56  ;;  %v2364_v21 = vpack.c.bf16 %v1366_v14, %v1365_v13  ;;  %v1406_v24 = vpack.c.bf16 %v1374_v16, %v1374_v16  ;;  %v1346_v27 = vmul.f32 %v3012_v54, %v1310_v18  ;;  %vm1227_vm8 = vcmp.ge.f32.partialorder %v1195_v28, 0.0 }
 0x199   : > { %v1405_v22 = vpack.c.bf16 %v1373_v15, %v1373_v15  ;;  %v2384_v25 = vpack.c.bf16 %v1374_v16, %v1373_v15  ;;  %v3048_v30 = vunpack.c.l.b16 %v1397_v19  ;;  %v3050_v31 = vunpack.c.l.b16 %v1398_v20  ;;  %v1219_v16 = vld [vmem:[#allocation2 + $0x10] sm:$0xff] }
 0x19a   : > { %2365 = vst [vmem:[%s2901_s29] sm:$0xff] %v2364_v21   ;;  %v3056_v34 = vunpack.c.l.b16 %v1406_v24  ;;  %v1381_v35 = vadd.f32 %v3023_v61, %v1345_v26  ;;  %v1382_v36 = vadd.f32 %v3023_v61, %v1346_v27  ;;  %v1286_v38 = vmul.f32 %v3007_v53, %v1218_v23  ;;  %v1220_v27 = vld [vmem:[#allocation2 + $0x28] sm:$0xff] }
 0x19b   : > { %1624 = vmatpush.bf16.msra.mxu0 %v2357_v12  ;;  %2576 = vmatpush.bf16.msra.mxu1 %v2357_v12  ;;  %v3052_v32 = vunpack.c.l.b16 %v1405_v22  ;;  %2524 = vst [vmem:[%s2901_s29 + $0x20] sm:$0xff] %v2384_v25   ;;  %v1317_v39 = vsel %vm1249_vm6, %v1217_v8, %v1285_v33  ;;  %v1541_v40 = vpack.c.b16 %v3050_v31, %v3048_v30  ;;  %vm1228_vm9 = vcmp.ge.f32.partialorder %v1196_v37, 0.0  ;;  %v1206_v31 = vld [vmem:[#allocation2 + $0xf0] sm:$0xff] }
 0x19c   : > { %2577 = vmatpush.bf16.msra.mxu2 %v2357_v12  ;;  %2578 = vmatpush.bf16.msra.mxu3 %v2357_v12  ;;  %v1413_v42 = vpack.c.bf16 %v1381_v35, %v1381_v35  ;;  %v2404_v43 = vpack.c.bf16 %v1382_v36, %v1381_v35  ;;  %v1318_v46 = vsel %vm1250_vm7, %v1218_v23, %v1286_v38  ;;  %vm1235_vm10 = vcmp.ge.f32.partialorder %v1203_v44, 0.0 }
 0x19d   : > { %v1545_v41 = vpack.c.b16 %v3056_v34, %v3052_v32  ;;  %v1353_v47 = vmul.f32 %v3012_v54, %v1317_v39  ;;  %v1263_v48 = vmul.f32 %v3007_v53, %v1195_v28  ;;  %v1414_v50 = vpack.c.bf16 %v1382_v36, %v1382_v36  ;;  %v1197_v36 = vld [vmem:[#allocation2 + $0x50] sm:$0xff] }
 0x19e   : > { %2528 = vst [vmem:[%s2901_s29 + $0x40] sm:$0xff] %v2404_v43   ;;  %v1354_v51 = vmul.f32 %v3012_v54, %v1318_v46  ;;  %v1264_v52 = vmul.f32 %v3007_v53, %v1196_v37  ;;  %v1271_v57 = vmul.f32 %v3007_v53, %v1203_v44  ;;  %vm1236_vm11 = vcmp.ge.f32.partialorder %v1204_v49, 0.0  ;;  %v1198_v43 = vld [vmem:[#allocation2 + $0x68] sm:$0xff] }
 0x19f   : > { %1625 = vmatpush.bf16.msra.mxu0 %v2356_v29  ;;  %2579 = vmatpush.bf16.msra.mxu1 %v2356_v29  ;;  %v1389_v55 = vadd.f32 %v3023_v61, %v1353_v47  ;;  %v1295_v56 = vsel %vm1227_vm8, %v1195_v28, %v1263_v48  ;;  %v3082_v0 = vunpack.c.l.b16 %v1413_v42  ;;  %v1272_v3 = vmul.f32 %v3007_v53, %v1204_v49 }
 0x1a0   : > { %2580 = vmatpush.bf16.msra.mxu2 %v2356_v29  ;;  %2581 = vmatpush.bf16.msra.mxu3 %v2356_v29  ;;  %v1390_v58 = vadd.f32 %v3023_v61, %v1354_v51  ;;  %v1296_v59 = vsel %vm1228_vm9, %v1196_v37, %v1264_v52  ;;  %v1331_v60 = vmul.f32 %v3012_v54, %v1295_v56  ;;  %v3086_v4 = vunpack.c.l.b16 %v1414_v50  ;;  %v1205_v50 = vld [vmem:[#allocation2 + $0x60] sm:$0xff] }
 0x1a1   : > { %v1421_v1 = vpack.c.bf16 %v1389_v55, %v1389_v55  ;;  %v1332_v2 = vmul.f32 %v3012_v54, %v1296_v59  ;;  %v1303_v9 = vsel %vm1235_vm10, %v1203_v44, %v1271_v57  ;;  %v1304_v10 = vsel %vm1236_vm11, %v1204_v49, %v1272_v3 }
 0x1a2   : > { %v1422_v5 = vpack.c.bf16 %v1390_v58, %v1390_v58  ;;  %v2424_v6 = vpack.c.bf16 %v1390_v58, %v1389_v55  ;;  %v1367_v7 = vadd.f32 %v3023_v61, %v1331_v60  ;;  %vm1243_vm12 = vcmp.ge.f32.partialorder %v1211_v62, 0.0 }
 0x1a3   : > { %1626 = vmatpush.bf16.msra.mxu0 %v2355_v45  ;;  %2582 = vmatpush.bf16.msra.mxu1 %v2355_v45  ;;  %v1368_v8 = vadd.f32 %v3023_v61, %v1332_v2  ;;  %v1533_v12 = vunpack.c.l.b16 %v1421_v1  ;;  %v1339_v14 = vmul.f32 %v3012_v54, %v1303_v9  ;;  %v1340_v15 = vmul.f32 %v3012_v54, %v1304_v10  ;;  %v1213_v2 = vld [vmem:[#allocation2 + $0xe0] sm:$0xff] }
 0x1a4   : > { %2583 = vmatpush.bf16.msra.mxu2 %v2355_v45  ;;  %2584 = vmatpush.bf16.msra.mxu3 %v2355_v45  ;;  %2532 = vst [vmem:[%s2901_s29 + $0x60] sm:$0xff] %v2424_v6   ;;  %v1534_v13 = vunpack.c.l.b16 %v1422_v5  ;;  %v1399_v18 = vpack.c.bf16 %v1367_v7, %v1367_v7  ;;  %v1279_v20 = vmul.f32 %v3007_v53, %v1211_v62  ;;  %vm1244_vm13 = vcmp.ge.f32.partialorder %v1212_v11, 0.0 }
 0x1a5   : > { %v2369_v19 = vpack.c.bf16 %v1368_v8, %v1367_v7  ;;  %v1400_v21 = vpack.c.bf16 %v1368_v8, %v1368_v8  ;;  %v1375_v22 = vadd.f32 %v3023_v61, %v1339_v14  ;;  %v1376_v23 = vadd.f32 %v3023_v61, %v1340_v15 }
 0x1a6   : > { %v1549_v24 = vpack.c.b16 %v3086_v4, %v3082_v0  ;;  %v1280_v25 = vmul.f32 %v3007_v53, %v1212_v11  ;;  %v1311_v26 = vsel %vm1243_vm12, %v1211_v62, %v1279_v20  ;;  %vm1251_vm14 = vcmp.ge.f32.partialorder %v1219_v16, 0.0 }
 0x1a7   : > { %1627 = vmatpush.bf16.msra.mxu0 %v2354_v63  ;;  %2585 = vmatpush.bf16.msra.mxu1 %v2354_v63  ;;  %2521 = vst [vmem:[%s2901_s29 + $0x8] sm:$0xff] %v2369_v19   ;;  %v1553_v28 = vpack.c.b16 %v1534_v13, %v1533_v12  ;;  %v1407_v29 = vpack.c.bf16 %v1375_v22, %v1375_v22  ;;  %v3107_v37 = vunpack.c.l.b16 %v1399_v18  ;;  %v3111_v44 = vunpack.c.l.b16 %v1400_v21 }
 0x1a8   : > { %2586 = vmatpush.bf16.msra.mxu2 %v2354_v63  ;;  %2587 = vmatpush.bf16.msra.mxu3 %v2354_v63  ;;  %v2389_v33 = vpack.c.bf16 %v1376_v23, %v1375_v22  ;;  %v1347_v35 = vmul.f32 %v3012_v54, %v1311_v26  ;;  %v1408_v38 = vpack.c.bf16 %v1376_v23, %v1376_v23  ;;  %vm1252_vm15 = vcmp.ge.f32.partialorder %v1220_v27, 0.0 }
 0x1a9   : > { %v1312_v39 = vsel %vm1244_vm13, %v1212_v11, %v1280_v25  ;;  %v1287_v42 = vmul.f32 %v3007_v53, %v1219_v16  ;;  %v1288_v47 = vmul.f32 %v3007_v53, %v1220_v27  ;;  %vm1229_vm0 = vcmp.ge.f32.partialorder %v1197_v36, 0.0  ;;  %v1214_v11 = vld [vmem:[#allocation2 + $0x90] sm:$0xff]  ;;  %v1221_v25 = vld [vmem:[#allocation2 + $0xa0] sm:$0xff] }
 0x1aa   : > { %2525 = vst [vmem:[%s2901_s29 + $0x28] sm:$0xff] %v2389_v33   ;;  %v1348_v45 = vmul.f32 %v3012_v54, %v1312_v39  ;;  %v1383_v46 = vadd.f32 %v3023_v61, %v1347_v35  ;;  %v1265_v49 = vmul.f32 %v3007_v53, %v1197_v36  ;;  %v3125_v51 = vunpack.c.l.b16 %v1407_v29  ;;  %v1222_v33 = vld [vmem:[#allocation2 + $0xf8] sm:$0xff]  ;;  %v1199_v39 = vld [vmem:[#allocation2 + $0x30] sm:$0xff] }
 0x1ab   : > { %1628 = vmatpush.bf16.msra.mxu0 %v2353_v17  ;;  %2588 = vmatpush.bf16.msra.mxu1 %v2353_v17  ;;  %v1319_v48 = vsel %vm1251_vm14, %v1219_v16, %v1287_v42  ;;  %vm1230_vm1 = vcmp.ge.f32.partialorder %v1198_v43, 0.0  ;;  %v3128_v56 = vunpack.c.l.b16 %v1408_v38  ;;  %v1320_v57 = vsel %vm1252_vm15, %v1220_v27, %v1288_v47 }
 0x1ac   : > { %2589 = vmatpush.bf16.msra.mxu2 %v2353_v17  ;;  %2590 = vmatpush.bf16.msra.mxu3 %v2353_v17  ;;  %v1384_v52 = vadd.f32 %v3023_v61, %v1348_v45  ;;  %v1415_v55 = vpack.c.bf16 %v1383_v46, %v1383_v46  ;;  %v1355_v58 = vmul.f32 %v3012_v54, %v1319_v48  ;;  %vm1237_vm2 = vcmp.ge.f32.partialorder %v1205_v50, 0.0  ;;  %v1200_v45 = vld [vmem:[#allocation2 + $0x48] sm:$0xff] }
 0x1ad   : > { %v1266_v30 = vmul.f32 %v3007_v53, %v1198_v43  ;;  %v1356_v34 = vmul.f32 %v3012_v54, %v1320_v57  ;;  %v1297_v59 = vsel %vm1229_vm0, %v1197_v36, %v1265_v49  ;;  %v1273_v62 = vmul.f32 %v3007_v53, %v1205_v50  ;;  %v1207_v49 = vld [vmem:[#allocation2 + $0x8] sm:$0xff] }
 0x1ae   : > { %1629 = vmatmul.bf16.vlgmr.msra.gmra.mxu0 %v1541_v40  ;;  %1649 = vmatmul.bf16.vlgmr.msra.gmra.mxu1 %v1545_v41  ;;  %v1416_v40 = vpack.c.bf16 %v1384_v52, %v1384_v52  ;;  %v2409_v32 = vpack.c.bf16 %v1384_v52, %v1383_v46  ;;  %v1391_v41 = vadd.f32 %v3023_v61, %v1355_v58  ;;  %vm1238_vm3 = vcmp.ge.f32.partialorder %v1206_v31, 0.0 }
 0x1af   : > { %1669 = vmatmul.bf16.vlgmr.msra.gmra.mxu2 %v1549_v24  ;;  %1689 = vmatmul.bf16.vlgmr.msra.gmra.mxu3 %v1553_v28  ;;  %v1298_v60 = vsel %vm1230_vm1, %v1198_v43, %v1266_v30  ;;  %v1392_v63 = vadd.f32 %v3023_v61, %v1356_v34  ;;  %v1333_v0 = vmul.f32 %v3012_v54, %v1297_v59  ;;  %v1527_v3 = vunpack.c.l.b16 %v1415_v55 }
 0x1b0   : > { %2529 = vst [vmem:[%s2901_s29 + $0x48] sm:$0xff] %v2409_v32   ;;  %v1334_v1 = vmul.f32 %v3012_v54, %v1298_v60  ;;  %v1423_v4 = vpack.c.bf16 %v1391_v41, %v1391_v41  ;;  %v1274_v5 = vmul.f32 %v3007_v53, %v1206_v31  ;;  %v1305_v6 = vsel %vm1237_vm2, %v1205_v50, %v1273_v62 }
 0x1b1   : > { %v1528_v7 = vunpack.c.l.b16 %v1416_v40  ;;  %v1424_v8 = vpack.c.bf16 %v1392_v63, %v1392_v63  ;;  %v2429_v9 = vpack.c.bf16 %v1392_v63, %v1391_v41  ;;  %v1369_v10 = vadd.f32 %v3023_v61, %v1333_v0 }
 0x1b2   : > { %v1370_v12 = vadd.f32 %v3023_v61, %v1334_v1  ;;  %v1306_v13 = vsel %vm1238_vm3, %v1206_v31, %v1274_v5  ;;  %v1341_v14 = vmul.f32 %v3012_v54, %v1305_v6  ;;  %vm1245_vm4 = vcmp.ge.f32.partialorder %v1213_v2, 0.0 }
 0x1b3   : > { %2533 = vst [vmem:[%s2901_s29 + $0x68] sm:$0xff] %v2429_v9   ;;  %v1535_v15 = vunpack.c.l.b16 %v1423_v4  ;;  %v1536_v16 = vunpack.c.l.b16 %v1424_v8  ;;  %v1401_v17 = vpack.c.bf16 %v1369_v10, %v1369_v10  ;;  %v1342_v18 = vmul.f32 %v3012_v54, %v1306_v13  ;;  %v1215_v8 = vld [vmem:[#allocation2 + $0x70] sm:$0xff]  ;;  %v1216_v13 = vld [vmem:[#allocation2 + $0xc0] sm:$0xff] }
 0x1b4   : > { %v2374_v19 = vpack.c.bf16 %v1370_v12, %v1369_v10  ;;  %v1377_v20 = vadd.f32 %v3023_v61, %v1341_v14  ;;  %vm1246_vm5 = vcmp.ge.f32.partialorder %v1214_v11, 0.0  ;;  %v1281_v21 = vmul.f32 %v3007_v53, %v1213_v2 }
 0x1b5   : > { %v1542_v22 = vpack.c.b16 %v3111_v44, %v3107_v37  ;;  %v1378_v23 = vadd.f32 %v3023_v61, %v1342_v18  ;;  %v1282_v24 = vmul.f32 %v3007_v53, %v1214_v11  ;;  %v1546_v26 = vpack.c.b16 %v3128_v56, %v3125_v51  ;;  %v1208_v56 = vld [vmem:[#allocation2 + $0x78] sm:$0xff] }
 0x1b6   : > { %v1550_v27 = vpack.c.b16 %v1528_v7, %v1527_v3  ;;  %v1402_v28 = vpack.c.bf16 %v1370_v12, %v1370_v12  ;;  %2522 = vst [vmem:[%s2901_s29 + $0x10] sm:$0xff] %v2374_v19   ;;  %v1313_v29 = vsel %vm1245_vm4, %v1213_v2, %v1281_v21  ;;  %v1409_v35 = vpack.c.bf16 %v1377_v20, %v1377_v20 }
 0x1b7   : > { %v2394_v36 = vpack.c.bf16 %v1378_v23, %v1377_v20  ;;  %v1314_v38 = vsel %vm1246_vm5, %v1214_v11, %v1282_v24  ;;  %v1349_v37 = vmul.f32 %v3012_v54, %v1313_v29  ;;  %v1554_v42 = vpack.c.b16 %v1536_v16, %v1535_v15 }
 0x1b8   : > { %v3157_v43 = vunpack.c.l.b16 %v1401_v17  ;;  %v1350_v44 = vmul.f32 %v3012_v54, %v1314_v38  ;;  %vm1253_vm6 = vcmp.ge.f32.partialorder %v1221_v25, 0.0  ;;  %vm1254_vm7 = vcmp.ge.f32.partialorder %v1222_v33, 0.0 }
 0x1b9   : > { %2526 = vst [vmem:[%s2901_s29 + $0x30] sm:$0xff] %v2394_v36   ;;  %v1385_v46 = vadd.f32 %v3023_v61, %v1349_v37  ;;  %v1289_v47 = vmul.f32 %v3007_v53, %v1221_v25  ;;  %v1290_v48 = vmul.f32 %v3007_v53, %v1222_v33  ;;  %v3164_v50 = vunpack.c.l.b16 %v1402_v28 }
 0x1ba   : > { %v1410_v51 = vpack.c.bf16 %v1378_v23, %v1378_v23  ;;  %v1386_v52 = vadd.f32 %v3023_v61, %v1350_v44  ;;  %v1267_v55 = vmul.f32 %v3007_v53, %v1199_v39  ;;  %v3168_v57 = vunpack.c.l.b16 %v1409_v35 }
 0x1bb   : > { %v1321_v58 = vsel %vm1253_vm6, %v1221_v25, %v1289_v47  ;;  %vm1231_vm8 = vcmp.ge.f32.partialorder %v1199_v39, 0.0  ;;  %vm1232_vm9 = vcmp.ge.f32.partialorder %v1200_v45, 0.0  ;;  %v1417_v30 = vpack.c.bf16 %v1385_v46, %v1385_v46 }
 0x1bc   : > { %v2414_v31 = vpack.c.bf16 %v1386_v52, %v1385_v46  ;;  %v1322_v40 = vsel %vm1254_vm7, %v1222_v33, %v1290_v48  ;;  %vm1239_vm10 = vcmp.ge.f32.partialorder %v1207_v49, 0.0  ;;  %v1357_v32 = vmul.f32 %v3012_v54, %v1321_v58 }
 0x1bd   : > { %v1358_v34 = vmul.f32 %v3012_v54, %v1322_v40  ;;  %v1268_v41 = vmul.f32 %v3007_v53, %v1200_v45  ;;  %vm1240_vm11 = vcmp.ge.f32.partialorder %v1208_v56, 0.0  ;;  %v1418_v59 = vpack.c.bf16 %v1386_v52, %v1386_v52 }
 0x1be   : > { %1634 = vmatmul.bf16.gmra.mxu0 %v1542_v22  ;;  %1654 = vmatmul.bf16.gmra.mxu1 %v1546_v26  ;;  %2530 = vst [vmem:[%s2901_s29 + $0x50] sm:$0xff] %v2414_v31   ;;  %v1299_v60 = vsel %vm1231_vm8, %v1199_v39, %v1267_v55  ;;  %v1275_v62 = vmul.f32 %v3007_v53, %v1207_v49  ;;  %v1522_v4 = vunpack.c.l.b16 %v1410_v51  ;;  %v1529_v9 = vunpack.c.l.b16 %v1417_v30  ;;  %v1223_v26 = vld [vmem:[#allocation2 + $0x20] sm:$0xff] }
 0x1bf   : > { %1674 = vmatmul.bf16.gmra.mxu2 %v1550_v27  ;;  %1694 = vmatmul.bf16.gmra.mxu3 %v1554_v42  ;;  %v1276_v63 = vmul.f32 %v3007_v53, %v1208_v56  ;;  %v1393_v0 = vadd.f32 %v3023_v61, %v1357_v32  ;;  %v1394_v1 = vadd.f32 %v3023_v61, %v1358_v34  ;;  %v1530_v18 = vunpack.c.l.b16 %v1418_v59  ;;  %v1224_v27 = vld [vmem:[#allocation2 + $0x98] sm:$0xff] }
 0x1c0   : > { %v1300_v2 = vsel %vm1232_vm9, %v1200_v45, %v1268_v41  ;;  %v1335_v3 = vmul.f32 %v3012_v54, %v1299_v60  ;;  %v1307_v6 = vsel %vm1239_vm10, %v1207_v49, %v1275_v62  ;;  %vm1247_vm12 = vcmp.ge.f32.partialorder %v1215_v8, 0.0 }
 0x1c1   : > { %v1336_v5 = vmul.f32 %v3012_v54, %v1300_v2  ;;  %v1308_v7 = vsel %vm1240_vm11, %v1208_v56, %v1276_v63  ;;  %v1425_v10 = vpack.c.bf16 %v1393_v0, %v1393_v0  ;;  %v1426_v11 = vpack.c.bf16 %v1394_v1, %v1394_v1 }
 0x1c2   : > { %v2434_v12 = vpack.c.bf16 %v1394_v1, %v1393_v0  ;;  %v1371_v14 = vadd.f32 %v3023_v61, %v1335_v3  ;;  %v1343_v16 = vmul.f32 %v3012_v54, %v1307_v6  ;;  %v1344_v17 = vmul.f32 %v3012_v54, %v1308_v7 }
 0x1c3   : > { %v1372_v15 = vadd.f32 %v3023_v61, %v1336_v5  ;;  %v1537_v19 = vunpack.c.l.b16 %v1425_v10  ;;  %v1538_v20 = vunpack.c.l.b16 %v1426_v11  ;;  %vm1248_vm13 = vcmp.ge.f32.partialorder %v1216_v13, 0.0  ;;  %v3213_v5 = vld [vmem:[%s3363_s5] ss:$0 sm:$0xff] }
 0x1c4   : > { %2534 = vst [vmem:[%s2901_s29 + $0x70] sm:$0xff] %v2434_v12   ;;  %v1379_v22 = vadd.f32 %v3023_v61, %v1343_v16  ;;  %v1380_v23 = vadd.f32 %v3023_v61, %v1344_v17  ;;  %v1283_v24 = vmul.f32 %v3007_v53, %v1215_v8  ;;  %v1284_v25 = vmul.f32 %v3007_v53, %v1216_v13  ;;  %v3226_v12 = vld [vmem:[%s3366_s8] ss:$0 sm:$0xff] }
 0x1c5   : > { %v2379_v21 = vpack.c.bf16 %v1372_v15, %v1371_v14  ;;  %v1543_v28 = vpack.c.b16 %v3164_v50, %v3157_v43  ;;  %v1547_v33 = vpack.c.b16 %v1522_v4, %v3168_v57  ;;  %v1551_v35 = vpack.c.b16 %v1530_v18, %v1529_v9  ;;  %v3219_v9 = vld [vmem:[%s3364_s6] ss:$0 sm:$0xff] }
 0x1c6   : > { %v2399_v29 = vpack.c.bf16 %v1380_v23, %v1379_v22  ;;  %v1315_v36 = vsel %vm1247_vm12, %v1215_v8, %v1283_v24  ;;  %v1316_v38 = vsel %vm1248_vm13, %v1216_v13, %v1284_v25  ;;  %v1555_v37 = vpack.c.b16 %v1538_v20, %v1537_v19 }
 0x1c7   : > { %2523 = vst [vmem:[%s2901_s29 + $0x18] sm:$0xff] %v2379_v21   ;;  %v1351_v39 = vmul.f32 %v3012_v54, %v1315_v36  ;;  %vm1255_vm14 = vcmp.ge.f32.partialorder %v1223_v26, 0.0  ;;  %vm1256_vm15 = vcmp.ge.f32.partialorder %v1224_v27, 0.0  ;;  %v1352_v42 = vmul.f32 %v3012_v54, %v1316_v38 }
 0x1c8   : > { %2527 = vst [vmem:[%s2901_s29 + $0x38] sm:$0xff] %v2399_v29   ;;  %v1291_v44 = vmul.f32 %v3007_v53, %v1223_v26  ;;  %v1292_v45 = vmul.f32 %v3007_v53, %v1224_v27  ;;  %v1403_v52 = vpack.c.bf16 %v1371_v14, %v1371_v14  ;;  %v1404_v56 = vpack.c.bf16 %v1372_v15, %v1372_v15 }
 0x1c9   : > { %v1387_v43 = vadd.f32 %v3023_v61, %v1351_v39  ;;  %v1388_v46 = vadd.f32 %v3023_v61, %v1352_v42  ;;  %v1411_v57 = vpack.c.bf16 %v1379_v22, %v1379_v22  ;;  %v1412_v58 = vpack.c.bf16 %v1380_v23, %v1380_v23 }
 0x1ca   : > { %v1323_v47 = vsel %vm1255_vm14, %v1223_v26, %v1291_v44  ;;  %v1324_v48 = vsel %vm1256_vm15, %v1224_v27, %v1292_v45  ;;  %v1515_v41 = vunpack.c.l.b16 %v1403_v52  ;;  %v1516_v59 = vunpack.c.l.b16 %v1404_v56 }
 0x1cb   : > { %v1359_v49 = vmul.f32 %v3012_v54, %v1323_v47  ;;  %v1360_v50 = vmul.f32 %v3012_v54, %v1324_v48  ;;  %v2419_v51 = vpack.c.bf16 %v1388_v46, %v1387_v43  ;;  %v1419_v30 = vpack.c.bf16 %v1387_v43, %v1387_v43 }
 0x1cc   : > { %v1420_v31 = vpack.c.bf16 %v1388_v46, %v1388_v46  ;;  %v1523_v60 = vunpack.c.l.b16 %v1411_v57  ;;  %v1524_v54 = vunpack.c.l.b16 %v1412_v58  ;;  %v1544_v2 = vpack.c.b16 %v1516_v59, %v1515_v41 }
 0x1cd   : > { %v1395_v53 = vadd.f32 %v3023_v61, %v1359_v49  ;;  %v1396_v55 = vadd.f32 %v3023_v61, %v1360_v50  ;;  %2531 = vst [vmem:[%s2901_s29 + $0x58] sm:$0xff] %v2419_v51   ;;  %v1531_v62 = vunpack.c.l.b16 %v1419_v30 }
 0x1ce   : > { %1639 = vmatmul.bf16.gmra.mxu0 %v1543_v28  ;;  %1659 = vmatmul.bf16.gmra.mxu1 %v1547_v33  ;;  %v1532_v63 = vunpack.c.l.b16 %v1420_v31  ;;  %v1548_v61 = vpack.c.b16 %v1524_v54, %v1523_v60 }
 0x1cf   : > { %1679 = vmatmul.bf16.gmra.mxu2 %v1551_v35  ;;  %1699 = vmatmul.bf16.gmra.mxu3 %v1555_v37  ;;  %v1427_v40 = vpack.c.bf16 %v1395_v53, %v1395_v53  ;;  %v1428_v32 = vpack.c.bf16 %v1396_v55, %v1396_v55  ;;  %v2439_v34 = vpack.c.bf16 %v1396_v55, %v1395_v53 }
 0x1d0   : > { %v1552_v3 = vpack.c.b16 %v1532_v63, %v1531_v62 }
 0x1d1   : > { %2535 = vst [vmem:[%s2901_s29 + $0x78] sm:$0xff] %v2439_v34   ;;  %v1539_v0 = vunpack.c.l.b16 %v1427_v40  ;;  %v1540_v1 = vunpack.c.l.b16 %v1428_v32 }
 0x1d3   : > { %v1556_v4 = vpack.c.b16 %v1540_v1, %v1539_v0 }
 0x1de   : > { %1644 = vmatmul.bf16.gmra.mxu0 %v1544_v2  ;;  %1664 = vmatmul.bf16.gmra.mxu1 %v1548_v61 }
 0x1df   : > { %1684 = vmatmul.bf16.gmra.mxu2 %v1552_v3  ;;  %1704 = vmatmul.bf16.gmra.mxu3 %v1556_v4 }
 0x22b   : > { %v1630_v6 = vpop.f32.mrf.mxu0  ;;  %v1650_v7 = vpop.f32.mrf.mxu1 }
 0x22c   : > { %v1714_v8 = vmul.f32 %v3213_v5, %v1630_v6  ;;  %v1722_v10 = vmul.f32 %v3213_v5, %v1650_v7 }
 0x22e   : > { %v1750_v11 = vadd.f32 %v3219_v9, %v1714_v8  ;;  %v1758_v13 = vadd.f32 %v3219_v9, %v1722_v10 }
 0x230   : > { %v1818_v22 = vmul.f32 %v3226_v12, %v1750_v11  ;;  %v1826_v23 = vmul.f32 %v3226_v12, %v1758_v13  ;;  %vm1782_vm0 = vcmp.ge.f32.partialorder %v1750_v11, 0.0  ;;  %vm1790_vm1 = vcmp.ge.f32.partialorder %v1758_v13, 0.0 }
 0x232   : > { %v1670_v14 = vpop.f32.mrf.mxu2  ;;  %v1690_v15 = vpop.f32.mrf.mxu3  ;;  %v1850_v33 = vsel %vm1782_vm0, %v1750_v11, %v1818_v22  ;;  %v1858_v35 = vsel %vm1790_vm1, %v1758_v13, %v1826_v23 }
 0x233   : > { %v1632_v16 = vpop.f32.mrf.mxu0  ;;  %v1652_v17 = vpop.f32.mrf.mxu1  ;;  %v1730_v20 = vmul.f32 %v3213_v5, %v1670_v14  ;;  %v1738_v21 = vmul.f32 %v3213_v5, %v1690_v15 }
 0x234   : > { %v1715_v18 = vmul.f32 %v3213_v5, %v1632_v16  ;;  %v1723_v19 = vmul.f32 %v3213_v5, %v1652_v17 }
 0x235   : > { %v1766_v28 = vadd.f32 %v3219_v9, %v1730_v20  ;;  %v1774_v29 = vadd.f32 %v3219_v9, %v1738_v21 }
 0x236   : > { %v1751_v24 = vadd.f32 %v3219_v9, %v1715_v18  ;;  %v1759_v25 = vadd.f32 %v3219_v9, %v1723_v19 }
 0x237   : > { %v1834_v48 = vmul.f32 %v3226_v12, %v1766_v28  ;;  %v1842_v49 = vmul.f32 %v3226_v12, %v1774_v29  ;;  %vm1798_vm4 = vcmp.ge.f32.partialorder %v1766_v28, 0.0  ;;  %vm1806_vm5 = vcmp.ge.f32.partialorder %v1774_v29, 0.0 }
 0x238   : > { %vm1783_vm2 = vcmp.ge.f32.partialorder %v1751_v24, 0.0  ;;  %v1819_v26 = vmul.f32 %v3226_v12, %v1751_v24  ;;  %vm1791_vm3 = vcmp.ge.f32.partialorder %v1759_v25, 0.0  ;;  %v1827_v27 = vmul.f32 %v3226_v12, %v1759_v25 }
 0x239   : > { %v1866_v57 = vsel %vm1798_vm4, %v1766_v28, %v1834_v48  ;;  %v1874_v58 = vsel %vm1806_vm5, %v1774_v29, %v1842_v49 }
 0x23a   : > { %v1851_v36 = vsel %vm1783_vm2, %v1751_v24, %v1819_v26  ;;  %v1859_v38 = vsel %vm1791_vm3, %v1759_v25, %v1827_v27  ;;  %v1672_v37 = vpop.f32.mrf.mxu2  ;;  %v1692_v39 = vpop.f32.mrf.mxu3 }
 0x23b   : > { %v2444_v42 = vpack.c.bf16 %v1851_v36, %v1850_v33  ;;  %v2464_v44 = vpack.c.bf16 %v1859_v38, %v1858_v35  ;;  %v1731_v45 = vmul.f32 %v3213_v5, %v1672_v37  ;;  %v1739_v43 = vmul.f32 %v3213_v5, %v1692_v39  ;;  %v1635_v46 = vpop.f32.mrf.mxu0  ;;  %v1655_v47 = vpop.f32.mrf.mxu1 }
 0x23c   : > { %v1716_v52 = vmul.f32 %v3213_v5, %v1635_v46  ;;  %v1724_v53 = vmul.f32 %v3213_v5, %v1655_v47 }
 0x23d   : > { %2445 = vst [vmem:[%s2906_s12] sm:$0xff] %v2444_v42   ;;  %v1767_v50 = vadd.f32 %v3219_v9, %v1731_v45  ;;  %v1775_v51 = vadd.f32 %v3219_v9, %v1739_v43 }
 0x23e   : > { %2539 = vst [vmem:[%s2906_s12 + $0x20] sm:$0xff] %v2464_v44   ;;  %v1752_v34 = vadd.f32 %v3219_v9, %v1716_v52  ;;  %v1760_v41 = vadd.f32 %v3219_v9, %v1724_v53 }
 0x23f   : > { %vm1799_vm6 = vcmp.ge.f32.partialorder %v1767_v50, 0.0  ;;  %v1835_v55 = vmul.f32 %v3226_v12, %v1767_v50  ;;  %vm1807_vm7 = vcmp.ge.f32.partialorder %v1775_v51, 0.0  ;;  %v1843_v56 = vmul.f32 %v3226_v12, %v1775_v51 }
 0x240   : > { %v1820_v61 = vmul.f32 %v3226_v12, %v1752_v34  ;;  %v1828_v3 = vmul.f32 %v3226_v12, %v1760_v41  ;;  %vm1784_vm8 = vcmp.ge.f32.partialorder %v1752_v34, 0.0  ;;  %vm1792_vm9 = vcmp.ge.f32.partialorder %v1760_v41, 0.0 }
 0x241   : > { %v1867_v30 = vsel %vm1799_vm6, %v1767_v50, %v1835_v55  ;;  %v1875_v31 = vsel %vm1807_vm7, %v1775_v51, %v1843_v56 }
 0x242   : > { %v2484_v40 = vpack.c.bf16 %v1867_v30, %v1866_v57  ;;  %v2504_v32 = vpack.c.bf16 %v1875_v31, %v1874_v58  ;;  %v1675_v59 = vpop.f32.mrf.mxu2  ;;  %v1695_v60 = vpop.f32.mrf.mxu3  ;;  %v1852_v13 = vsel %vm1784_vm8, %v1752_v34, %v1820_v61  ;;  %v1860_v14 = vsel %vm1792_vm9, %v1760_v41, %v1828_v3 }
 0x243   : > { %v1637_v54 = vpop.f32.mrf.mxu0  ;;  %v1657_v62 = vpop.f32.mrf.mxu1  ;;  %v1732_v1 = vmul.f32 %v3213_v5, %v1675_v59  ;;  %v1740_v2 = vmul.f32 %v3213_v5, %v1695_v60 }
 0x244   : > { %2543 = vst [vmem:[%s2906_s12 + $0x40] sm:$0xff] %v2484_v40   ;;  %v1717_v63 = vmul.f32 %v3213_v5, %v1637_v54  ;;  %v1725_v0 = vmul.f32 %v3213_v5, %v1657_v62 }
 0x245   : > { %2547 = vst [vmem:[%s2906_s12 + $0x60] sm:$0xff] %v2504_v32   ;;  %v1768_v10 = vadd.f32 %v3219_v9, %v1732_v1  ;;  %v1776_v11 = vadd.f32 %v3219_v9, %v1740_v2 }
 0x246   : > { %v1753_v4 = vadd.f32 %v3219_v9, %v1717_v63  ;;  %v1761_v6 = vadd.f32 %v3219_v9, %v1725_v0 }
 0x247   : > { %v1836_v25 = vmul.f32 %v3226_v12, %v1768_v10  ;;  %v1844_v26 = vmul.f32 %v3226_v12, %v1776_v11  ;;  %vm1800_vm12 = vcmp.ge.f32.partialorder %v1768_v10, 0.0  ;;  %vm1808_vm13 = vcmp.ge.f32.partialorder %v1776_v11, 0.0 }
 0x248   : > { %vm1785_vm10 = vcmp.ge.f32.partialorder %v1753_v4, 0.0  ;;  %v1821_v7 = vmul.f32 %v3226_v12, %v1753_v4  ;;  %vm1793_vm11 = vcmp.ge.f32.partialorder %v1761_v6, 0.0  ;;  %v1829_v8 = vmul.f32 %v3226_v12, %v1761_v6 }
 0x249   : > { %v1868_v38 = vsel %vm1800_vm12, %v1768_v10, %v1836_v25  ;;  %v1876_v37 = vsel %vm1808_vm13, %v1776_v11, %v1844_v26 }
 0x24a   : > { %v1853_v15 = vsel %vm1785_vm10, %v1753_v4, %v1821_v7  ;;  %v1861_v16 = vsel %vm1793_vm11, %v1761_v6, %v1829_v8  ;;  %v1677_v17 = vpop.f32.mrf.mxu2  ;;  %v1697_v18 = vpop.f32.mrf.mxu3 }
 0x24b   : > { %v2449_v19 = vpack.c.bf16 %v1853_v15, %v1852_v13  ;;  %v2469_v20 = vpack.c.bf16 %v1861_v16, %v1860_v14  ;;  %v1733_v21 = vmul.f32 %v3213_v5, %v1677_v17  ;;  %v1741_v22 = vmul.f32 %v3213_v5, %v1697_v18  ;;  %v1640_v23 = vpop.f32.mrf.mxu0  ;;  %v1660_v24 = vpop.f32.mrf.mxu1 }
 0x24c   : > { %v1718_v29 = vmul.f32 %v3213_v5, %v1640_v23  ;;  %v1726_v33 = vmul.f32 %v3213_v5, %v1660_v24 }
 0x24d   : > { %2536 = vst [vmem:[%s2906_s12 + $0x8] sm:$0xff] %v2449_v19   ;;  %v1769_v27 = vadd.f32 %v3219_v9, %v1733_v21  ;;  %v1777_v28 = vadd.f32 %v3219_v9, %v1741_v22 }
 0x24e   : > { %2540 = vst [vmem:[%s2906_s12 + $0x28] sm:$0xff] %v2469_v20   ;;  %v1754_v43 = vadd.f32 %v3219_v9, %v1718_v29  ;;  %v1762_v46 = vadd.f32 %v3219_v9, %v1726_v33 }
 0x24f   : > { %vm1801_vm14 = vcmp.ge.f32.partialorder %v1769_v27, 0.0  ;;  %v1837_v35 = vmul.f32 %v3226_v12, %v1769_v27  ;;  %vm1809_vm15 = vcmp.ge.f32.partialorder %v1777_v28, 0.0  ;;  %v1845_v36 = vmul.f32 %v3226_v12, %v1777_v28 }
 0x250   : > { %v1822_v56 = vmul.f32 %v3226_v12, %v1754_v43  ;;  %v1830_v57 = vmul.f32 %v3226_v12, %v1762_v46  ;;  %vm1786_vm0 = vcmp.ge.f32.partialorder %v1754_v43, 0.0  ;;  %vm1794_vm1 = vcmp.ge.f32.partialorder %v1762_v46, 0.0 }
 0x251   : > { %v1869_v39 = vsel %vm1801_vm14, %v1769_v27, %v1837_v35  ;;  %v1877_v42 = vsel %vm1809_vm15, %v1777_v28, %v1845_v36 }
 0x252   : > { %v2489_v44 = vpack.c.bf16 %v1869_v39, %v1868_v38  ;;  %v2509_v45 = vpack.c.bf16 %v1877_v42, %v1876_v37  ;;  %v1680_v47 = vpop.f32.mrf.mxu2  ;;  %v1700_v48 = vpop.f32.mrf.mxu3  ;;  %v1854_v41 = vsel %vm1786_vm0, %v1754_v43, %v1822_v56  ;;  %v1862_v59 = vsel %vm1794_vm1, %v1762_v46, %v1830_v57 }
 0x253   : > { %v1642_v49 = vpop.f32.mrf.mxu0  ;;  %v1662_v50 = vpop.f32.mrf.mxu1  ;;  %v1734_v53 = vmul.f32 %v3213_v5, %v1680_v47  ;;  %v1742_v55 = vmul.f32 %v3213_v5, %v1700_v48 }
 0x254   : > { %2544 = vst [vmem:[%s2906_s12 + $0x48] sm:$0xff] %v2489_v44   ;;  %v1719_v51 = vmul.f32 %v3213_v5, %v1642_v49  ;;  %v1727_v52 = vmul.f32 %v3213_v5, %v1662_v50 }
 0x255   : > { %2548 = vst [vmem:[%s2906_s12 + $0x68] sm:$0xff] %v2509_v45   ;;  %v1770_v32 = vadd.f32 %v3219_v9, %v1734_v53  ;;  %v1778_v34 = vadd.f32 %v3219_v9, %v1742_v55 }
 0x256   : > { %v1755_v58 = vadd.f32 %v3219_v9, %v1719_v51  ;;  %v1763_v30 = vadd.f32 %v3219_v9, %v1727_v52 }
 0x257   : > { %v1838_v6 = vmul.f32 %v3226_v12, %v1770_v32  ;;  %v1846_v7 = vmul.f32 %v3226_v12, %v1778_v34  ;;  %vm1802_vm4 = vcmp.ge.f32.partialorder %v1770_v32, 0.0  ;;  %vm1810_vm5 = vcmp.ge.f32.partialorder %v1778_v34, 0.0 }
 0x258   : > { %vm1787_vm2 = vcmp.ge.f32.partialorder %v1755_v58, 0.0  ;;  %v1823_v31 = vmul.f32 %v3226_v12, %v1755_v58  ;;  %vm1795_vm3 = vcmp.ge.f32.partialorder %v1763_v30, 0.0  ;;  %v1831_v40 = vmul.f32 %v3226_v12, %v1763_v30 }
 0x259   : > { %v1870_v16 = vsel %vm1802_vm4, %v1770_v32, %v1838_v6  ;;  %v1878_v17 = vsel %vm1810_vm5, %v1778_v34, %v1846_v7 }
 0x25a   : > { %v1855_v60 = vsel %vm1787_vm2, %v1755_v58, %v1823_v31  ;;  %v1863_v54 = vsel %vm1795_vm3, %v1763_v30, %v1831_v40  ;;  %v1682_v62 = vpop.f32.mrf.mxu2  ;;  %v1702_v63 = vpop.f32.mrf.mxu3 }
 0x25b   : > { %v2454_v0 = vpack.c.bf16 %v1855_v60, %v1854_v41  ;;  %v2474_v1 = vpack.c.bf16 %v1863_v54, %v1862_v59  ;;  %v1735_v2 = vmul.f32 %v3213_v5, %v1682_v62  ;;  %v1743_v61 = vmul.f32 %v3213_v5, %v1702_v63  ;;  %v1645_v3 = vpop.f32.mrf.mxu0  ;;  %v1665_v4 = vpop.f32.mrf.mxu1 }
 0x25c   : > { %v1720_v11 = vmul.f32 %v3213_v5, %v1645_v3  ;;  %v1728_v13 = vmul.f32 %v3213_v5, %v1665_v4 }
 0x25d   : > { %2537 = vst [vmem:[%s2906_s12 + $0x10] sm:$0xff] %v2454_v0   ;;  %v1771_v8 = vadd.f32 %v3219_v9, %v1735_v2  ;;  %v1779_v10 = vadd.f32 %v3219_v9, %v1743_v61 }
 0x25e   : > { %2541 = vst [vmem:[%s2906_s12 + $0x30] sm:$0xff] %v2474_v1   ;;  %v1756_v22 = vadd.f32 %v3219_v9, %v1720_v11  ;;  %v1764_v23 = vadd.f32 %v3219_v9, %v1728_v13 }
 0x25f   : > { %vm1803_vm6 = vcmp.ge.f32.partialorder %v1771_v8, 0.0  ;;  %v1839_v14 = vmul.f32 %v3226_v12, %v1771_v8  ;;  %vm1811_vm7 = vcmp.ge.f32.partialorder %v1779_v10, 0.0  ;;  %v1847_v15 = vmul.f32 %v3226_v12, %v1779_v10 }
 0x260   : > { %v1824_v36 = vmul.f32 %v3226_v12, %v1756_v22  ;;  %v1832_v38 = vmul.f32 %v3226_v12, %v1764_v23  ;;  %vm1788_vm8 = vcmp.ge.f32.partialorder %v1756_v22, 0.0  ;;  %vm1796_vm9 = vcmp.ge.f32.partialorder %v1764_v23, 0.0 }
 0x261   : > { %v1871_v18 = vsel %vm1803_vm6, %v1771_v8, %v1839_v14  ;;  %v1879_v19 = vsel %vm1811_vm7, %v1779_v10, %v1847_v15 }
 0x262   : > { %v2494_v20 = vpack.c.bf16 %v1871_v18, %v1870_v16  ;;  %v2514_v21 = vpack.c.bf16 %v1879_v19, %v1878_v17  ;;  %v1685_v24 = vpop.f32.mrf.mxu2  ;;  %v1705_v25 = vpop.f32.mrf.mxu3  ;;  %v1856_v46 = vsel %vm1788_vm8, %v1756_v22, %v1824_v36  ;;  %v1864_v47 = vsel %vm1796_vm9, %v1764_v23, %v1832_v38 }
 0x263   : > { %v1647_v26 = vpop.f32.mrf.mxu0  ;;  %v1667_v27 = vpop.f32.mrf.mxu1  ;;  %v1736_v33 = vmul.f32 %v3213_v5, %v1685_v24  ;;  %v1744_v35 = vmul.f32 %v3213_v5, %v1705_v25 }
 0x264   : > { %2545 = vst [vmem:[%s2906_s12 + $0x50] sm:$0xff] %v2494_v20   ;;  %v1721_v28 = vmul.f32 %v3213_v5, %v1647_v26  ;;  %v1729_v29 = vmul.f32 %v3213_v5, %v1667_v27 }
 0x265   : > { %2549 = vst [vmem:[%s2906_s12 + $0x70] sm:$0xff] %v2514_v21   ;;  %v1772_v45 = vadd.f32 %v3219_v9, %v1736_v33  ;;  %v1780_v43 = vadd.f32 %v3219_v9, %v1744_v35 }
 0x266   : > { %v1757_v37 = vadd.f32 %v3219_v9, %v1721_v28  ;;  %v1765_v39 = vadd.f32 %v3219_v9, %v1729_v29 }
 0x267   : > { %v1840_v57 = vmul.f32 %v3226_v12, %v1772_v45  ;;  %v1848_v58 = vmul.f32 %v3226_v12, %v1780_v43  ;;  %vm1804_vm12 = vcmp.ge.f32.partialorder %v1772_v45, 0.0  ;;  %vm1812_vm13 = vcmp.ge.f32.partialorder %v1780_v43, 0.0 }
 0x268   : > { %vm1789_vm10 = vcmp.ge.f32.partialorder %v1757_v37, 0.0  ;;  %v1825_v42 = vmul.f32 %v3226_v12, %v1757_v37  ;;  %vm1797_vm11 = vcmp.ge.f32.partialorder %v1765_v39, 0.0  ;;  %v1833_v44 = vmul.f32 %v3226_v12, %v1765_v39 }
 0x269   : > { %v1872_v32 = vsel %vm1804_vm12, %v1772_v45, %v1840_v57  ;;  %v1880_v34 = vsel %vm1812_vm13, %v1780_v43, %v1848_v58 }
 0x26a   : > { %v1857_v48 = vsel %vm1789_vm10, %v1757_v37, %v1825_v42  ;;  %v1865_v49 = vsel %vm1797_vm11, %v1765_v39, %v1833_v44  ;;  %v1687_v50 = vpop.f32.mrf.mxu2  ;;  %v1707_v51 = vpop.f32.mrf.mxu3 }
 0x26b   : > { %v2459_v52 = vpack.c.bf16 %v1857_v48, %v1856_v46  ;;  %v2479_v53 = vpack.c.bf16 %v1865_v49, %v1864_v47  ;;  %v1737_v55 = vmul.f32 %v3213_v5, %v1687_v50  ;;  %v1745_v56 = vmul.f32 %v3213_v5, %v1707_v51 }
 0x26d   : > { %2538 = vst [vmem:[%s2906_s12 + $0x18] sm:$0xff] %v2459_v52   ;;  %v1773_v30 = vadd.f32 %v3219_v9, %v1737_v55  ;;  %v1781_v31 = vadd.f32 %v3219_v9, %v1745_v56 }
 0x26e   : > { %2542 = vst [vmem:[%s2906_s12 + $0x38] sm:$0xff] %v2479_v53  }
 0x26f   : > { %vm1805_vm14 = vcmp.ge.f32.partialorder %v1773_v30, 0.0  ;;  %v1841_v40 = vmul.f32 %v3226_v12, %v1773_v30  ;;  %vm1813_vm15 = vcmp.ge.f32.partialorder %v1781_v31, 0.0  ;;  %v1849_v5 = vmul.f32 %v3226_v12, %v1781_v31 }
 0x271   : > { %v1873_v41 = vsel %vm1805_vm14, %v1773_v30, %v1841_v40  ;;  %v1881_v59 = vsel %vm1813_vm15, %v1781_v31, %v1849_v5 }
 0x272   : > { %v2499_v60 = vpack.c.bf16 %v1873_v41, %v1872_v32  ;;  %v2519_v54 = vpack.c.bf16 %v1881_v59, %v1880_v34 }
 0x274   : > { %2546 = vst [vmem:[%s2906_s12 + $0x58] sm:$0xff] %v2499_v60  }
 0x275   : > { %2550 = vst [vmem:[%s2906_s12 + $0x78] sm:$0xff] %v2519_v54  }
 0x276 PF: > { %s21_s19 = sadd.s32 1, %s2708_s19   ;;  %s3373_s27 = sld [smem:[#allocation4_spill]] }
 0x277   : > { %p18_p13 = scmp.ge.s32.totalorder %s21_s19, 6   ;;  %s3374_s28 = sld [smem:[#allocation5_spill]] }
 0x278   : > { %s3375_s13 = smov %s2688_s14  ;;  %s3376_s14 = smov %s2817_s26 }
 0x279   : > { %s3377_s15 = smov %s2700_s17  ;;  %s3378_s16 = smov %s2704_s18 }
 0x27a   :  { %20 = sbr.rel (!%p18_p13) target bundleno = 4 (0x4), region = 150 }
 0x27c   : > { %s3379_s17 = smov %s3373_s27 }
 0x27d   : > { %s3380_s18 = smov %s3374_s28 }

</bundles_post_ra>
